<compile_context>
chip_gen: v7x
topology: tpu7x:2x2x1
jax: 0.10.0
libtpu: 0.0.40
codegen_flags: <defaults>
</compile_context>

<pallas_src>
import math
import functools

import jax
import jax.numpy as jnp
from jax.experimental import pallas as pl
from jax.experimental.pallas import tpu as pltpu

BN_EPS = 1e-5
VMEM_LIMIT = 48 * 1024 * 1024
MC = 512  # in-kernel M-chunk for the 3x3 conv kernel

LAYER_CFG = (
    ("layer1", 32, 3, (2, 2)),
    ("layer2", 64, 4, (2, 2)),
    ("layer3", 128, 6, (2, 1)),
    ("layer4", 256, 6, (2, 1)),
    ("layer5", 512, 3, (2, 1)),
)


def _round_up(x, m):
    return (x + m - 1) // m * m


def _pick_tm(m):
    return 256 if m >= 256 else _round_up(m, 8)


def _pick_tn(np_):
    return 256 if np_ % 256 == 0 else 128


# ---------------------------------------------------------------------------
# Kernel A: fused 1x1 conv (matmul) + BN (+ ReLU); single and dual variants.
# K <= 512 in this network, so there is no K grid axis and no accumulator
# scratch: each output block is produced by exactly one grid step.
# ---------------------------------------------------------------------------
def _conv1x1_kernel(x_ref, w_ref, s_ref, b_ref, o_ref):
    acc = jnp.dot(x_ref[...], w_ref[...], preferred_element_type=jnp.float32)
    # f32 output: this activation feeds the 3x3 conv kernel (cast per tap there).
    o_ref[...] = jnp.maximum(acc * s_ref[...] + b_ref[...], 0.0)


def _dual_conv1x1_kernel(x_ref, w1_ref, s1_ref, b1_ref,
                         wd_ref, sd_ref, bd_ref, o1_ref, od_ref):
    x = x_ref[...]
    y1 = jnp.dot(x, w1_ref[...], preferred_element_type=jnp.float32)
    o1_ref[...] = jnp.maximum(y1 * s1_ref[...] + b1_ref[...], 0.0)      # f32
    yd = jnp.dot(x, wd_ref[...], preferred_element_type=jnp.float32)
    # Residual path, no ReLU; stored bf16 (added back in f32 inside conv3x3).
    od_ref[...] = (yd * sd_ref[...] + bd_ref[...]).astype(od_ref.dtype)


@functools.partial(jax.jit, static_argnames=("tm", "tn"))
def _conv1x1_call(xp, w, s, b, tm, tn):
    mp, kp = xp.shape
    np_ = w.shape[1]
    grid = (mp // tm, np_ // tn)
    return pl.pallas_call(
        _conv1x1_kernel,
        out_shape=jax.ShapeDtypeStruct((mp, np_), jnp.float32),
        grid_spec=pltpu.PrefetchScalarGridSpec(
            num_scalar_prefetch=0,
            grid=grid,
            in_specs=[
                pl.BlockSpec((tm, kp), lambda m, n: (m, 0)),
                pl.BlockSpec((kp, tn), lambda m, n: (0, n)),
                pl.BlockSpec((1, tn), lambda m, n: (0, n)),
                pl.BlockSpec((1, tn), lambda m, n: (0, n)),
            ],
            out_specs=pl.BlockSpec((tm, tn), lambda m, n: (m, n)),
        ),
        compiler_params=pltpu.CompilerParams(
            dimension_semantics=("parallel", "parallel"),
            vmem_limit_bytes=VMEM_LIMIT),
    )(xp, w, s, b)


@functools.partial(jax.jit, static_argnames=("tm", "tn"))
def _dual_conv1x1_call(xp, w1, s1, b1, wd, sd, bd, tm, tn):
    mp, kp = xp.shape
    np_ = w1.shape[1]
    grid = (mp // tm, np_ // tn)
    return pl.pallas_call(
        _dual_conv1x1_kernel,
        out_shape=(jax.ShapeDtypeStruct((mp, np_), jnp.float32),
                   jax.ShapeDtypeStruct((mp, np_), jnp.bfloat16)),
        grid_spec=pltpu.PrefetchScalarGridSpec(
            num_scalar_prefetch=0,
            grid=grid,
            in_specs=[
                pl.BlockSpec((tm, kp), lambda m, n: (m, 0)),
                pl.BlockSpec((kp, tn), lambda m, n: (0, n)),
                pl.BlockSpec((1, tn), lambda m, n: (0, n)),
                pl.BlockSpec((1, tn), lambda m, n: (0, n)),
                pl.BlockSpec((kp, tn), lambda m, n: (0, n)),
                pl.BlockSpec((1, tn), lambda m, n: (0, n)),
                pl.BlockSpec((1, tn), lambda m, n: (0, n)),
            ],
            out_specs=(pl.BlockSpec((tm, tn), lambda m, n: (m, n)),
                       pl.BlockSpec((tm, tn), lambda m, n: (m, n))),
        ),
        compiler_params=pltpu.CompilerParams(
            dimension_semantics=("parallel", "parallel"),
            vmem_limit_bytes=VMEM_LIMIT),
    )(xp, w1, s1, b1, wd, sd, bd)


# ---------------------------------------------------------------------------
# Kernel B: fused 3x3 conv (stride 1, pad 1) + BN (+ residual) + ReLU.
# The activation is spatially zero-padded and flattened to (S, C) per batch
# item; a tap (dh, dw) is then just a row offset dh*Wp + dw, so the conv is a
# sum of 9 shifted-slice matmuls -- no im2col materialization in HBM.
# Output rows live on the padded-width grid (H, Wp); the 2 junk columns per
# row are discarded by the wrapper.  Output is stored bf16 (block output /
# next-block residual); accumulation and the residual add stay in f32.
# ---------------------------------------------------------------------------
def _conv3x3_kernel(*refs, wp, so, mc, has_res):
    if has_res:
        x_ref, w_ref, s_ref, b_ref, r_ref, o_ref = refs
    else:
        x_ref, w_ref, s_ref, b_ref, o_ref = refs
        r_ref = None
    s = s_ref[...]
    bias = b_ref[...]
    for m0 in range(0, so, mc):
        m = min(mc, so - m0)
        acc = None
        for t in range(9):
            off = m0 + (t // 3) * wp + (t % 3)
            xt = x_ref[pl.ds(off, m), :].astype(jnp.bfloat16)
            c = jnp.dot(xt, w_ref[t], preferred_element_type=jnp.float32)
            acc = c if acc is None else acc + c
        y = acc * s + bias
        if r_ref is not None:
            y = y + r_ref[pl.ds(m0, m), :].astype(jnp.float32)
        o_ref[pl.ds(m0, m), :] = jnp.maximum(y, 0.0).astype(o_ref.dtype)


@functools.partial(jax.jit, static_argnames=("wp", "so", "tn"))
def _conv3x3_call(xflat, w9, s, b, r, wp, so, tn):
    B, sp_pad, cp = xflat.shape
    np_ = w9.shape[2]
    so_pad = _round_up(so, 8)
    has_res = r is not None
    kernel = functools.partial(_conv3x3_kernel, wp=wp, so=so, mc=MC,
                               has_res=has_res)
    in_specs = [
        pl.BlockSpec((None, sp_pad, cp), lambda bi, ni: (bi, 0, 0)),
        pl.BlockSpec((9, cp, tn), lambda bi, ni: (0, 0, ni)),
        pl.BlockSpec((1, tn), lambda bi, ni: (0, ni)),
        pl.BlockSpec((1, tn), lambda bi, ni: (0, ni)),
    ]
    args = [xflat, w9, s, b]
    if has_res:
        in_specs.append(pl.BlockSpec((None, so_pad, tn),
                                     lambda bi, ni: (bi, 0, ni)))
        args.append(r)
    return pl.pallas_call(
        kernel,
        out_shape=jax.ShapeDtypeStruct((B, so_pad, np_), jnp.bfloat16),
        grid_spec=pltpu.PrefetchScalarGridSpec(
            num_scalar_prefetch=0,
            grid=(B, np_ // tn),
            in_specs=in_specs,
            out_specs=pl.BlockSpec((None, so_pad, tn),
                                   lambda bi, ni: (bi, 0, ni)),
        ),
        compiler_params=pltpu.CompilerParams(
            dimension_semantics=("parallel", "parallel"),
            vmem_limit_bytes=VMEM_LIMIT),
    )(*args)


# ---------------------------------------------------------------------------
# Conv wrappers (layout glue in plain JAX, matmuls in Pallas)
# ---------------------------------------------------------------------------
def conv1x1_bn_relu(x, pk, stride=(1, 1)):
    """x: (B,H,W,Cp) channel-padded (bf16 or f32); returns (B,Ho,Wo,Np) f32."""
    B, H, W, Cp = x.shape
    sh, sw = stride
    xs = x[:, ::sh, ::sw, :]
    Ho, Wo = xs.shape[1], xs.shape[2]
    M = B * Ho * Wo
    tm = _pick_tm(M)
    mp = _round_up(M, tm)
    x2 = xs.reshape(M, Cp).astype(jnp.bfloat16)   # no-op when x is already bf16
    if mp != M:
        x2 = jnp.pad(x2, ((0, mp - M), (0, 0)))
    np_ = pk["w"].shape[1]
    out = _conv1x1_call(x2, pk["w"], pk["s"], pk["b"], tm=tm, tn=_pick_tn(np_))
    return out[:M].reshape(B, Ho, Wo, np_)


def dual_conv1x1_bn(x, pk1, pkd, stride):
    """Fused conv1(+BN+ReLU) and downsample(+BN) sharing one strided input."""
    B, H, W, Cp = x.shape
    sh, sw = stride
    xs = x[:, ::sh, ::sw, :]
    Ho, Wo = xs.shape[1], xs.shape[2]
    M = B * Ho * Wo
    tm = _pick_tm(M)
    mp = _round_up(M, tm)
    x2 = xs.reshape(M, Cp).astype(jnp.bfloat16)
    if mp != M:
        x2 = jnp.pad(x2, ((0, mp - M), (0, 0)))
    np_ = pk1["w"].shape[1]
    o1, od = _dual_conv1x1_call(x2, pk1["w"], pk1["s"], pk1["b"],
                                pkd["w"], pkd["s"], pkd["b"],
                                tm=tm, tn=_pick_tn(np_))
    o1 = o1[:M].reshape(B, Ho, Wo, np_)      # f32 -> conv2 input
    od = od[:M].reshape(B, Ho, Wo, np_)      # bf16 -> residual
    return o1, od


def conv3x3_bn_relu(x, pk, residual=None):
    """stride-1, pad-1 3x3 conv + BN [+ residual] + ReLU.

    x: (B,H,W,C) f32; residual: (B,H,W,Np) bf16 or None.  Returns bf16.
    """
    B, H, W, C = x.shape
    cp = pk["w"].shape[1]
    np_ = pk["w"].shape[2]
    wp = W + 2                      # padded row stride
    sp = (H + 3) * wp               # padded, flattened input rows per item
    so = H * wp                     # output rows on the padded-width grid
    sp_pad = _round_up(sp, 8)
    so_pad = _round_up(so, 8)
    # spatial pad: 1 top / 2 bottom rows, 1 left / 1 right cols; channel pad.
    xpad = jnp.pad(x, ((0, 0), (1, 2), (1, 1), (0, cp - C)))
    xf = xpad.reshape(B, sp, cp)
    if sp_pad != sp:
        xf = jnp.pad(xf, ((0, 0), (0, sp_pad - sp), (0, 0)))
    r = None
    if residual is not None:
        rn = residual.shape[-1]
        rp = jnp.pad(residual, ((0, 0), (0, 0), (0, 2), (0, np_ - rn)))
        r = rp.reshape(B, so, np_)
        if so_pad != so:
            r = jnp.pad(r, ((0, 0), (0, so_pad - so), (0, 0)))
    out = _conv3x3_call(xf, pk["w"], pk["s"], pk["b"], r,
                        wp=wp, so=so, tn=_pick_tn(np_))
    out = out[:, :so, :].reshape(B, H, wp, np_)[:, :, :W, :]
    return out


# ---------------------------------------------------------------------------
# Parameter construction: PyTorch init (kaiming fan_out, BN eval stats) with
# all weight packing / padding / BN folding / bf16 casts done once, here.
# ---------------------------------------------------------------------------
def _init_conv(key, cout, cin, kh, kw):
    fan_out = cout * kh * kw
    std = math.sqrt(2.0 / fan_out)
    return std * jax.random.normal(key, (cout, cin, kh, kw), jnp.float32)


def _init_bn(c):
    return {
        "gamma": jnp.ones((c,), jnp.float32),
        "beta": jnp.zeros((c,), jnp.float32),
        "mean": jnp.zeros((c,), jnp.float32),
        "var": jnp.ones((c,), jnp.float32),
    }


def _fold_bn(bn):
    scale = bn["gamma"] / jnp.sqrt(bn["var"] + BN_EPS)
    bias = bn["beta"] - bn["mean"] * scale
    return scale, bias


def _pack_1x1(w, bn):
    cout, cin = w.shape[0], w.shape[1]
    kp, np_ = _round_up(cin, 128), _round_up(cout, 128)
    wm = jnp.zeros((kp, np_), jnp.float32).at[:cin, :cout].set(w[:, :, 0, 0].T)
    s, b = _fold_bn(bn)
    sp = jnp.zeros((1, np_), jnp.float32).at[0, :cout].set(s)
    bp = jnp.zeros((1, np_), jnp.float32).at[0, :cout].set(b)
    return {"w": wm.astype(jnp.bfloat16), "s": sp, "b": bp}


def _pack_3x3(w, bn):
    cout, cin = w.shape[0], w.shape[1]
    cp, np_ = _round_up(cin, 128), _round_up(cout, 128)
    w9 = jnp.transpose(w, (2, 3, 1, 0)).reshape(9, cin, cout)
    wm = jnp.zeros((9, cp, np_), jnp.float32).at[:, :cin, :cout].set(w9)
    s, b = _fold_bn(bn)
    sp = jnp.zeros((1, np_), jnp.float32).at[0, :cout].set(s)
    bp = jnp.zeros((1, np_), jnp.float32).at[0, :cout].set(b)
    return {"w": wm.astype(jnp.bfloat16), "s": sp, "b": bp}


def _make_block_params(key, inplanes, planes, has_downsample):
    k1, k2, k3 = jax.random.split(key, 3)
    p = {
        "conv1": _pack_1x1(_init_conv(k1, planes, inplanes, 1, 1), _init_bn(planes)),
        "conv2": _pack_3x3(_init_conv(k2, planes, planes, 3, 3), _init_bn(planes)),
    }
    if has_downsample:
        p["down"] = _pack_1x1(_init_conv(k3, planes, inplanes, 1, 1),
                              _init_bn(planes))
    return p


def make_resnet_aster_params(key):
    params = {}
    key, k0 = jax.random.split(key)
    params["layer0"] = _pack_3x3(_init_conv(k0, 32, 3, 3, 3), _init_bn(32))
    inplanes = 32
    for (name, planes, blocks, stride) in LAYER_CFG:
        layer = []
        has_ds = (stride != (1, 1)) or (inplanes != planes)
        key, kb = jax.random.split(key)
        layer.append(_make_block_params(kb, inplanes, planes, has_ds))
        inplanes = planes
        for _ in range(1, blocks):
            key, kb = jax.random.split(key)
            layer.append(_make_block_params(kb, inplanes, planes, False))
        params[name] = layer
    return params


# ---------------------------------------------------------------------------
# Forward pass (AsterBlock + ResNet_ASTER, eval-mode BN, with_lstm=False)
# ---------------------------------------------------------------------------
def resnet_aster_forward(params, x_nchw):
    # layout: NCHW (PyTorch) -> NHWC internally; channel dims kept 128-padded
    # (padded lanes are exactly zero throughout).
    x = jnp.transpose(x_nchw, (0, 2, 3, 1)).astype(jnp.float32)
    x = conv3x3_bn_relu(x, params["layer0"])          # bf16 block output
    for (name, planes, blocks, stride) in LAYER_CFG:
        for bi, blk in enumerate(params[name]):
            blk_stride = tuple(stride) if bi == 0 else (1, 1)
            if "down" in blk:
                out1, res = dual_conv1x1_bn(x, blk["conv1"], blk["down"],
                                            blk_stride)
            else:
                out1 = conv1x1_bn_relu(x, blk["conv1"], blk_stride)
                res = x
            x = conv3x3_bn_relu(out1, blk["conv2"], residual=res)
    # x: (B, 1, W', 512) == PyTorch x5 (B, 512, 1, W'); squeeze(2).transpose(2,1)
    # TODO(synk): with_lstm=True branch (nn.LSTM) not implemented; default False.
    return x[:, 0, :, :].astype(jnp.float32)


# ---------------------------------------------------------------------------
if __name__ == "__main__":
    key = jax.random.PRNGKey(0)
    pkey, xkey = jax.random.split(key)
    params = make_resnet_aster_params(pkey)

    # H must be 32 so the five height-halvings bring H' to 1 (as in ASTER).
    B, C, H, W = 2, 3, 32, 16
    x = jax.random.normal(xkey, (B, C, H, W), jnp.float32)

    out = resnet_aster_forward(params, x)
    out = jax.block_until_ready(out)

    assert out.shape == (B, W // 4, 512), out.shape
    assert bool(jnp.all(jnp.isfinite(out)))
    print("KERNEL_OK")
</pallas_src>

<mosaic_0001>
module attributes {stable_mosaic.version = 11 : i64} {
  func.func @_conv3x3_kernel(%arg0: i32, %arg1: i32, %arg2: memref<1x632x128xf32, #tpu.memory_space<vmem>>, %arg3: memref<9x128x128xbf16, #tpu.memory_space<vmem>>, %arg4: memref<1x128xf32, #tpu.memory_space<vmem>>, %arg5: memref<1x128xf32, #tpu.memory_space<vmem>>, %arg6: memref<1x576x128xbf16, #tpu.memory_space<vmem>>) attributes {dimension_semantics = [#tpu.dimension_semantics<parallel>, #tpu.dimension_semantics<parallel>], iteration_bounds = array<i64: 2, 1>, scalar_prefetch = 0 : i64, scratch_operands = 0 : i64, tpu.core_type = #tpu.core_type<tc>, window_params = [{transform_indices = @transform_0, window_bounds = array<i64: 1, 632, 128>}, {transform_indices = @transform_1, window_bounds = array<i64: 9, 128, 128>}, {transform_indices = @transform_2, window_bounds = array<i64: 1, 128>}, {transform_indices = @transform_3, window_bounds = array<i64: 1, 128>}, {transform_indices = @transform_4, window_bounds = array<i64: 1, 576, 128>}]} {
    %c0 = arith.constant 0 : index
    %c0_0 = arith.constant 0 : index
    %0 = vector.load %arg4[%c0, %c0_0] : memref<1x128xf32, #tpu.memory_space<vmem>>, vector<1x128xf32>
    %c0_1 = arith.constant 0 : index
    %c0_2 = arith.constant 0 : index
    %1 = vector.load %arg5[%c0_1, %c0_2] : memref<1x128xf32, #tpu.memory_space<vmem>>, vector<1x128xf32>
    %c0_3 = arith.constant 0 : index
    %c0_4 = arith.constant 0 : index
    %c0_5 = arith.constant 0 : index
    %2 = vector.load %arg2[%c0_3, %c0_4, %c0_5] : memref<1x632x128xf32, #tpu.memory_space<vmem>>, vector<1x512x128xf32>
    %3 = vector.shape_cast %2 : vector<1x512x128xf32> to vector<512x128xf32>
    %4 = arith.truncf %3 : vector<512x128xf32> to vector<512x128xbf16>
    %c0_6 = arith.constant 0 : index
    %c0_7 = arith.constant 0 : index
    %c0_8 = arith.constant 0 : index
    %5 = vector.load %arg3[%c0_6, %c0_7, %c0_8] : memref<9x128x128xbf16, #tpu.memory_space<vmem>>, vector<1x128x128xbf16>
    %6 = vector.shape_cast %5 : vector<1x128x128xbf16> to vector<128x128xbf16>
    %cst = arith.constant dense<0.000000e+00> : vector<512x128xf32>
    %7 = tpu.matmul %4, %6, %cst {dimension_numbers = #tpu.dot_dimension_numbers<[1], [0], [0], [1], [0, 0, 1, 1], [], []>} : vector<512x128xbf16>, vector<128x128xbf16>, vector<512x128xf32> -> vector<512x128xf32>
    %c0_9 = arith.constant 0 : index
    %c1 = arith.constant 1 : index
    %c0_10 = arith.constant 0 : index
    %8 = vector.load %arg2[%c0_9, %c1, %c0_10] : memref<1x632x128xf32, #tpu.memory_space<vmem>>, vector<1x512x128xf32>
    %9 = vector.shape_cast %8 : vector<1x512x128xf32> to vector<512x128xf32>
    %10 = arith.truncf %9 : vector<512x128xf32> to vector<512x128xbf16>
    %c1_11 = arith.constant 1 : index
    %c0_12 = arith.constant 0 : index
    %c0_13 = arith.constant 0 : index
    %11 = vector.load %arg3[%c1_11, %c0_12, %c0_13] : memref<9x128x128xbf16, #tpu.memory_space<vmem>>, vector<1x128x128xbf16>
    %12 = vector.shape_cast %11 : vector<1x128x128xbf16> to vector<128x128xbf16>
    %cst_14 = arith.constant dense<0.000000e+00> : vector<512x128xf32>
    %13 = tpu.matmul %10, %12, %cst_14 {dimension_numbers = #tpu.dot_dimension_numbers<[1], [0], [0], [1], [0, 0, 1, 1], [], []>} : vector<512x128xbf16>, vector<128x128xbf16>, vector<512x128xf32> -> vector<512x128xf32>
    %14 = arith.addf %7, %13 : vector<512x128xf32>
    %c0_15 = arith.constant 0 : index
    %c2 = arith.constant 2 : index
    %c0_16 = arith.constant 0 : index
    %15 = vector.load %arg2[%c0_15, %c2, %c0_16] : memref<1x632x128xf32, #tpu.memory_space<vmem>>, vector<1x512x128xf32>
    %16 = vector.shape_cast %15 : vector<1x512x128xf32> to vector<512x128xf32>
    %17 = arith.truncf %16 : vector<512x128xf32> to vector<512x128xbf16>
    %c2_17 = arith.constant 2 : index
    %c0_18 = arith.constant 0 : index
    %c0_19 = arith.constant 0 : index
    %18 = vector.load %arg3[%c2_17, %c0_18, %c0_19] : memref<9x128x128xbf16, #tpu.memory_space<vmem>>, vector<1x128x128xbf16>
    %19 = vector.shape_cast %18 : vector<1x128x128xbf16> to vector<128x128xbf16>
    %cst_20 = arith.constant dense<0.000000e+00> : vector<512x128xf32>
    %20 = tpu.matmul %17, %19, %cst_20 {dimension_numbers = #tpu.dot_dimension_numbers<[1], [0], [0], [1], [0, 0, 1, 1], [], []>} : vector<512x128xbf16>, vector<128x128xbf16>, vector<512x128xf32> -> vector<512x128xf32>
    %21 = arith.addf %14, %20 : vector<512x128xf32>
    %c0_21 = arith.constant 0 : index
    %c18 = arith.constant 18 : index
    %c0_22 = arith.constant 0 : index
    %22 = vector.load %arg2[%c0_21, %c18, %c0_22] : memref<1x632x128xf32, #tpu.memory_space<vmem>>, vector<1x512x128xf32>
    %23 = vector.shape_cast %22 : vector<1x512x128xf32> to vector<512x128xf32>
    %24 = arith.truncf %23 : vector<512x128xf32> to vector<512x128xbf16>
    %c3 = arith.constant 3 : index
    %c0_23 = arith.constant 0 : index
    %c0_24 = arith.constant 0 : index
    %25 = vector.load %arg3[%c3, %c0_23, %c0_24] : memref<9x128x128xbf16, #tpu.memory_space<vmem>>, vector<1x128x128xbf16>
    %26 = vector.shape_cast %25 : vector<1x128x128xbf16> to vector<128x128xbf16>
    %cst_25 = arith.constant dense<0.000000e+00> : vector<512x128xf32>
    %27 = tpu.matmul %24, %26, %cst_25 {dimension_numbers = #tpu.dot_dimension_numbers<[1], [0], [0], [1], [0, 0, 1, 1], [], []>} : vector<512x128xbf16>, vector<128x128xbf16>, vector<512x128xf32> -> vector<512x128xf32>
    %28 = arith.addf %21, %27 : vector<512x128xf32>
    %c0_26 = arith.constant 0 : index
    %c19 = arith.constant 19 : index
    %c0_27 = arith.constant 0 : index
    %29 = vector.load %arg2[%c0_26, %c19, %c0_27] : memref<1x632x128xf32, #tpu.memory_space<vmem>>, vector<1x512x128xf32>
    %30 = vector.shape_cast %29 : vector<1x512x128xf32> to vector<512x128xf32>
    %31 = arith.truncf %30 : vector<512x128xf32> to vector<512x128xbf16>
    %c4 = arith.constant 4 : index
    %c0_28 = arith.constant 0 : index
    %c0_29 = arith.constant 0 : index
    %32 = vector.load %arg3[%c4, %c0_28, %c0_29] : memref<9x128x128xbf16, #tpu.memory_space<vmem>>, vector<1x128x128xbf16>
    %33 = vector.shape_cast %32 : vector<1x128x128xbf16> to vector<128x128xbf16>
    %cst_30 = arith.constant dense<0.000000e+00> : vector<512x128xf32>
    %34 = tpu.matmul %31, %33, %cst_30 {dimension_numbers = #tpu.dot_dimension_numbers<[1], [0], [0], [1], [0, 0, 1, 1], [], []>} : vector<512x128xbf16>, vector<128x128xbf16>, vector<512x128xf32> -> vector<512x128xf32>
    %35 = arith.addf %28, %34 : vector<512x128xf32>
    %c0_31 = arith.constant 0 : index
    %c20 = arith.constant 20 : index
    %c0_32 = arith.constant 0 : index
    %36 = vector.load %arg2[%c0_31, %c20, %c0_32] : memref<1x632x128xf32, #tpu.memory_space<vmem>>, vector<1x512x128xf32>
    %37 = vector.shape_cast %36 : vector<1x512x128xf32> to vector<512x128xf32>
    %38 = arith.truncf %37 : vector<512x128xf32> to vector<512x128xbf16>
    %c5 = arith.constant 5 : index
    %c0_33 = arith.constant 0 : index
    %c0_34 = arith.constant 0 : index
    %39 = vector.load %arg3[%c5, %c0_33, %c0_34] : memref<9x128x128xbf16, #tpu.memory_space<vmem>>, vector<1x128x128xbf16>
    %40 = vector.shape_cast %39 : vector<1x128x128xbf16> to vector<128x128xbf16>
    %cst_35 = arith.constant dense<0.000000e+00> : vector<512x128xf32>
    %41 = tpu.matmul %38, %40, %cst_35 {dimension_numbers = #tpu.dot_dimension_numbers<[1], [0], [0], [1], [0, 0, 1, 1], [], []>} : vector<512x128xbf16>, vector<128x128xbf16>, vector<512x128xf32> -> vector<512x128xf32>
    %42 = arith.addf %35, %41 : vector<512x128xf32>
    %c0_36 = arith.constant 0 : index
    %c36 = arith.constant 36 : index
    %c0_37 = arith.constant 0 : index
    %43 = vector.load %arg2[%c0_36, %c36, %c0_37] : memref<1x632x128xf32, #tpu.memory_space<vmem>>, vector<1x512x128xf32>
    %44 = vector.shape_cast %43 : vector<1x512x128xf32> to vector<512x128xf32>
    %45 = arith.truncf %44 : vector<512x128xf32> to vector<512x128xbf16>
    %c6 = arith.constant 6 : index
    %c0_38 = arith.constant 0 : index
    %c0_39 = arith.constant 0 : index
    %46 = vector.load %arg3[%c6, %c0_38, %c0_39] : memref<9x128x128xbf16, #tpu.memory_space<vmem>>, vector<1x128x128xbf16>
    %47 = vector.shape_cast %46 : vector<1x128x128xbf16> to vector<128x128xbf16>
    %cst_40 = arith.constant dense<0.000000e+00> : vector<512x128xf32>
    %48 = tpu.matmul %45, %47, %cst_40 {dimension_numbers = #tpu.dot_dimension_numbers<[1], [0], [0], [1], [0, 0, 1, 1], [], []>} : vector<512x128xbf16>, vector<128x128xbf16>, vector<512x128xf32> -> vector<512x128xf32>
    %49 = arith.addf %42, %48 : vector<512x128xf32>
    %c0_41 = arith.constant 0 : index
    %c37 = arith.constant 37 : index
    %c0_42 = arith.constant 0 : index
    %50 = vector.load %arg2[%c0_41, %c37, %c0_42] : memref<1x632x128xf32, #tpu.memory_space<vmem>>, vector<1x512x128xf32>
    %51 = vector.shape_cast %50 : vector<1x512x128xf32> to vector<512x128xf32>
    %52 = arith.truncf %51 : vector<512x128xf32> to vector<512x128xbf16>
    %c7 = arith.constant 7 : index
    %c0_43 = arith.constant 0 : index
    %c0_44 = arith.constant 0 : index
    %53 = vector.load %arg3[%c7, %c0_43, %c0_44] : memref<9x128x128xbf16, #tpu.memory_space<vmem>>, vector<1x128x128xbf16>
    %54 = vector.shape_cast %53 : vector<1x128x128xbf16> to vector<128x128xbf16>
    %cst_45 = arith.constant dense<0.000000e+00> : vector<512x128xf32>
    %55 = tpu.matmul %52, %54, %cst_45 {dimension_numbers = #tpu.dot_dimension_numbers<[1], [0], [0], [1], [0, 0, 1, 1], [], []>} : vector<512x128xbf16>, vector<128x128xbf16>, vector<512x128xf32> -> vector<512x128xf32>
    %56 = arith.addf %49, %55 : vector<512x128xf32>
    %c0_46 = arith.constant 0 : index
    %c38 = arith.constant 38 : index
    %c0_47 = arith.constant 0 : index
    %57 = vector.load %arg2[%c0_46, %c38, %c0_47] : memref<1x632x128xf32, #tpu.memory_space<vmem>>, vector<1x512x128xf32>
    %58 = vector.shape_cast %57 : vector<1x512x128xf32> to vector<512x128xf32>
    %59 = arith.truncf %58 : vector<512x128xf32> to vector<512x128xbf16>
    %c8 = arith.constant 8 : index
    %c0_48 = arith.constant 0 : index
    %c0_49 = arith.constant 0 : index
    %60 = vector.load %arg3[%c8, %c0_48, %c0_49] : memref<9x128x128xbf16, #tpu.memory_space<vmem>>, vector<1x128x128xbf16>
    %61 = vector.shape_cast %60 : vector<1x128x128xbf16> to vector<128x128xbf16>
    %cst_50 = arith.constant dense<0.000000e+00> : vector<512x128xf32>
    %62 = tpu.matmul %59, %61, %cst_50 {dimension_numbers = #tpu.dot_dimension_numbers<[1], [0], [0], [1], [0, 0, 1, 1], [], []>} : vector<512x128xbf16>, vector<128x128xbf16>, vector<512x128xf32> -> vector<512x128xf32>
    %63 = arith.addf %56, %62 : vector<512x128xf32>
    %64 = vector.broadcast %0 : vector<1x128xf32> to vector<512x128xf32>
    %65 = arith.mulf %63, %64 : vector<512x128xf32>
    %66 = vector.broadcast %1 : vector<1x128xf32> to vector<512x128xf32>
    %67 = arith.addf %65, %66 : vector<512x128xf32>
    %cst_51 = arith.constant 0.000000e+00 : f32
    %68 = vector.broadcast %cst_51 : f32 to vector<512x128xf32>
    %69 = arith.maximumf %67, %68 : vector<512x128xf32>
    %70 = arith.truncf %69 : vector<512x128xf32> to vector<512x128xbf16>
    %c0_52 = arith.constant 0 : index
    %c0_53 = arith.constant 0 : index
    %c0_54 = arith.constant 0 : index
    %71 = vector.load %arg6[%c0_52, %c0_53, %c0_54] : memref<1x576x128xbf16, #tpu.memory_space<vmem>>, vector<1x512x128xbf16>
    %72 = vector.shape_cast %71 : vector<1x512x128xbf16> to vector<512x128xbf16>
    %73 = vector.shape_cast %70 : vector<512x128xbf16> to vector<1x512x128xbf16>
    tpu.vector_store %arg6[%c0_52, %c0_53, %c0_54], %73 {strides = array<i32>} : memref<1x576x128xbf16, #tpu.memory_space<vmem>>, vector<1x512x128xbf16>,
    %c0_55 = arith.constant 0 : index
    %c512 = arith.constant 512 : index
    %c0_56 = arith.constant 0 : index
    %74 = vector.load %arg2[%c0_55, %c512, %c0_56] : memref<1x632x128xf32, #tpu.memory_space<vmem>>, vector<1x64x128xf32>
    %75 = vector.shape_cast %74 : vector<1x64x128xf32> to vector<64x128xf32>
    %76 = arith.truncf %75 : vector<64x128xf32> to vector<64x128xbf16>
    %c0_57 = arith.constant 0 : index
    %c0_58 = arith.constant 0 : index
    %c0_59 = arith.constant 0 : index
    %77 = vector.load %arg3[%c0_57, %c0_58, %c0_59] : memref<9x128x128xbf16, #tpu.memory_space<vmem>>, vector<1x128x128xbf16>
    %78 = vector.shape_cast %77 : vector<1x128x128xbf16> to vector<128x128xbf16>
    %cst_60 = arith.constant dense<0.000000e+00> : vector<64x128xf32>
    %79 = tpu.matmul %76, %78, %cst_60 {dimension_numbers = #tpu.dot_dimension_numbers<[1], [0], [0], [1], [0, 0, 1, 1], [], []>} : vector<64x128xbf16>, vector<128x128xbf16>, vector<64x128xf32> -> vector<64x128xf32>
    %c0_61 = arith.constant 0 : index
    %c513 = arith.constant 513 : index
    %c0_62 = arith.constant 0 : index
    %80 = vector.load %arg2[%c0_61, %c513, %c0_62] : memref<1x632x128xf32, #tpu.memory_space<vmem>>, vector<1x64x128xf32>
    %81 = vector.shape_cast %80 : vector<1x64x128xf32> to vector<64x128xf32>
    %82 = arith.truncf %81 : vector<64x128xf32> to vector<64x128xbf16>
    %c1_63 = arith.constant 1 : index
    %c0_64 = arith.constant 0 : index
    %c0_65 = arith.constant 0 : index
    %83 = vector.load %arg3[%c1_63, %c0_64, %c0_65] : memref<9x128x128xbf16, #tpu.memory_space<vmem>>, vector<1x128x128xbf16>
    %84 = vector.shape_cast %83 : vector<1x128x128xbf16> to vector<128x128xbf16>
    %cst_66 = arith.constant dense<0.000000e+00> : vector<64x128xf32>
    %85 = tpu.matmul %82, %84, %cst_66 {dimension_numbers = #tpu.dot_dimension_numbers<[1], [0], [0], [1], [0, 0, 1, 1], [], []>} : vector<64x128xbf16>, vector<128x128xbf16>, vector<64x128xf32> -> vector<64x128xf32>
    %86 = arith.addf %79, %85 : vector<64x128xf32>
    %c0_67 = arith.constant 0 : index
    %c514 = arith.constant 514 : index
    %c0_68 = arith.constant 0 : index
    %87 = vector.load %arg2[%c0_67, %c514, %c0_68] : memref<1x632x128xf32, #tpu.memory_space<vmem>>, vector<1x64x128xf32>
    %88 = vector.shape_cast %87 : vector<1x64x128xf32> to vector<64x128xf32>
    %89 = arith.truncf %88 : vector<64x128xf32> to vector<64x128xbf16>
    %c2_69 = arith.constant 2 : index
    %c0_70 = arith.constant 0 : index
    %c0_71 = arith.constant 0 : index
    %90 = vector.load %arg3[%c2_69, %c0_70, %c0_71] : memref<9x128x128xbf16, #tpu.memory_space<vmem>>, vector<1x128x128xbf16>
    %91 = vector.shape_cast %90 : vector<1x128x128xbf16> to vector<128x128xbf16>
    %cst_72 = arith.constant dense<0.000000e+00> : vector<64x128xf32>
    %92 = tpu.matmul %89, %91, %cst_72 {dimension_numbers = #tpu.dot_dimension_numbers<[1], [0], [0], [1], [0, 0, 1, 1], [], []>} : vector<64x128xbf16>, vector<128x128xbf16>, vector<64x128xf32> -> vector<64x128xf32>
    %93 = arith.addf %86, %92 : vector<64x128xf32>
    %c0_73 = arith.constant 0 : index
    %c530 = arith.constant 530 : index
    %c0_74 = arith.constant 0 : index
    %94 = vector.load %arg2[%c0_73, %c530, %c0_74] : memref<1x632x128xf32, #tpu.memory_space<vmem>>, vector<1x64x128xf32>
    %95 = vector.shape_cast %94 : vector<1x64x128xf32> to vector<64x128xf32>
    %96 = arith.truncf %95 : vector<64x128xf32> to vector<64x128xbf16>
    %c3_75 = arith.constant 3 : index
    %c0_76 = arith.constant 0 : index
    %c0_77 = arith.constant 0 : index
    %97 = vector.load %arg3[%c3_75, %c0_76, %c0_77] : memref<9x128x128xbf16, #tpu.memory_space<vmem>>, vector<1x128x128xbf16>
    %98 = vector.shape_cast %97 : vector<1x128x128xbf16> to vector<128x128xbf16>
    %cst_78 = arith.constant dense<0.000000e+00> : vector<64x128xf32>
    %99 = tpu.matmul %96, %98, %cst_78 {dimension_numbers = #tpu.dot_dimension_numbers<[1], [0], [0], [1], [0, 0, 1, 1], [], []>} : vector<64x128xbf16>, vector<128x128xbf16>, vector<64x128xf32> -> vector<64x128xf32>
    %100 = arith.addf %93, %99 : vector<64x128xf32>
    %c0_79 = arith.constant 0 : index
    %c531 = arith.constant 531 : index
    %c0_80 = arith.constant 0 : index
    %101 = vector.load %arg2[%c0_79, %c531, %c0_80] : memref<1x632x128xf32, #tpu.memory_space<vmem>>, vector<1x64x128xf32>
    %102 = vector.shape_cast %101 : vector<1x64x128xf32> to vector<64x128xf32>
    %103 = arith.truncf %102 : vector<64x128xf32> to vector<64x128xbf16>
    %c4_81 = arith.constant 4 : index
    %c0_82 = arith.constant 0 : index
    %c0_83 = arith.constant 0 : index
    %104 = vector.load %arg3[%c4_81, %c0_82, %c0_83] : memref<9x128x128xbf16, #tpu.memory_space<vmem>>, vector<1x128x128xbf16>
    %105 = vector.shape_cast %104 : vector<1x128x128xbf16> to vector<128x128xbf16>
    %cst_84 = arith.constant dense<0.000000e+00> : vector<64x128xf32>
    %106 = tpu.matmul %103, %105, %cst_84 {dimension_numbers = #tpu.dot_dimension_numbers<[1], [0], [0], [1], [0, 0, 1, 1], [], []>} : vector<64x128xbf16>, vector<128x128xbf16>, vector<64x128xf32> -> vector<64x128xf32>
    %107 = arith.addf %100, %106 : vector<64x128xf32>
    %c0_85 = arith.constant 0 : index
    %c532 = arith.constant 532 : index
    %c0_86 = arith.constant 0 : index
    %108 = vector.load %arg2[%c0_85, %c532, %c0_86] : memref<1x632x128xf32, #tpu.memory_space<vmem>>, vector<1x64x128xf32>
    %109 = vector.shape_cast %108 : vector<1x64x128xf32> to vector<64x128xf32>
    %110 = arith.truncf %109 : vector<64x128xf32> to vector<64x128xbf16>
    %c5_87 = arith.constant 5 : index
    %c0_88 = arith.constant 0 : index
    %c0_89 = arith.constant 0 : index
    %111 = vector.load %arg3[%c5_87, %c0_88, %c0_89] : memref<9x128x128xbf16, #tpu.memory_space<vmem>>, vector<1x128x128xbf16>
    %112 = vector.shape_cast %111 : vector<1x128x128xbf16> to vector<128x128xbf16>
    %cst_90 = arith.constant dense<0.000000e+00> : vector<64x128xf32>
    %113 = tpu.matmul %110, %112, %cst_90 {dimension_numbers = #tpu.dot_dimension_numbers<[1], [0], [0], [1], [0, 0, 1, 1], [], []>} : vector<64x128xbf16>, vector<128x128xbf16>, vector<64x128xf32> -> vector<64x128xf32>
    %114 = arith.addf %107, %113 : vector<64x128xf32>
    %c0_91 = arith.constant 0 : index
    %c548 = arith.constant 548 : index
    %c0_92 = arith.constant 0 : index
    %115 = vector.load %arg2[%c0_91, %c548, %c0_92] : memref<1x632x128xf32, #tpu.memory_space<vmem>>, vector<1x64x128xf32>
    %116 = vector.shape_cast %115 : vector<1x64x128xf32> to vector<64x128xf32>
    %117 = arith.truncf %116 : vector<64x128xf32> to vector<64x128xbf16>
    %c6_93 = arith.constant 6 : index
    %c0_94 = arith.constant 0 : index
    %c0_95 = arith.constant 0 : index
    %118 = vector.load %arg3[%c6_93, %c0_94, %c0_95] : memref<9x128x128xbf16, #tpu.memory_space<vmem>>, vector<1x128x128xbf16>
    %119 = vector.shape_cast %118 : vector<1x128x128xbf16> to vector<128x128xbf16>
    %cst_96 = arith.constant dense<0.000000e+00> : vector<64x128xf32>
    %120 = tpu.matmul %117, %119, %cst_96 {dimension_numbers = #tpu.dot_dimension_numbers<[1], [0], [0], [1], [0, 0, 1, 1], [], []>} : vector<64x128xbf16>, vector<128x128xbf16>, vector<64x128xf32> -> vector<64x128xf32>
    %121 = arith.addf %114, %120 : vector<64x128xf32>
    %c0_97 = arith.constant 0 : index
    %c549 = arith.constant 549 : index
    %c0_98 = arith.constant 0 : index
    %122 = vector.load %arg2[%c0_97, %c549, %c0_98] : memref<1x632x128xf32, #tpu.memory_space<vmem>>, vector<1x64x128xf32>
    %123 = vector.shape_cast %122 : vector<1x64x128xf32> to vector<64x128xf32>
    %124 = arith.truncf %123 : vector<64x128xf32> to vector<64x128xbf16>
    %c7_99 = arith.constant 7 : index
    %c0_100 = arith.constant 0 : index
    %c0_101 = arith.constant 0 : index
    %125 = vector.load %arg3[%c7_99, %c0_100, %c0_101] : memref<9x128x128xbf16, #tpu.memory_space<vmem>>, vector<1x128x128xbf16>
    %126 = vector.shape_cast %125 : vector<1x128x128xbf16> to vector<128x128xbf16>
    %cst_102 = arith.constant dense<0.000000e+00> : vector<64x128xf32>
    %127 = tpu.matmul %124, %126, %cst_102 {dimension_numbers = #tpu.dot_dimension_numbers<[1], [0], [0], [1], [0, 0, 1, 1], [], []>} : vector<64x128xbf16>, vector<128x128xbf16>, vector<64x128xf32> -> vector<64x128xf32>
    %128 = arith.addf %121, %127 : vector<64x128xf32>
    %c0_103 = arith.constant 0 : index
    %c550 = arith.constant 550 : index
    %c0_104 = arith.constant 0 : index
    %129 = vector.load %arg2[%c0_103, %c550, %c0_104] : memref<1x632x128xf32, #tpu.memory_space<vmem>>, vector<1x64x128xf32>
    %130 = vector.shape_cast %129 : vector<1x64x128xf32> to vector<64x128xf32>
    %131 = arith.truncf %130 : vector<64x128xf32> to vector<64x128xbf16>
    %c8_105 = arith.constant 8 : index
    %c0_106 = arith.constant 0 : index
    %c0_107 = arith.constant 0 : index
    %132 = vector.load %arg3[%c8_105, %c0_106, %c0_107] : memref<9x128x128xbf16, #tpu.memory_space<vmem>>, vector<1x128x128xbf16>
    %133 = vector.shape_cast %132 : vector<1x128x128xbf16> to vector<128x128xbf16>
    %cst_108 = arith.constant dense<0.000000e+00> : vector<64x128xf32>
    %134 = tpu.matmul %131, %133, %cst_108 {dimension_numbers = #tpu.dot_dimension_numbers<[1], [0], [0], [1], [0, 0, 1, 1], [], []>} : vector<64x128xbf16>, vector<128x128xbf16>, vector<64x128xf32> -> vector<64x128xf32>
    %135 = arith.addf %128, %134 : vector<64x128xf32>
    %136 = vector.broadcast %0 : vector<1x128xf32> to vector<64x128xf32>
    %137 = arith.mulf %135, %136 : vector<64x128xf32>
    %138 = vector.broadcast %1 : vector<1x128xf32> to vector<64x128xf32>
    %139 = arith.addf %137, %138 : vector<64x128xf32>
    %cst_109 = arith.constant 0.000000e+00 : f32
    %140 = vector.broadcast %cst_109 : f32 to vector<64x128xf32>
    %141 = arith.maximumf %139, %140 : vector<64x128xf32>
    %142 = arith.truncf %141 : vector<64x128xf32> to vector<64x128xbf16>
    %c0_110 = arith.constant 0 : index
    %c512_111 = arith.constant 512 : index
    %c0_112 = arith.constant 0 : index
    %143 = vector.load %arg6[%c0_110, %c512_111, %c0_112] : memref<1x576x128xbf16, #tpu.memory_space<vmem>>, vector<1x64x128xbf16>
    %144 = vector.shape_cast %143 : vector<1x64x128xbf16> to vector<64x128xbf16>
    %145 = vector.shape_cast %142 : vector<64x128xbf16> to vector<1x64x128xbf16>
    tpu.vector_store %arg6[%c0_110, %c512_111, %c0_112], %145 {strides = array<i32>} : memref<1x576x128xbf16, #tpu.memory_space<vmem>>, vector<1x64x128xbf16>,
    return
  }
  func.func @transform_0(%arg0: i32, %arg1: i32) -> (i32, i32, i32) {
    %c0_i32 = arith.constant 0 : i32
    %c0_i32_0 = arith.constant 0 : i32
    %c0_i32_1 = arith.constant 0 : i32
    return %arg0, %c0_i32, %c0_i32_0 : i32, i32, i32
  }
  func.func @transform_1(%arg0: i32, %arg1: i32) -> (i32, i32, i32) {
    %c0_i32 = arith.constant 0 : i32
    %c0_i32_0 = arith.constant 0 : i32
    %c0_i32_1 = arith.constant 0 : i32
    return %c0_i32, %c0_i32_0, %arg1 : i32, i32, i32
  }
  func.func @transform_2(%arg0: i32, %arg1: i32) -> (i32, i32) {
    %c0_i32 = arith.constant 0 : i32
    %c0_i32_0 = arith.constant 0 : i32
    return %c0_i32, %arg1 : i32, i32
  }
  func.func @transform_3(%arg0: i32, %arg1: i32) -> (i32, i32) {
    %c0_i32 = arith.constant 0 : i32
    %c0_i32_0 = arith.constant 0 : i32
    return %c0_i32, %arg1 : i32, i32
  }
  func.func @transform_4(%arg0: i32, %arg1: i32) -> (i32, i32, i32) {
    %c0_i32 = arith.constant 0 : i32
    %c0_i32_0 = arith.constant 0 : i32
    return %arg0, %c0_i32, %arg1 : i32, i32, i32
  }
}

</mosaic_0001>

<bundles_post_ra>
// kernel: _conv3x3_call.1
= control target key start
LH: loop header
LB: loop body
LE: loop exit
PB: predicated region body
PF: predicated region fallthrough
CT: control target
= control target key end

     0   :  { %9 = vsyncpa [#allocation3], 0  ;;  %s11114_s0 = inlined_call_operand.hbm [shape: f32[2,632,128], index: 0, kind: input, shape index: {}]   ;;  %s11115_s1 = inlined_call_operand.hbm [shape: bf16[9,128,128], index: 1, kind: input, shape index: {}]   ;;  %s11116_s2 = inlined_call_operand.vmem [shape: f32[1,128], index: 2, kind: input, shape index: {}]   ;;  %s11117_s3 = inlined_call_operand.vmem [shape: f32[1,128], index: 3, kind: input, shape index: {}]   ;;  %s11118_s4 = inlined_call_operand.hbm [shape: bf16[2,576,128], index: 4, kind: output, shape index: {}]  }
   0x1   :  { %11 = vsyncpa [#allocation3 + $0x1], 0 }
   0x2   :  { %12 = vsyncpa [#allocation6], 0 }
   0x3   :  { %13 = vsyncpa [#allocation4], 0 }
   0x4   :  { %15 = vsyncpa [#allocation4 + $0x1], 0  ;;  %s9757_s15 = smov 0   ;;  %s9759_s16 = smov 0  }
   0x5   :  { %s9761_s17 = smov 0   ;;  %s9763_s18 = smov 0  }
   0x6   :  { %s9765_s19 = smov 0   ;;  %s9767_s20 = smov 0  }
   0x7 LB: > { %s6827_s21 = sadd.s32 4294967295, %s9721_s20   ;;  %s6828_s22 = sadd.s32 4294967294, %s9721_s20   ;;  %s9721_s20 = sphi %s9767_s20, %s21_s20   ;;  %s9717_s19 = sphi %s9765_s19, %s11179_s19   ;;  %s9713_s18 = sphi %s9763_s18, %s11178_s18   ;;  %s9709_s17 = sphi %s9761_s17, %s11177_s17   ;;  %s9705_s16 = sphi %s9759_s16, %s11176_s16   ;;  %s9701_s15 = sphi %s9757_s15, %s11175_s15  }
   0x8   : > { %p53_p0 = scmp.ne.s32.totalorder %s9705_s16, %s9701_s15  ;;  %p9791_p1 = scmp.eq.s32.totalorder %s6827_s21, 0 }
   0x9   : > { %p9795_p2 = scmp.eq.s32.totalorder %s6827_s21, 1  ;;  %p163_p3 = scmp.eq.s32.totalorder %s6828_s22, 1 }
   0xa   : > { %s11123_s23 = scalar_select %p9791_p1, 1, 0 }
   0xb   : > { %s11124_s24 = scalar_select %p9795_p2, 1, 0 }
   0xc   : > { %p9801_p4 = por %p9791_p1, %p53_p0  ;;  %p6829_p5 = scmp.ge.s32.totalorder %s9721_s20, 1 }
   0xd   : > { %p9806_p6 = por %p163_p3, %p53_p0  ;;  %p170_p7 = scmp.lt.s32.totalorder %s9721_s20, 3 }
   0xe   : > { %s11125_s25 = scalar_select %p9801_p4, 1, 0 }
   0xf   : > { %s11126_s26 = scalar_select %p9806_p6, 1, 0 }
  0x10   : > { %p9811_p8 = pnand %p6829_p5, %p170_p7  ;;  %s9723_s28 = smov [#allocation5]  }
  0x11   : > { %s184_s29 = sshll.u32 %s9723_s28, 4  ;;  %s33_s5 = sadd.s32 1, %s9717_s19  ;;  %s185_s29 = int_to_ptr.vmem [resolvable:$true] %s184_s29 }
  0x12   : > { %s11127_s27 = scalar_select %p9811_p8, 1, 0 }
  0x13   : > { %p9354_p9 = pneg %p9811_p8  ;;  %s9577_s8 = scalar_lea.hbm %s11115_s1, 9216 }
  0x14   : > { %p9578_p12 = scmp.ne.s32.totalorder %s11115_s1, %s9577_s8  ;;  %p9584_p5 = scmp.lt.u32.totalorder %s9577_s8, %s11115_s1 }
  0x15   : > { %p9820_p11 = pnand %p9354_p9, %p9791_p1 }
  0x17   : > { %p9579_p13 = pneg %p9820_p11 }
  0x19   : > { %p9580_p0 = pnand %p9579_p13, %p9578_p12 }
  0x1b   : > { %p9581_p3 = pneg %p9580_p0 }
  0x1d   : > { %p9586_p7 = pnand %p9584_p5, %p9581_p3 }
  0x1f   : > { %9589 = shalt.err (!%p9586_p7)
}
  0x20   : > { %s9590_s13 = scalar_lea.vmem %s185_s29, 9216  ;;  %p9598_p1 = scmp.lt.s32.totalorder %s185_s29, %s185_s29 }
  0x21   : > { %p9591_p9 = scmp.ne.s32.totalorder %s185_s29, %s9590_s13  ;;  %p9599_p4 = scmp.lt.s32.totalorder %s9590_s13, %s9590_s13 }
  0x23   : > { %p9593_p10 = pnand %p9591_p9, %p9579_p13  ;;  %p9600_p8 = por %p9599_p4, %p9598_p1 }
  0x25   : > { %p9594_p6 = pneg %p9593_p10 }
  0x27   : > { %p9601_p2 = pnand %p9600_p8, %p9594_p6 }
  0x29   : > { %9604 = shalt.err (!%p9601_p2)
}
  0x2a   : > { %s9724_s14 = smov 64   ;;  %s9725_s21 = smov 4  }
  0x2b   : > { %9357 = dma.hbm_to_vmem [thread:$0]  (!%p9820_p11), %s11115_s1, 9216, %s185_s29, [#allocation6], %s9724_s14, %s9724_s14, %s9725_s21  }
  0x2c   : > { %p35_p1 = scmp.ge.s32.totalorder %s33_s5, 2  ;;  %s40_s6 = sadd.s32 1, %s9709_s17 }
  0x2d   : > { %p47_p2 = scmp.ne.s32.totalorder %s9709_s17, %s9705_s16  ;;  %p48_p4 = scmp.eq.s32.totalorder %s9721_s20, 0 }
  0x2e   : > { %s11181_s5 = smov (%p35_p1, %s33_s5), 0  ;;  %p11129_p8 = scmp.ne.s32.totalorder %s11124_s24, 0 }
  0x2f   : > { %p49_p6 = por %p48_p4, %p47_p2  ;;  %s37_s8 = ssub.s32 %s9717_s19, %s11181_s5 }
  0x30   : > { %p9849_p10 = por %p11129_p8, %p47_p2  ;;  %p9367_p12 = scmp.lt.s32.totalorder %s9721_s20, 2 }
  0x31   : > { %p38_p13 = scmp.eq.s32.totalorder %s37_s8, 0  ;;  %s210_s30 = sand.u32 1, %s9709_s17  }
  0x32   : > { %s9341_s9 = smul.u32 632, %s210_s30  ;;  %p9861_p11 = pnand %p9367_p12, %p49_p6 }
  0x33   : > { %s9858_s10 = scalar_select %p38_p13, %s9709_s17, %s40_s6  }
  0x34   : > { %s9342_s29 = smul.u32 10112, %s9717_s19  ;;  %s214_s11 = scalar_lea.vmem [#allocation2], %s9341_s9 }
  0x35   : > { %s221_s12 = sshll.u32 %s214_s11, 4  ;;  %s9872_s22 = scalar_lea.sflag [#allocation3], %s210_s30  ;;  %s9870_s12 = int_to_ptr.vmem [resolvable:$true] %s221_s12 }
  0x36   : > { %s9868_s21 = scalar_lea.hbm %s11114_s0, %s9342_s29  ;;  %p9607_p3 = pneg %p9861_p11 }
  0x37   : > { %s9605_s28 = scalar_lea.hbm %s9868_s21, 10112  ;;  %s9610_s9 = scalar_lea.hbm %s11114_s0, 20224 }
  0x38   : > { %p9606_p0 = scmp.ne.s32.totalorder %s9868_s21, %s9605_s28  ;;  %p9611_p9 = scmp.lt.u32.totalorder %s9868_s21, %s11114_s0 }
  0x39   : > { %p9612_p1 = scmp.lt.u32.totalorder %s9610_s9, %s9605_s28  ;;  %p9614_p4 = scmp.lt.u32.totalorder %s9605_s28, %s9868_s21 }
  0x3a   : > { %p9608_p5 = pnand %p9607_p3, %p9606_p0 }
  0x3b   : > { %p9613_p2 = por %p9612_p1, %p9611_p9 }
  0x3c   : > { %p9609_p7 = pneg %p9608_p5 }
  0x3d   : > { %p9615_p6 = por %p9614_p4, %p9613_p2 }
  0x3f   : > { %p9616_p8 = pnand %p9615_p6, %p9609_p7 }
  0x41   : > { %9619 = shalt.err (!%p9616_p8)
}
  0x42   : > { %s9620_s30 = scalar_lea.vmem %s9870_s12, 10112  ;;  %s9726_s14 = smov [#allocation2]  }
  0x43   : > { %p9621_p12 = scmp.ne.s32.totalorder %s9870_s12, %s9620_s30  ;;  %s9625_s24 = sshll.u32 %s9726_s14, 4  ;;  %s9626_s24 = int_to_ptr.vmem [resolvable:$false] %s9625_s24 }
  0x44   : > { %s9627_s6 = scalar_lea.vmem %s9626_s24, 20224  ;;  %p9628_p5 = scmp.lt.s32.totalorder %s9870_s12, %s9626_s24 }
  0x45   : > { %p9623_p13 = pnand %p9621_p12, %p9607_p3  ;;  %p9629_p9 = scmp.lt.s32.totalorder %s9627_s6, %s9620_s30 }
  0x47   : > { %p9624_p0 = pneg %p9623_p13  ;;  %p9630_p1 = por %p9629_p9, %p9628_p5 }
  0x49   : > { %p9631_p2 = pnand %p9630_p1, %p9624_p0 }
  0x4b   : > { %9634 = shalt.err (!%p9631_p2)
}
  0x4c   : > { %s9727_s28 = smov 128   ;;  %s9728_s8 = smov 8  }
  0x4d   : > { %9361 = dma.hbm_to_vmem [thread:$0]  (!%p9861_p11), %s9868_s21, 10112, %s9870_s12, %s9872_s22, %s9727_s28, %s9727_s28, %s9728_s8  }
  0x4e   : > { %p11132_p3 = scmp.ne.s32.totalorder %s11127_s27, 0 }
  0x50   : > { %233 = sbr.rel (%p11132_p3) target bundleno = 1074 (0x432), region = 36 }
  0x57   : > { %s9903_s9 = sand.u32 1, %s9705_s16   ;;  %p11133_p7 = scmp.ne.s32.totalorder %s11125_s25, 0 }
  0x58   : > { %s9343_s29 = smul.u32 632, %s9903_s9  ;;  %s236_s11 = scalar_lea.sflag [#allocation3], %s9903_s9 }
  0x5a   : > { %s9907_s30 = scalar_lea.vmem [#allocation2], %s9343_s29 }
  0x5b   : > { %9688 = dma.done.wait (%p11133_p7), %s236_s11, 10112  }
  0x5c   : > { %9690 = vsyncadd (%p11133_p7), %s236_s11, 4294957184  ;;  %p11134_p11 = scmp.ne.s32.totalorder %s11123_s23, 0 }
  0x5e   : > { %9692 = dma.done.wait (%p11134_p11), [#allocation6], 9216  }
  0x5f   : > { %9694 = vsyncadd (%p11134_p11), [#allocation6], 4294958080  ;;  %v9425_v0 = vld [vmem:[#allocation5 + $0x40] sm:$0xff]   ;;  %v9427_v2 = vld [vmem:[#allocation5 + $0x48] sm:$0xff]   ;;  %s9344_s13 = smul.u32 288, %s9903_s9  ;;  %s9729_s29 = smov [#allocation7]  }
  0x60   : > { %v9426_v1 = vld [vmem:[#allocation5 + $0xc0] sm:$0xff]   ;;  %7813 = vmatprep.subr.bf16.mxu1 %v9425_v0  ;;  %v9428_v3 = vld [vmem:[#allocation5 + $0xc8] sm:$0xff]   ;;  %v9429_v4 = vld [vmem:[#allocation5 + $0x50] sm:$0xff]   ;;  %s9345_s22 = smul.u32 4608, %s9713_s18  ;;  %s6694_s18 = scalar_lea.sflag [#allocation4], %s9903_s9 }
  0x61   : > { %8053 = vmatprep.subr.bf16.mxu0 %v9426_v1  ;;  %7814 = vmatpush3.bf16.msra.mxu1 %v9425_v0  ;;  %v9430_v5 = vld [vmem:[#allocation5 + $0xd0] sm:$0xff]   ;;  %v9431_v6 = vld [vmem:[#allocation5 + $0x58] sm:$0xff]   ;;  %v9433_v8 = vld [vmem:[#allocation5 + $0x60] sm:$0xff]   ;;  %s10830_s21 = scalar_lea.vmem [#allocation7], %s9344_s13  ;;  %s9639_s11 = sshll.u32 %s9729_s29, 4  ;;  %s9640_s11 = int_to_ptr.vmem [resolvable:$false] %s9639_s11 }
  0x62   : > { %8054 = vmatpush3.bf16.msra.mxu0 %v9426_v1  ;;  %7815 = vmatprep.subr.bf16.mxu1 %v9427_v2  ;;  %v9432_v7 = vld [vmem:[#allocation5 + $0xd8] sm:$0xff]   ;;  %v9434_v9 = vld [vmem:[#allocation5 + $0xe0] sm:$0xff]   ;;  %v9435_v10 = vld [vmem:[#allocation5 + $0x68] sm:$0xff]   ;;  %s6708_s14 = sshll.u32 %s10830_s21, 4  ;;  %s11061_s28 = scalar_lea.hbm %s11118_s4, %s9345_s22  ;;  %s11063_s14 = int_to_ptr.vmem [resolvable:$true] %s6708_s14 }
  0x63   : > { %8055 = vmatprep.subr.bf16.mxu0 %v9428_v3  ;;  %v395_v11 = vld [vmem:[%s9907_s30 + $0x1] sm:$0xff]  ;;  %v396_v12 = vld [vmem:[%s9907_s30 + $0x9] sm:$0xff]  ;;  %v1696_v13 = vld [vmem:[%s9907_s30 + $0x12] sm:$0xff]  ;;  %s9635_s8 = scalar_lea.vmem %s11063_s14, 4608  ;;  %p9642_p12 = scmp.lt.s32.totalorder %s11063_s14, %s9640_s11 }
  0x64   : > { %v9436_v14 = vld [vmem:[#allocation5 + $0xe8] sm:$0xff]   ;;  %v459_v15 = vpack.c.bf16 %v396_v12, %v395_v11  ;;  %v9437_v18 = vld [vmem:[#allocation5 + $0x70] sm:$0xff]   ;;  %v9439_v20 = vld [vmem:[#allocation5 + $0x78] sm:$0xff]   ;;  %p9636_p4 = scmp.ne.s32.totalorder %s11063_s14, %s9635_s8 }
  0x65   : > { %7816 = vmatpush3.bf16.msra.mxu1 %v9427_v2  ;;  %v1697_v16 = vld [vmem:[%s9907_s30 + $0x1a] sm:$0xff]  ;;  %v9440_v21 = vld [vmem:[#allocation5 + $0xf8] sm:$0xff]  }
  0x66   : > { %8056 = vmatpush3.bf16.msra.mxu0 %v9428_v3  ;;  %7817 = vmatprep.subr.bf16.mxu1 %v9429_v4  ;;  %v1760_v17 = vpack.c.bf16 %v1697_v16, %v1696_v13  ;;  %v9438_v19 = vld [vmem:[#allocation5 + $0xf0] sm:$0xff]   ;;  %v397_v22 = vld [vmem:[%s9907_s30 + $0x11] sm:$0xff]  ;;  %p9637_p6 = pnand %p9636_p4, %p9849_p10 }
  0x67   : > { %8057 = vmatprep.subr.bf16.mxu0 %v9430_v5  ;;  %7829 = vmatprep.mubr.bf16.mxu1 %v459_v15  ;;  %v398_v23 = vld [vmem:[%s9907_s30 + $0x19] sm:$0xff]  ;;  %v1698_v24 = vld [vmem:[%s9907_s30 + $0x22] sm:$0xff]  ;;  %v1699_v25 = vld [vmem:[%s9907_s30 + $0x2a] sm:$0xff] }
  0x68   : > { %8069 = vmatprep.mubr.bf16.mxu0 %v1760_v17  ;;  %v9442_v26 = vld [vmem:[#allocation5] sm:$0xff]   ;;  %v399_v28 = vld [vmem:[%s9907_s30 + $0x21] sm:$0xff]  ;;  %v460_v30 = vpack.c.bf16 %v398_v23, %v397_v22  ;;  %v1761_v33 = vpack.c.bf16 %v1699_v25, %v1698_v24  ;;  %p9638_p8 = pneg %p9637_p6 }
  0x69   : > { %7818 = vmatpush3.bf16.msra.mxu1 %v9429_v4  ;;  %v9441_v27 = vld [vmem:[#allocation5 + $0x100] sm:$0xff]   ;;  %v9443_v38 = vld [vmem:[#allocation5 + $0x108] sm:$0xff]   ;;  %v9447_v44 = vld [vmem:[#allocation5 + $0x10] sm:$0xff]  }
  0x6a   : > { %8058 = vmatpush3.bf16.msra.mxu0 %v9430_v5  ;;  %7819 = vmatprep.subr.bf16.mxu1 %v9431_v6  ;;  %v400_v29 = vld [vmem:[%s9907_s30 + $0x29] sm:$0xff]  ;;  %v1700_v31 = vld [vmem:[%s9907_s30 + $0x32] sm:$0xff]  ;;  %v1701_v32 = vld [vmem:[%s9907_s30 + $0x3a] sm:$0xff] }
  0x6b   : > { %8059 = vmatprep.subr.bf16.mxu0 %v9432_v7  ;;  %v461_v34 = vpack.c.bf16 %v400_v29, %v399_v28  ;;  %v1762_v35 = vpack.c.bf16 %v1701_v32, %v1700_v31  ;;  %v401_v36 = vld [vmem:[%s9907_s30 + $0x31] sm:$0xff]  ;;  %v402_v37 = vld [vmem:[%s9907_s30 + $0x39] sm:$0xff]  ;;  %v1702_v39 = vld [vmem:[%s9907_s30 + $0x42] sm:$0xff] }
  0x6c   : > { %v1703_v40 = vld [vmem:[%s9907_s30 + $0x4a] sm:$0xff]  ;;  %v403_v41 = vld [vmem:[%s9907_s30 + $0x41] sm:$0xff]  ;;  %v1704_v45 = vld [vmem:[%s9907_s30 + $0x52] sm:$0xff]  ;;  %v462_v48 = vpack.c.bf16 %v402_v37, %v401_v36 }
  0x6d   : > { %7820 = vmatpush3.bf16.msra.mxu1 %v9431_v6  ;;  %v9445_v42 = vld [vmem:[#allocation5 + $0x8] sm:$0xff]   ;;  %v404_v43 = vld [vmem:[%s9907_s30 + $0x49] sm:$0xff]  ;;  %v1763_v49 = vpack.c.bf16 %v1703_v40, %v1702_v39 }
  0x6e   : > { %8060 = vmatpush3.bf16.msra.mxu0 %v9432_v7  ;;  %7821 = vmatprep.subr.bf16.mxu1 %v9433_v8  ;;  %v1705_v46 = vld [vmem:[%s9907_s30 + $0x5a] sm:$0xff]  ;;  %v463_v50 = vpack.c.bf16 %v404_v43, %v403_v41  ;;  %v405_v52 = vld [vmem:[%s9907_s30 + $0x51] sm:$0xff]  ;;  %v1706_v55 = vld [vmem:[%s9907_s30 + $0x62] sm:$0xff] }
  0x6f   : > { %8061 = vmatprep.subr.bf16.mxu0 %v9434_v9  ;;  %v9444_v47 = vld [vmem:[#allocation5 + $0x110] sm:$0xff]   ;;  %v1764_v51 = vpack.c.bf16 %v1705_v46, %v1704_v45  ;;  %v9446_v54 = vld [vmem:[#allocation5 + $0x118] sm:$0xff]   ;;  %v9448_v62 = vld [vmem:[#allocation5 + $0x120] sm:$0xff]  }
  0x70   : > { %v406_v53 = vld [vmem:[%s9907_s30 + $0x59] sm:$0xff]  ;;  %v1707_v56 = vld [vmem:[%s9907_s30 + $0x6a] sm:$0xff]  ;;  %v407_v57 = vld [vmem:[%s9907_s30 + $0x61] sm:$0xff] }
  0x71   : > { %7822 = vmatpush3.bf16.msra.mxu1 %v9433_v8  ;;  %v408_v58 = vld [vmem:[%s9907_s30 + $0x69] sm:$0xff]  ;;  %v1708_v59 = vld [vmem:[%s9907_s30 + $0x72] sm:$0xff]  ;;  %v1709_v61 = vld [vmem:[%s9907_s30 + $0x7a] sm:$0xff]  ;;  %v464_v63 = vpack.c.bf16 %v406_v53, %v405_v52  ;;  %v1765_v0 = vpack.c.bf16 %v1707_v56, %v1706_v55 }
  0x72   : > { %8062 = vmatpush3.bf16.msra.mxu0 %v9434_v9  ;;  %7823 = vmatprep.subr.bf16.mxu1 %v9435_v10  ;;  %v9450_v60 = vld [vmem:[#allocation5 + $0x18] sm:$0xff]   ;;  %v465_v1 = vpack.c.bf16 %v408_v58, %v407_v57  ;;  %v1766_v2 = vpack.c.bf16 %v1709_v61, %v1708_v59  ;;  %v9449_v4 = vld [vmem:[#allocation5 + $0x128] sm:$0xff]   ;;  %v9451_v13 = vld [vmem:[#allocation5 + $0x130] sm:$0xff]  }
  0x73   : > { %8063 = vmatprep.subr.bf16.mxu0 %v9436_v14  ;;  %v409_v3 = vld [vmem:[%s9907_s30 + $0x71] sm:$0xff]  ;;  %v410_v5 = vld [vmem:[%s9907_s30 + $0x79] sm:$0xff]  ;;  %v1710_v6 = vld [vmem:[%s9907_s30 + $0x82] sm:$0xff] }
  0x74   : > { %v1711_v7 = vld [vmem:[%s9907_s30 + $0x8a] sm:$0xff]  ;;  %v411_v8 = vld [vmem:[%s9907_s30 + $0x81] sm:$0xff]  ;;  %v1712_v11 = vld [vmem:[%s9907_s30 + $0x92] sm:$0xff] }
  0x75   : > { %7824 = vmatpush3.bf16.msra.mxu1 %v9435_v10  ;;  %v412_v9 = vld [vmem:[%s9907_s30 + $0x89] sm:$0xff]  ;;  %v1713_v12 = vld [vmem:[%s9907_s30 + $0x9a] sm:$0xff]  ;;  %v1767_v15 = vpack.c.bf16 %v1711_v7, %v1710_v6  ;;  %v1720_v40 = vld [vmem:[%s9907_s30 + $0xd2] sm:$0xff] }
  0x76   : > { %8064 = vmatpush3.bf16.msra.mxu0 %v9436_v14  ;;  %7825 = vmatprep.subr.bf16.mxu1 %v9437_v18  ;;  %v9453_v10 = vld [vmem:[#allocation5 + $0x20] sm:$0xff]   ;;  %v466_v14 = vpack.c.bf16 %v410_v5, %v409_v3  ;;  %v467_v16 = vpack.c.bf16 %v412_v9, %v411_v8  ;;  %v1768_v17 = vpack.c.bf16 %v1713_v12, %v1712_v11  ;;  %v415_v23 = vld [vmem:[%s9907_s30 + $0xa1] sm:$0xff] }
  0x77   : > { %8065 = vmatprep.subr.bf16.mxu0 %v9438_v19  ;;  %v1715_v22 = vld [vmem:[%s9907_s30 + $0xaa] sm:$0xff]  ;;  %v9455_v25 = vld [vmem:[#allocation5 + $0x28] sm:$0xff]  }
  0x78   : > { %v416_v24 = vld [vmem:[%s9907_s30 + $0xa9] sm:$0xff]  ;;  %v1721_v41 = vld [vmem:[%s9907_s30 + $0xda] sm:$0xff]  ;;  %v1724_v53 = vld [vmem:[%s9907_s30 + $0xf2] sm:$0xff] }
  0x79   : > { %7826 = vmatpush3.bf16.msra.mxu1 %v9437_v18  ;;  %v9452_v18 = vld [vmem:[#allocation5 + $0x138] sm:$0xff]   ;;  %v9961_v28 = vld [vmem:[#allocation5 + $0x140] sm:$0xff]   ;;  %v469_v31 = vpack.c.bf16 %v416_v24, %v415_v23  ;;  %v9457_v36 = vld [vmem:[#allocation5 + $0x30] sm:$0xff]   ;;  %v1772_v45 = vpack.c.bf16 %v1721_v41, %v1720_v40 }
  0x7a   : > { %8066 = vmatpush3.bf16.msra.mxu0 %v9438_v19  ;;  %7827 = vmatprep.subr.bf16.mxu1 %v9439_v20  ;;  %v413_v19 = vld [vmem:[%s9907_s30 + $0x91] sm:$0xff]  ;;  %v420_v39 = vld [vmem:[%s9907_s30 + $0xc9] sm:$0xff]  ;;  %v426_v61 = vld [vmem:[%s9907_s30 + $0xf9] sm:$0xff] }
  0x7b   : > { %8067 = vmatprep.subr.bf16.mxu0 %v9440_v21  ;;  %v1719_v37 = vld [vmem:[%s9907_s30 + $0xca] sm:$0xff]  ;;  %v1729_v3 = vld [vmem:[%s9907_s30 + $0x11a] sm:$0xff] }
  0x7c   : > { %v9459_v46 = vld [vmem:[#allocation5 + $0x38] sm:$0xff]   ;;  %v430_v9 = vld [vmem:[%s9907_s30 + $0x119] sm:$0xff] }
  0x7d   : > { %7828 = vmatpush3.bf16.msra.mxu1 %v9439_v20  ;;  %v414_v20 = vld [vmem:[%s9907_s30 + $0x99] sm:$0xff]  ;;  %v424_v52 = vld [vmem:[%s9907_s30 + $0xe9] sm:$0xff]  ;;  %v425_v59 = vld [vmem:[%s9907_s30 + $0xf1] sm:$0xff] }
  0x7e   : > { %8068 = vmatpush3.bf16.msra.mxu0 %v9440_v21  ;;  %7893 = vmatprep.subr.bf16.mxu1 %v9442_v26  ;;  %v1714_v21 = vld [vmem:[%s9907_s30 + $0xa2] sm:$0xff]  ;;  %v468_v29 = vpack.c.bf16 %v414_v20, %v413_v19  ;;  %v429_v8 = vld [vmem:[%s9907_s30 + $0x111] sm:$0xff] }
  0x7f   : > { %8133 = vmatprep.subr.bf16.mxu0 %v9441_v27  ;;  %v1731_v11 = vld [vmem:[%s9907_s30 + $0x12a] sm:$0xff]  ;;  %v431_v12 = vld [vmem:[%s9907_s30 + $0x121] sm:$0xff]  ;;  %v2218_v40 = vld [vmem:[%s9907_s30 + $0x53] sm:$0xff] }
  0x80   : > { %7830 = vmatmul.mubr.bf16.vlgmr.msra.gmra.mrb[0].mxu1 %v460_v30  ;;  %v1769_v30 = vpack.c.bf16 %v1715_v22, %v1714_v21  ;;  %v433_v20 = vld [vmem:[%s9907_s30 + $0x131] sm:$0xff]  ;;  %v434_v21 = vld [vmem:[%s9907_s30 + $0x139] sm:$0xff]  ;;  %v2212_v22 = vld [vmem:[%s9907_s30 + $0x23] sm:$0xff] }
  0x81   : > { %8070 = vmatmul.mubr.bf16.vlgmr.msra.gmra.mrb[0].mxu0 %v1761_v33  ;;  %7894 = vmatpush3.bf16.msra.mxu1 %v9442_v26  ;;  %v1716_v26 = vld [vmem:[%s9907_s30 + $0xb2] sm:$0xff]  ;;  %v435_v24 = vld [vmem:[%s9907_s30 + $0x141] sm:$0xff] }
  0x82   : > { %8134 = vmatpush3.bf16.msra.mxu0 %v9441_v27  ;;  %7833 = vmatprep.mubr.bf16.mxu1 %v461_v34  ;;  %v1717_v27 = vld [vmem:[%s9907_s30 + $0xba] sm:$0xff]  ;;  %v417_v33 = vld [vmem:[%s9907_s30 + $0xb1] sm:$0xff] }
  0x83   : > { %8073 = vmatprep.mubr.bf16.mxu0 %v1762_v35  ;;  %8135 = vmatprep.subr.bf16.mxu0 %v9443_v38  ;;  %v1770_v32 = vpack.c.bf16 %v1717_v27, %v1716_v26  ;;  %v418_v34 = vld [vmem:[%s9907_s30 + $0xb9] sm:$0xff]  ;;  %v1718_v35 = vld [vmem:[%s9907_s30 + $0xc2] sm:$0xff]  ;;  %v2213_v23 = vld [vmem:[%s9907_s30 + $0x2b] sm:$0xff] }
  0x84   : > { %7895 = vmatprep.subr.bf16.mxu1 %v9445_v42  ;;  %v1771_v43 = vpack.c.bf16 %v1719_v37, %v1718_v35  ;;  %v2214_v26 = vld [vmem:[%s9907_s30 + $0x33] sm:$0xff]  ;;  %v2215_v27 = vld [vmem:[%s9907_s30 + $0x3b] sm:$0xff]  ;;  %v2217_v37 = vld [vmem:[%s9907_s30 + $0x4b] sm:$0xff] }
  0x85   : > { %7896 = vmatpush3.bf16.msra.mxu1 %v9445_v42  ;;  %v470_v42 = vpack.c.bf16 %v418_v34, %v417_v33  ;;  %v9456_v33 = vld [vmem:[#allocation5 + $0x148] sm:$0xff]  }
  0x86   : > { %8136 = vmatpush3.bf16.msra.mxu0 %v9443_v38  ;;  %7897 = vmatprep.subr.bf16.mxu1 %v9447_v44  ;;  %v419_v38 = vld [vmem:[%s9907_s30 + $0xc1] sm:$0xff]  ;;  %v437_v34 = vld [vmem:[%s9907_s30 + $0x151] sm:$0xff]  ;;  %v438_v35 = vld [vmem:[%s9907_s30 + $0x159] sm:$0xff] }
  0x87   : > { %8137 = vmatprep.subr.bf16.mxu0 %v9444_v47  ;;  %v2219_v41 = vld [vmem:[%s9907_s30 + $0x5b] sm:$0xff] }
  0x88   : > { %7834 = vmatmul.mubr.bf16.gmra.mrb[4].mxu1 %v462_v48  ;;  %v422_v48 = vld [vmem:[%s9907_s30 + $0xd9] sm:$0xff] }
  0x89   : > { %8074 = vmatmul.mubr.bf16.gmra.mrb[4].mxu0 %v1763_v49  ;;  %7837 = vmatprep.mubr.bf16.mxu1 %v463_v50  ;;  %v1722_v49 = vld [vmem:[%s9907_s30 + $0xe2] sm:$0xff]  ;;  %v1723_v50 = vld [vmem:[%s9907_s30 + $0xea] sm:$0xff] }
  0x8a   : > { %8077 = vmatprep.mubr.bf16.mxu0 %v1764_v51  ;;  %8138 = vmatpush3.bf16.msra.mxu0 %v9444_v47  ;;  %v421_v47 = vld [vmem:[%s9907_s30 + $0xd1] sm:$0xff]  ;;  %v423_v51 = vld [vmem:[%s9907_s30 + $0xe1] sm:$0xff]  ;;  %v1773_v56 = vpack.c.bf16 %v1723_v50, %v1722_v49 }
  0x8b   : > { %8139 = vmatprep.subr.bf16.mxu0 %v9446_v54  ;;  %7898 = vmatpush3.bf16.msra.mxu1 %v9447_v44  ;;  %v471_v44 = vpack.c.bf16 %v420_v39, %v419_v38  ;;  %v472_v55 = vpack.c.bf16 %v422_v48, %v421_v47  ;;  %v473_v57 = vpack.c.bf16 %v424_v52, %v423_v51  ;;  %v439_v38 = vld [vmem:[%s9907_s30 + $0x161] sm:$0xff]  ;;  %v440_v39 = vld [vmem:[%s9907_s30 + $0x169] sm:$0xff]  ;;  %v441_v47 = vld [vmem:[%s9907_s30 + $0x171] sm:$0xff] }
  0x8c   : > { %7899 = vmatprep.subr.bf16.mxu1 %v9450_v60  ;;  %v442_v48 = vld [vmem:[%s9907_s30 + $0x179] sm:$0xff]  ;;  %v2220_v49 = vld [vmem:[%s9907_s30 + $0x63] sm:$0xff]  ;;  %v2221_v50 = vld [vmem:[%s9907_s30 + $0x6b] sm:$0xff] }
  0x8d   : > { %v443_v51 = vld [vmem:[%s9907_s30 + $0x181] sm:$0xff]  ;;  %v444_v52 = vld [vmem:[%s9907_s30 + $0x189] sm:$0xff] }
  0x8e   : > { %8140 = vmatpush3.bf16.msra.mxu0 %v9446_v54  ;;  %v1725_v54 = vld [vmem:[%s9907_s30 + $0xfa] sm:$0xff] }
  0x8f   : > { %8141 = vmatprep.subr.bf16.mxu0 %v9448_v62  ;;  %7900 = vmatpush3.bf16.msra.mxu1 %v9450_v60  ;;  %v1774_v58 = vpack.c.bf16 %v1725_v54, %v1724_v53  ;;  %v9981_v60 = vld [vmem:[#allocation5 + $0x80] sm:$0xff]  }
  0x90   : > { %7838 = vmatmul.mubr.bf16.gmra.mrb[8].mxu1 %v464_v63  ;;  %7901 = vmatprep.subr.bf16.mxu1 %v9453_v10  ;;  %v1727_v63 = vld [vmem:[%s9907_s30 + $0x10a] sm:$0xff]  ;;  %v2222_v53 = vld [vmem:[%s9907_s30 + $0x73] sm:$0xff]  ;;  %v2223_v54 = vld [vmem:[%s9907_s30 + $0x7b] sm:$0xff] }
  0x91   : > { %8078 = vmatmul.mubr.bf16.gmra.mrb[8].mxu0 %v1765_v0  ;;  %7841 = vmatprep.mubr.bf16.mxu1 %v465_v1  ;;  %v427_v0 = vld [vmem:[%s9907_s30 + $0x101] sm:$0xff]  ;;  %v428_v1 = vld [vmem:[%s9907_s30 + $0x109] sm:$0xff] }
  0x92   : > { %8081 = vmatprep.mubr.bf16.mxu0 %v1766_v2  ;;  %8142 = vmatpush3.bf16.msra.mxu0 %v9448_v62  ;;  %v1726_v62 = vld [vmem:[%s9907_s30 + $0x102] sm:$0xff]  ;;  %v1728_v2 = vld [vmem:[%s9907_s30 + $0x112] sm:$0xff]  ;;  %v475_v6 = vpack.c.bf16 %v428_v1, %v427_v0 }
  0x93   : > { %8143 = vmatprep.subr.bf16.mxu0 %v9449_v4  ;;  %7902 = vmatpush3.bf16.msra.mxu1 %v9453_v10  ;;  %v1775_v5 = vpack.c.bf16 %v1727_v63, %v1726_v62  ;;  %v1776_v7 = vpack.c.bf16 %v1729_v3, %v1728_v2  ;;  %v1730_v10 = vld [vmem:[%s9907_s30 + $0x122] sm:$0xff]  ;;  %v446_v62 = vld [vmem:[%s9907_s30 + $0x199] sm:$0xff]  ;;  %v2225_v1 = vld [vmem:[%s9907_s30 + $0x8b] sm:$0xff] }
  0x94   : > { %7903 = vmatprep.subr.bf16.mxu1 %v9455_v25  ;;  %v9464_v63 = vld [vmem:[#allocation5 + $0x168] sm:$0xff]   ;;  %v448_v3 = vld [vmem:[%s9907_s30 + $0x1a9] sm:$0xff] }
  0x95   : > { %v2224_v0 = vld [vmem:[%s9907_s30 + $0x83] sm:$0xff] }
  0x96   : > { %8144 = vmatpush3.bf16.msra.mxu0 %v9449_v4  ;;  %v474_v4 = vpack.c.bf16 %v426_v61, %v425_v59  ;;  %v2280_v59 = vpack.c.bf16 %v2223_v54, %v2222_v53  ;;  %v445_v61 = vld [vmem:[%s9907_s30 + $0x191] sm:$0xff]  ;;  %v447_v2 = vld [vmem:[%s9907_s30 + $0x1a1] sm:$0xff] }
  0x97   : > { %8145 = vmatprep.subr.bf16.mxu0 %v9451_v13  ;;  %7904 = vmatpush3.bf16.msra.mxu1 %v9455_v25  ;;  %v436_v25 = vld [vmem:[%s9907_s30 + $0x149] sm:$0xff]  ;;  %v287_v53 = vld [vmem:[%s9907_s30 + $0x20] sm:$0xff] }
  0x98   : > { %7842 = vmatmul.mubr.bf16.gmra.mrb[12].mxu1 %v466_v14  ;;  %7905 = vmatprep.subr.bf16.mxu1 %v9457_v36  ;;  %v2210_v14 = vld [vmem:[%s9907_s30 + $0x13] sm:$0xff]  ;;  %v288_v54 = vld [vmem:[%s9907_s30 + $0x28] sm:$0xff] }
  0x99   : > { %8082 = vmatmul.mubr.bf16.gmra.mrb[12].mxu0 %v1767_v15  ;;  %7845 = vmatprep.mubr.bf16.mxu1 %v467_v16  ;;  %v2211_v15 = vld [vmem:[%s9907_s30 + $0x1b] sm:$0xff]  ;;  %v476_v16 = vpack.c.bf16 %v430_v9, %v429_v8  ;;  %v2281_v8 = vpack.c.bf16 %v2225_v1, %v2224_v0  ;;  %v485_v9 = vpack.c.bf16 %v448_v3, %v447_v2  ;;  %v2244_v1 = vld [vmem:[%s9907_s30 + $0x123] sm:$0xff]  ;;  %v2245_v2 = vld [vmem:[%s9907_s30 + $0x12b] sm:$0xff] }
  0x9a   : > { %8085 = vmatprep.mubr.bf16.mxu0 %v1768_v17  ;;  %8146 = vmatpush3.bf16.msra.mxu0 %v9451_v13  ;;  %v432_v13 = vld [vmem:[%s9907_s30 + $0x129] sm:$0xff]  ;;  %v1777_v17 = vpack.c.bf16 %v1731_v11, %v1730_v10  ;;  %v2274_v19 = vpack.c.bf16 %v2211_v15, %v2210_v14  ;;  %v290_v0 = vld [vmem:[%s9907_s30 + $0x38] sm:$0xff]  ;;  %v291_v3 = vld [vmem:[%s9907_s30 + $0x40] sm:$0xff] }
  0x9b   : > { %8147 = vmatprep.subr.bf16.mxu0 %v9452_v18  ;;  %7906 = vmatpush3.bf16.msra.mxu1 %v9457_v36  ;;  %v2216_v36 = vld [vmem:[%s9907_s30 + $0x43] sm:$0xff]  ;;  %v2229_v15 = vld [vmem:[%s9907_s30 + $0xab] sm:$0xff] }
  0x9c   : > { %7907 = vmatprep.subr.bf16.mxu1 %v9459_v46  ;;  %v9468_v11 = vld [vmem:[#allocation5 + $0x178] sm:$0xff]  }
  0x9d   : > { %v2228_v14 = vld [vmem:[%s9907_s30 + $0xa3] sm:$0xff] }
  0x9e   : > { %8148 = vmatpush3.bf16.msra.mxu0 %v9452_v18  ;;  %v477_v18 = vpack.c.bf16 %v432_v13, %v431_v12  ;;  %v449_v12 = vld [vmem:[%s9907_s30 + $0x1b1] sm:$0xff]  ;;  %v450_v13 = vld [vmem:[%s9907_s30 + $0x1b9] sm:$0xff] }
  0x9f   : > { %8213 = vmatprep.subr.bf16.mxu0 %v9961_v28  ;;  %7908 = vmatpush3.bf16.msra.mxu1 %v9459_v46  ;;  %v2278_v46 = vpack.c.bf16 %v2219_v41, %v2218_v40  ;;  %v2236_v40 = vld [vmem:[%s9907_s30 + $0xe3] sm:$0xff]  ;;  %v2237_v41 = vld [vmem:[%s9907_s30 + $0xeb] sm:$0xff] }
  0xa0   : > { %7846 = vmatmul.mubr.bf16.gmra.mrb[16].mxu1 %v468_v29  ;;  %7973 = vmatprep.subr.bf16.mxu1 %v9981_v60  ;;  %v478_v29 = vpack.c.bf16 %v434_v21, %v433_v20  ;;  %v10040_v20 = vld [vmem:[#allocation5 + $0x180] sm:$0xff]   ;;  %v486_v21 = vpack.c.bf16 %v450_v13, %v449_v12 }
  0xa1   : > { %8086 = vmatmul.mubr.bf16.gmra.mrb[16].mxu0 %v1769_v30  ;;  %7849 = vmatprep.mubr.bf16.mxu1 %v469_v31  ;;  %v2275_v30 = vpack.c.bf16 %v2213_v23, %v2212_v22  ;;  %v479_v31 = vpack.c.bf16 %v436_v25, %v435_v24  ;;  %v2283_v22 = vpack.c.bf16 %v2229_v15, %v2228_v14  ;;  %v453_v25 = vld [vmem:[%s9907_s30 + $0x1d1] sm:$0xff]  ;;  %v2248_v14 = vld [vmem:[%s9907_s30 + $0x143] sm:$0xff] }
  0xa2   : > { %8089 = vmatprep.mubr.bf16.mxu0 %v1770_v32  ;;  %v2276_v32 = vpack.c.bf16 %v2215_v27, %v2214_v26  ;;  %v454_v26 = vld [vmem:[%s9907_s30 + $0x1d9] sm:$0xff]  ;;  %v2232_v27 = vld [vmem:[%s9907_s30 + $0xc3] sm:$0xff]  ;;  %v293_v12 = vld [vmem:[%s9907_s30 + $0x50] sm:$0xff] }
  0xa3   : > { %v294_v13 = vld [vmem:[%s9907_s30 + $0x58] sm:$0xff]  ;;  %v2249_v15 = vld [vmem:[%s9907_s30 + $0x14b] sm:$0xff] }
  0xa8   : > { %7850 = vmatmul.mubr.bf16.gmra.mrb[20].mxu1 %v470_v42  ;;  %v9458_v42 = vld [vmem:[#allocation5 + $0x150] sm:$0xff]  }
  0xa9   : > { %8090 = vmatmul.mubr.bf16.gmra.mrb[20].mxu0 %v1771_v43  ;;  %7853 = vmatprep.mubr.bf16.mxu1 %v471_v44  ;;  %v480_v43 = vpack.c.bf16 %v438_v35, %v437_v34  ;;  %v2277_v44 = vpack.c.bf16 %v2217_v37, %v2216_v36  ;;  %v488_v34 = vpack.c.bf16 %v454_v26, %v453_v25  ;;  %v9471_v26 = vld [vmem:[#allocation5 + $0xa8] sm:$0xff]  }
  0xaa   : > { %8093 = vmatprep.mubr.bf16.mxu0 %v1772_v45  ;;  %v481_v45 = vpack.c.bf16 %v440_v39, %v439_v38  ;;  %v457_v38 = vld [vmem:[%s9907_s30 + $0x1f1] sm:$0xff]  ;;  %v458_v39 = vld [vmem:[%s9907_s30 + $0x1f9] sm:$0xff] }
  0xb0   : > { %7854 = vmatmul.mubr.bf16.gmra.mrb[24].mxu1 %v472_v55  ;;  %v9462_v55 = vld [vmem:[#allocation5 + $0x160] sm:$0xff]  }
  0xb1   : > { %8094 = vmatmul.mubr.bf16.gmra.mrb[24].mxu0 %v1773_v56  ;;  %7857 = vmatprep.mubr.bf16.mxu1 %v473_v57  ;;  %v482_v56 = vpack.c.bf16 %v442_v48, %v441_v47  ;;  %v2279_v57 = vpack.c.bf16 %v2221_v50, %v2220_v49  ;;  %v285_v49 = vld [vmem:[%s9907_s30 + $0x10] sm:$0xff]  ;;  %v286_v50 = vld [vmem:[%s9907_s30 + $0x18] sm:$0xff] }
  0xb2   : > { %8097 = vmatprep.mubr.bf16.mxu0 %v1774_v58  ;;  %v483_v58 = vpack.c.bf16 %v444_v52, %v443_v51  ;;  %v2240_v51 = vld [vmem:[%s9907_s30 + $0x103] sm:$0xff]  ;;  %v2241_v52 = vld [vmem:[%s9907_s30 + $0x10b] sm:$0xff] }
  0xb8   : > { %7858 = vmatmul.mubr.bf16.gmra.mrb[28].mxu1 %v474_v4  ;;  %v2226_v4 = vld [vmem:[%s9907_s30 + $0x93] sm:$0xff] }
  0xb9   : > { %8098 = vmatmul.mubr.bf16.gmra.mrb[28].mxu0 %v1775_v5  ;;  %7861 = vmatprep.mubr.bf16.mxu1 %v475_v6  ;;  %v2227_v5 = vld [vmem:[%s9907_s30 + $0x9b] sm:$0xff] }
  0xba   : > { %8101 = vmatprep.mubr.bf16.mxu0 %v1776_v7  ;;  %v9466_v6 = vld [vmem:[#allocation5 + $0x170] sm:$0xff]   ;;  %v484_v7 = vpack.c.bf16 %v446_v62, %v445_v61  ;;  %v2282_v10 = vpack.c.bf16 %v2227_v5, %v2226_v4  ;;  %v9463_v62 = vld [vmem:[#allocation5 + $0x88] sm:$0xff]  }
  0xbb   : > { %v292_v4 = vld [vmem:[%s9907_s30 + $0x48] sm:$0xff]  ;;  %v2246_v5 = vld [vmem:[%s9907_s30 + $0x133] sm:$0xff] }
  0xc0   : > { %7862 = vmatmul.mubr.bf16.gmra.mrb[32].mxu1 %v476_v16  ;;  %v451_v16 = vld [vmem:[%s9907_s30 + $0x1c1] sm:$0xff] }
  0xc1   : > { %8102 = vmatmul.mubr.bf16.gmra.mrb[32].mxu0 %v1777_v17  ;;  %7865 = vmatprep.mubr.bf16.mxu1 %v477_v18  ;;  %v452_v17 = vld [vmem:[%s9907_s30 + $0x1c9] sm:$0xff]  ;;  %v2230_v18 = vld [vmem:[%s9907_s30 + $0xb3] sm:$0xff] }
  0xc2   : > { %8149 = vmatprep.mubr.bf16.mxu0 %v2274_v19  ;;  %v2231_v19 = vld [vmem:[%s9907_s30 + $0xbb] sm:$0xff]  ;;  %v487_v23 = vpack.c.bf16 %v452_v17, %v451_v16  ;;  %v296_v17 = vld [vmem:[%s9907_s30 + $0x68] sm:$0xff] }
  0xc3   : > { %v2284_v24 = vpack.c.bf16 %v2231_v19, %v2230_v18  ;;  %v295_v16 = vld [vmem:[%s9907_s30 + $0x60] sm:$0xff]  ;;  %v2250_v18 = vld [vmem:[%s9907_s30 + $0x153] sm:$0xff] }
  0xc4   : > { %v2251_v19 = vld [vmem:[%s9907_s30 + $0x15b] sm:$0xff] }
  0xc5   : > { %v2294_v25 = vpack.c.bf16 %v2251_v19, %v2250_v18  ;;  %v315_v18 = vld [vmem:[%s9907_s30 + $0x100] sm:$0xff]  ;;  %v316_v19 = vld [vmem:[%s9907_s30 + $0x108] sm:$0xff] }
  0xc8   : > { %7866 = vmatmul.mubr.bf16.gmra.mrb[36].mxu1 %v478_v29  ;;  %v2233_v29 = vld [vmem:[%s9907_s30 + $0xcb] sm:$0xff] }
  0xc9   : > { %8150 = vmatmul.mubr.bf16.vlgmr.msra.gmra.mrb[0].mxu0 %v2275_v30  ;;  %7869 = vmatprep.mubr.bf16.mxu1 %v479_v31  ;;  %v455_v30 = vld [vmem:[%s9907_s30 + $0x1e1] sm:$0xff]  ;;  %v456_v31 = vld [vmem:[%s9907_s30 + $0x1e9] sm:$0xff]  ;;  %v2285_v35 = vpack.c.bf16 %v2233_v29, %v2232_v27  ;;  %v298_v29 = vld [vmem:[%s9907_s30 + $0x78] sm:$0xff] }
  0xca   : > { %8214 = vmatpush3.bf16.msra.mxu0 %v9961_v28  ;;  %8153 = vmatprep.mubr.bf16.mxu0 %v2276_v32  ;;  %v9460_v28 = vld [vmem:[#allocation5 + $0x158] sm:$0xff]   ;;  %v489_v36 = vpack.c.bf16 %v456_v31, %v455_v30 }
  0xcb   : > { %8215 = vmatprep.subr.bf16.mxu0 %v9456_v33  ;;  %v2234_v32 = vld [vmem:[%s9907_s30 + $0xd3] sm:$0xff]  ;;  %v2252_v30 = vld [vmem:[%s9907_s30 + $0x163] sm:$0xff]  ;;  %v2253_v31 = vld [vmem:[%s9907_s30 + $0x16b] sm:$0xff] }
  0xcc   : > { %v297_v27 = vld [vmem:[%s9907_s30 + $0x70] sm:$0xff] }
  0xce   : > { %8216 = vmatpush3.bf16.msra.mxu0 %v9456_v33  ;;  %v2235_v33 = vld [vmem:[%s9907_s30 + $0xdb] sm:$0xff] }
  0xcf   : > { %8217 = vmatprep.subr.bf16.mxu0 %v9458_v42  ;;  %v2286_v37 = vpack.c.bf16 %v2235_v33, %v2234_v32  ;;  %v299_v32 = vld [vmem:[%s9907_s30 + $0x80] sm:$0xff]  ;;  %v300_v33 = vld [vmem:[%s9907_s30 + $0x88] sm:$0xff] }
  0xd0   : > { %7870 = vmatmul.mubr.bf16.gmra.mrb[40].mxu1 %v480_v43  ;;  %v284_v43 = vld [vmem:[%s9907_s30 + $0x8] sm:$0xff] }
  0xd1   : > { %8154 = vmatmul.mubr.bf16.gmra.mrb[4].mxu0 %v2277_v44  ;;  %7873 = vmatprep.mubr.bf16.mxu1 %v481_v45  ;;  %v2238_v44 = vld [vmem:[%s9907_s30 + $0xf3] sm:$0xff]  ;;  %v2239_v45 = vld [vmem:[%s9907_s30 + $0xfb] sm:$0xff] }
  0xd2   : > { %8157 = vmatprep.mubr.bf16.mxu0 %v2278_v46  ;;  %8218 = vmatpush3.bf16.msra.mxu0 %v9458_v42  ;;  %v283_v42 = vld [vmem:[%s9907_s30] sm:$0xff]  ;;  %v490_v46 = vpack.c.bf16 %v458_v39, %v457_v38  ;;  %v2288_v48 = vpack.c.bf16 %v2239_v45, %v2238_v44  ;;  %v2295_v38 = vpack.c.bf16 %v2253_v31, %v2252_v30  ;;  %v2257_v45 = vld [vmem:[%s9907_s30 + $0x18b] sm:$0xff] }
  0xd3   : > { %8219 = vmatprep.subr.bf16.mxu0 %v9460_v28  ;;  %v347_v47 = vpack.c.bf16 %v284_v43, %v283_v42  ;;  %v355_v39 = vpack.c.bf16 %v300_v33, %v299_v32  ;;  %v301_v42 = vld [vmem:[%s9907_s30 + $0x90] sm:$0xff]  ;;  %v302_v43 = vld [vmem:[%s9907_s30 + $0x98] sm:$0xff]  ;;  %v2256_v44 = vld [vmem:[%s9907_s30 + $0x183] sm:$0xff] }
  0xd4   : > { %v2272_v30 = vld [vmem:[%s9907_s30 + $0x203] sm:$0xff]  ;;  %v2273_v31 = vld [vmem:[%s9907_s30 + $0x20b] sm:$0xff] }
  0xd5   : > { %v319_v32 = vld [vmem:[%s9907_s30 + $0x120] sm:$0xff]  ;;  %v320_v33 = vld [vmem:[%s9907_s30 + $0x128] sm:$0xff] }
  0xd6   : > { %8220 = vmatpush3.bf16.msra.mxu0 %v9460_v28  ;;  %v2287_v28 = vpack.c.bf16 %v2237_v41, %v2236_v40  ;;  %v9475_v41 = vld [vmem:[#allocation5 + $0xb8] sm:$0xff]  }
  0xd7   : > { %8221 = vmatprep.subr.bf16.mxu0 %v9462_v55 }
  0xd8   : > { %7874 = vmatmul.mubr.bf16.gmra.mrb[44].mxu1 %v482_v56  ;;  %v2243_v56 = vld [vmem:[%s9907_s30 + $0x11b] sm:$0xff] }
  0xd9   : > { %8158 = vmatmul.mubr.bf16.gmra.mrb[8].mxu0 %v2279_v57  ;;  %7877 = vmatprep.mubr.bf16.mxu1 %v483_v58  ;;  %v348_v57 = vpack.c.bf16 %v286_v50, %v285_v49  ;;  %v2289_v58 = vpack.c.bf16 %v2241_v52, %v2240_v51  ;;  %v356_v49 = vpack.c.bf16 %v302_v43, %v301_v42  ;;  %v2726_v42 = vld [vmem:[%s9907_s30 + $0x24] sm:$0xff]  ;;  %v2727_v43 = vld [vmem:[%s9907_s30 + $0x2c] sm:$0xff] }
  0xda   : > { %8161 = vmatprep.mubr.bf16.mxu0 %v2280_v59  ;;  %8222 = vmatpush3.bf16.msra.mxu0 %v9462_v55  ;;  %v2242_v55 = vld [vmem:[%s9907_s30 + $0x113] sm:$0xff]  ;;  %v349_v59 = vpack.c.bf16 %v288_v54, %v287_v53  ;;  %v2297_v50 = vpack.c.bf16 %v2257_v45, %v2256_v44  ;;  %v323_v44 = vld [vmem:[%s9907_s30 + $0x140] sm:$0xff]  ;;  %v324_v45 = vld [vmem:[%s9907_s30 + $0x148] sm:$0xff] }
  0xdb   : > { %8223 = vmatprep.subr.bf16.mxu0 %v9464_v63  ;;  %v2290_v61 = vpack.c.bf16 %v2243_v56, %v2242_v55  ;;  %v305_v53 = vld [vmem:[%s9907_s30 + $0xb0] sm:$0xff]  ;;  %v306_v54 = vld [vmem:[%s9907_s30 + $0xb8] sm:$0xff]  ;;  %v2260_v56 = vld [vmem:[%s9907_s30 + $0x1a3] sm:$0xff] }
  0xdc   : > { %v10102_v55 = vld [vmem:[#allocation5 + $0xc0] sm:$0xff]  }
  0xde   : > { %8224 = vmatpush3.bf16.msra.mxu0 %v9464_v63  ;;  %v289_v63 = vld [vmem:[%s9907_s30 + $0x30] sm:$0xff] }
  0xdf   : > { %8225 = vmatprep.subr.bf16.mxu0 %v9466_v6 }
  0xe0   : > { %7878 = vmatmul.mubr.bf16.gmra.mrb[48].mxu1 %v484_v7  ;;  %v2247_v7 = vld [vmem:[%s9907_s30 + $0x13b] sm:$0xff] }
  0xe1   : > { %8162 = vmatmul.mubr.bf16.gmra.mrb[12].mxu0 %v2281_v8  ;;  %7881 = vmatprep.mubr.bf16.mxu1 %v485_v9  ;;  %v350_v8 = vpack.c.bf16 %v290_v0, %v289_v63  ;;  %v2291_v9 = vpack.c.bf16 %v2245_v2, %v2244_v1  ;;  %v358_v63 = vpack.c.bf16 %v306_v54, %v305_v53  ;;  %v326_v53 = vld [vmem:[%s9907_s30 + $0x158] sm:$0xff]  ;;  %v2730_v54 = vld [vmem:[%s9907_s30 + $0x44] sm:$0xff] }
  0xe2   : > { %8165 = vmatprep.mubr.bf16.mxu0 %v2282_v10  ;;  %8226 = vmatpush3.bf16.msra.mxu0 %v9466_v6  ;;  %v9465_v6 = vld [vmem:[#allocation5 + $0x90] sm:$0xff]   ;;  %v351_v10 = vpack.c.bf16 %v292_v4, %v291_v3  ;;  %v309_v3 = vld [vmem:[%s9907_s30 + $0xd0] sm:$0xff]  ;;  %v310_v4 = vld [vmem:[%s9907_s30 + $0xd8] sm:$0xff] }
  0xe3   : > { %8227 = vmatprep.subr.bf16.mxu0 %v9468_v11 }
  0xe6   : > { %8228 = vmatpush3.bf16.msra.mxu0 %v9468_v11  ;;  %v9467_v11 = vld [vmem:[#allocation5 + $0x98] sm:$0xff]  }
  0xe7   : > { %8293 = vmatprep.subr.bf16.mxu0 %v10040_v20 }
  0xe8   : > { %7882 = vmatmul.mubr.bf16.gmra.mrb[52].mxu1 %v486_v21  ;;  %v9469_v21 = vld [vmem:[#allocation5 + $0xa0] sm:$0xff]  }
  0xe9   : > { %8166 = vmatmul.mubr.bf16.gmra.mrb[16].mxu0 %v2283_v22  ;;  %7885 = vmatprep.mubr.bf16.mxu1 %v487_v23  ;;  %v352_v22 = vpack.c.bf16 %v294_v13, %v293_v12  ;;  %v2293_v23 = vpack.c.bf16 %v2249_v15, %v2248_v14  ;;  %v313_v14 = vld [vmem:[%s9907_s30 + $0xf0] sm:$0xff]  ;;  %v314_v15 = vld [vmem:[%s9907_s30 + $0xf8] sm:$0xff] }
  0xea   : > { %8169 = vmatprep.mubr.bf16.mxu0 %v2284_v24  ;;  %v353_v24 = vpack.c.bf16 %v296_v17, %v295_v16  ;;  %v2268_v16 = vld [vmem:[%s9907_s30 + $0x1e3] sm:$0xff]  ;;  %v2269_v17 = vld [vmem:[%s9907_s30 + $0x1eb] sm:$0xff] }
  0xf0   : > { %7886 = vmatmul.mubr.bf16.gmra.mrb[56].mxu1 %v488_v34  ;;  %v2254_v34 = vld [vmem:[%s9907_s30 + $0x173] sm:$0xff] }
  0xf1   : > { %8170 = vmatmul.mubr.bf16.gmra.mrb[20].mxu0 %v2285_v35  ;;  %7889 = vmatprep.mubr.bf16.mxu1 %v489_v36  ;;  %v2255_v35 = vld [vmem:[%s9907_s30 + $0x17b] sm:$0xff] }
  0xf2   : > { %8173 = vmatprep.mubr.bf16.mxu0 %v2286_v37  ;;  %v9473_v36 = vld [vmem:[#allocation5 + $0xb0] sm:$0xff]   ;;  %v354_v37 = vpack.c.bf16 %v298_v29, %v297_v27  ;;  %v2296_v40 = vpack.c.bf16 %v2255_v35, %v2254_v34  ;;  %v317_v27 = vld [vmem:[%s9907_s30 + $0x110] sm:$0xff]  ;;  %v318_v29 = vld [vmem:[%s9907_s30 + $0x118] sm:$0xff] }
  0xf3   : > { %v2724_v34 = vld [vmem:[%s9907_s30 + $0x14] sm:$0xff]  ;;  %v2725_v35 = vld [vmem:[%s9907_s30 + $0x1c] sm:$0xff] }
  0xf8   : > { %7890 = vmatmul.mubr.bf16.gmra.mrb[60].mxu1 %v490_v46  ;;  %v303_v46 = vld [vmem:[%s9907_s30 + $0xa0] sm:$0xff] }
  0xf9   : > { %8174 = vmatmul.mubr.bf16.gmra.mrb[24].mxu0 %v2287_v28  ;;  %7909 = vmatprep.mubr.bf16.mxu1 %v347_v47  ;;  %v304_v28 = vld [vmem:[%s9907_s30 + $0xa8] sm:$0xff]  ;;  %v2258_v47 = vld [vmem:[%s9907_s30 + $0x193] sm:$0xff] }
  0xfa   : > { %8177 = vmatprep.mubr.bf16.mxu0 %v2288_v48  ;;  %v2259_v48 = vld [vmem:[%s9907_s30 + $0x19b] sm:$0xff]  ;;  %v357_v51 = vpack.c.bf16 %v304_v28, %v303_v46 }
  0xfb   : > { %v2298_v52 = vpack.c.bf16 %v2259_v48, %v2258_v47  ;;  %v2728_v46 = vld [vmem:[%s9907_s30 + $0x34] sm:$0xff]  ;;  %v2729_v28 = vld [vmem:[%s9907_s30 + $0x3c] sm:$0xff]  ;;  %v10143_v48 = vpack.c.bf16 %v2727_v43, %v2726_v42 }
 0x100   : > { %7910 = vmatmul.mubr.bf16.vlgmr.msra.gmra.mrb[0].mxu1 %v348_v57  ;;  %v2261_v57 = vld [vmem:[%s9907_s30 + $0x1ab] sm:$0xff] }
 0x101   : > { %8178 = vmatmul.mubr.bf16.gmra.mrb[28].mxu0 %v2289_v58  ;;  %7974 = vmatpush3.bf16.msra.mxu1 %v9981_v60  ;;  %v2292_v60 = vpack.c.bf16 %v2247_v7, %v2246_v5  ;;  %v307_v58 = vld [vmem:[%s9907_s30 + $0xc0] sm:$0xff]  ;;  %v2299_v0 = vpack.c.bf16 %v2261_v57, %v2260_v56  ;;  %v2731_v56 = vld [vmem:[%s9907_s30 + $0x4c] sm:$0xff] }
 0x102   : > { %7913 = vmatprep.mubr.bf16.mxu1 %v349_v59  ;;  %8181 = vmatprep.mubr.bf16.mxu0 %v2290_v61  ;;  %v308_v59 = vld [vmem:[%s9907_s30 + $0xc8] sm:$0xff]  ;;  %v2262_v61 = vld [vmem:[%s9907_s30 + $0x1b3] sm:$0xff]  ;;  %v311_v7 = vld [vmem:[%s9907_s30 + $0xe0] sm:$0xff] }
 0x103   : > { %7975 = vmatprep.subr.bf16.mxu1 %v9463_v62  ;;  %v359_v1 = vpack.c.bf16 %v308_v59, %v307_v58  ;;  %v2264_v5 = vld [vmem:[%s9907_s30 + $0x1c3] sm:$0xff]  ;;  %v2732_v59 = vld [vmem:[%s9907_s30 + $0x54] sm:$0xff] }
 0x104   : > { %v327_v57 = vld [vmem:[%s9907_s30 + $0x160] sm:$0xff]  ;;  %v328_v58 = vld [vmem:[%s9907_s30 + $0x168] sm:$0xff] }
 0x105   : > { %7976 = vmatpush3.bf16.msra.mxu1 %v9463_v62  ;;  %v2263_v62 = vld [vmem:[%s9907_s30 + $0x1bb] sm:$0xff] }
 0x106   : > { %7977 = vmatprep.subr.bf16.mxu1 %v9465_v6  ;;  %v2300_v2 = vpack.c.bf16 %v2263_v62, %v2262_v61  ;;  %v2733_v61 = vld [vmem:[%s9907_s30 + $0x5c] sm:$0xff] }
 0x107   : > { %v9474_v62 = vld [vmem:[#allocation5 + $0x190] sm:$0xff]  }
 0x108   : > { %7914 = vmatmul.mubr.bf16.gmra.mrb[4].mxu1 %v350_v8  ;;  %v312_v8 = vld [vmem:[%s9907_s30 + $0xe8] sm:$0xff] }
 0x109   : > { %8182 = vmatmul.mubr.bf16.gmra.mrb[32].mxu0 %v2291_v9  ;;  %7917 = vmatprep.mubr.bf16.mxu1 %v351_v10  ;;  %v2266_v9 = vld [vmem:[%s9907_s30 + $0x1d3] sm:$0xff]  ;;  %v2267_v10 = vld [vmem:[%s9907_s30 + $0x1db] sm:$0xff]  ;;  %v361_v12 = vpack.c.bf16 %v312_v8, %v311_v7  ;;  %v332_v8 = vld [vmem:[%s9907_s30 + $0x188] sm:$0xff] }
 0x10a   : > { %8185 = vmatprep.mubr.bf16.mxu0 %v2292_v60  ;;  %7978 = vmatpush3.bf16.msra.mxu1 %v9465_v6  ;;  %v2265_v6 = vld [vmem:[%s9907_s30 + $0x1cb] sm:$0xff]  ;;  %v360_v60 = vpack.c.bf16 %v310_v4, %v309_v3  ;;  %v2302_v13 = vpack.c.bf16 %v2267_v10, %v2266_v9  ;;  %v330_v4 = vld [vmem:[%s9907_s30 + $0x178] sm:$0xff]  ;;  %v331_v7 = vld [vmem:[%s9907_s30 + $0x180] sm:$0xff] }
 0x10b   : > { %7979 = vmatprep.subr.bf16.mxu1 %v9467_v11  ;;  %v329_v3 = vld [vmem:[%s9907_s30 + $0x170] sm:$0xff]  ;;  %v2737_v10 = vld [vmem:[%s9907_s30 + $0x7c] sm:$0xff] }
 0x10c   : > { %v2736_v9 = vld [vmem:[%s9907_s30 + $0x74] sm:$0xff] }
 0x10e   : > { %7980 = vmatpush3.bf16.msra.mxu1 %v9467_v11  ;;  %v2301_v11 = vpack.c.bf16 %v2265_v6, %v2264_v5  ;;  %v2734_v5 = vld [vmem:[%s9907_s30 + $0x64] sm:$0xff]  ;;  %v2735_v6 = vld [vmem:[%s9907_s30 + $0x6c] sm:$0xff] }
 0x10f   : > { %7981 = vmatprep.subr.bf16.mxu1 %v9469_v21 }
 0x110   : > { %7918 = vmatmul.mubr.bf16.gmra.mrb[8].mxu1 %v352_v22  ;;  %v2271_v22 = vld [vmem:[%s9907_s30 + $0x1fb] sm:$0xff] }
 0x111   : > { %8186 = vmatmul.mubr.bf16.gmra.mrb[36].mxu0 %v2293_v23  ;;  %7921 = vmatprep.mubr.bf16.mxu1 %v353_v24  ;;  %v362_v23 = vpack.c.bf16 %v314_v15, %v313_v14  ;;  %v2303_v24 = vpack.c.bf16 %v2269_v17, %v2268_v16  ;;  %v10174_v14 = vpack.c.bf16 %v2737_v10, %v2736_v9  ;;  %v9478_v15 = vld [vmem:[#allocation5 + $0x1a8] sm:$0xff]   ;;  %v333_v16 = vld [vmem:[%s9907_s30 + $0x190] sm:$0xff] }
 0x112   : > { %8189 = vmatprep.mubr.bf16.mxu0 %v2294_v25  ;;  %7982 = vmatpush3.bf16.msra.mxu1 %v9469_v21  ;;  %v2270_v21 = vld [vmem:[%s9907_s30 + $0x1f3] sm:$0xff]  ;;  %v363_v25 = vpack.c.bf16 %v316_v19, %v315_v18  ;;  %v2738_v18 = vld [vmem:[%s9907_s30 + $0x84] sm:$0xff] }
 0x113   : > { %7983 = vmatprep.subr.bf16.mxu1 %v9471_v26  ;;  %v334_v17 = vld [vmem:[%s9907_s30 + $0x198] sm:$0xff]  ;;  %v2739_v19 = vld [vmem:[%s9907_s30 + $0x8c] sm:$0xff] }
 0x114   : > { %v1184_v9 = vld [vmem:[%s9907_s30 + $0x12] sm:$0xff]  ;;  %v1185_v10 = vld [vmem:[%s9907_s30 + $0x1a] sm:$0xff] }
 0x116   : > { %7984 = vmatpush3.bf16.msra.mxu1 %v9471_v26  ;;  %v2304_v26 = vpack.c.bf16 %v2271_v22, %v2270_v21  ;;  %v335_v21 = vld [vmem:[%s9907_s30 + $0x1a0] sm:$0xff]  ;;  %v336_v22 = vld [vmem:[%s9907_s30 + $0x1a8] sm:$0xff] }
 0x117   : > { %7985 = vmatprep.subr.bf16.mxu1 %v9473_v36 }
 0x118   : > { %7922 = vmatmul.mubr.bf16.gmra.mrb[12].mxu1 %v354_v37  ;;  %v2305_v37 = vpack.c.bf16 %v2273_v31, %v2272_v30  ;;  %v9480_v31 = vld [vmem:[#allocation5 + $0x1b8] sm:$0xff]  }
 0x119   : > { %8190 = vmatmul.mubr.bf16.gmra.mrb[40].mxu0 %v2295_v38  ;;  %7925 = vmatprep.mubr.bf16.mxu1 %v355_v39  ;;  %v365_v38 = vpack.c.bf16 %v320_v33, %v319_v32  ;;  %v2788_v39 = vpack.c.bf16 %v2725_v35, %v2724_v34  ;;  %v337_v32 = vld [vmem:[%s9907_s30 + $0x1b0] sm:$0xff]  ;;  %v338_v33 = vld [vmem:[%s9907_s30 + $0x1b8] sm:$0xff]  ;;  %v2742_v34 = vld [vmem:[%s9907_s30 + $0xa4] sm:$0xff] }
 0x11a   : > { %8193 = vmatprep.mubr.bf16.mxu0 %v2296_v40  ;;  %7986 = vmatpush3.bf16.msra.mxu1 %v9473_v36  ;;  %v364_v36 = vpack.c.bf16 %v318_v29, %v317_v27  ;;  %v321_v40 = vld [vmem:[%s9907_s30 + $0x130] sm:$0xff]  ;;  %v10186_v27 = vpack.c.bf16 %v2739_v19, %v2738_v18  ;;  %v373_v29 = vpack.c.bf16 %v336_v22, %v335_v21 }
 0x11b   : > { %7987 = vmatprep.subr.bf16.mxu1 %v9475_v41  ;;  %v2743_v35 = vld [vmem:[%s9907_s30 + $0xac] sm:$0xff]  ;;  %v1247_v18 = vpack.c.bf16 %v1185_v10, %v1184_v9 }
 0x11c   : > { %v10202_v42 = vpack.c.bf16 %v2743_v35, %v2742_v34  ;;  %v9570_v34 = vld [vmem:[#allocation5 + $0xc8] sm:$0xff]  }
 0x11e   : > { %7988 = vmatpush3.bf16.msra.mxu1 %v9475_v41  ;;  %v322_v41 = vld [vmem:[%s9907_s30 + $0x138] sm:$0xff] }
 0x11f   : > { %8749 = vmatprep.subr.bf16.mxu1 %v10102_v55  ;;  %v366_v47 = vpack.c.bf16 %v322_v41, %v321_v40  ;;  %v10200_v40 = vld [vmem:[#allocation5 + $0x1c0] sm:$0xff]   ;;  %v374_v41 = vpack.c.bf16 %v338_v33, %v337_v32 }
 0x120   : > { %7926 = vmatmul.mubr.bf16.gmra.mrb[16].mxu1 %v356_v49  ;;  %v367_v49 = vpack.c.bf16 %v324_v45, %v323_v44  ;;  %v341_v45 = vld [vmem:[%s9907_s30 + $0x1d0] sm:$0xff]  ;;  %v2761_v33 = vld [vmem:[%s9907_s30 + $0x13c] sm:$0xff] }
 0x121   : > { %8194 = vmatmul.mubr.bf16.gmra.mrb[44].mxu0 %v2297_v50  ;;  %7929 = vmatprep.mubr.bf16.mxu1 %v357_v51  ;;  %v10145_v50 = vpack.c.bf16 %v2729_v28, %v2728_v46  ;;  %v9472_v51 = vld [vmem:[#allocation5 + $0x188] sm:$0xff]  }
 0x122   : > { %8197 = vmatprep.mubr.bf16.mxu0 %v2298_v52  ;;  %v325_v52 = vld [vmem:[%s9907_s30 + $0x150] sm:$0xff]  ;;  %v342_v46 = vld [vmem:[%s9907_s30 + $0x1d8] sm:$0xff]  ;;  %v2746_v28 = vld [vmem:[%s9907_s30 + $0xc4] sm:$0xff] }
 0x123   : > { %v2760_v32 = vld [vmem:[%s9907_s30 + $0x134] sm:$0xff] }
 0x128   : > { %7930 = vmatmul.mubr.bf16.gmra.mrb[20].mxu1 %v358_v63  ;;  %v368_v63 = vpack.c.bf16 %v326_v53, %v325_v52  ;;  %v2748_v52 = vld [vmem:[%s9907_s30 + $0xd4] sm:$0xff]  ;;  %v2749_v53 = vld [vmem:[%s9907_s30 + $0xdc] sm:$0xff] }
 0x129   : > { %8198 = vmatmul.mubr.bf16.gmra.mrb[48].mxu0 %v2299_v0  ;;  %7933 = vmatprep.mubr.bf16.mxu1 %v359_v1  ;;  %v10158_v0 = vpack.c.bf16 %v2731_v56, %v2730_v54  ;;  %v369_v1 = vpack.c.bf16 %v328_v58, %v327_v57  ;;  %v376_v54 = vpack.c.bf16 %v342_v46, %v341_v45  ;;  %v2763_v45 = vld [vmem:[%s9907_s30 + $0x14c] sm:$0xff]  ;;  %v1194_v46 = vld [vmem:[%s9907_s30 + $0x62] sm:$0xff] }
 0x12a   : > { %8201 = vmatprep.mubr.bf16.mxu0 %v2300_v2  ;;  %v9476_v2 = vld [vmem:[#allocation5 + $0x198] sm:$0xff]   ;;  %v10219_v58 = vpack.c.bf16 %v2749_v53, %v2748_v52 }
 0x130   : > { %7934 = vmatmul.mubr.bf16.gmra.mrb[24].mxu1 %v360_v60  ;;  %v9477_v60 = vld [vmem:[#allocation5 + $0x1a0] sm:$0xff]  }
 0x131   : > { %8202 = vmatmul.mubr.bf16.gmra.mrb[52].mxu0 %v2301_v11  ;;  %7937 = vmatprep.mubr.bf16.mxu1 %v361_v12  ;;  %v370_v11 = vpack.c.bf16 %v330_v4, %v329_v3  ;;  %v10172_v12 = vpack.c.bf16 %v2735_v6, %v2734_v5  ;;  %v2752_v3 = vld [vmem:[%s9907_s30 + $0xf4] sm:$0xff]  ;;  %v2753_v4 = vld [vmem:[%s9907_s30 + $0xfc] sm:$0xff] }
 0x132   : > { %8205 = vmatprep.mubr.bf16.mxu0 %v2302_v13  ;;  %v371_v13 = vpack.c.bf16 %v332_v8, %v331_v7  ;;  %v10233_v8 = vpack.c.bf16 %v2753_v4, %v2752_v3  ;;  %v1199_v3 = vld [vmem:[%s9907_s30 + $0x8a] sm:$0xff]  ;;  %v2768_v4 = vld [vmem:[%s9907_s30 + $0x174] sm:$0xff] }
 0x138   : > { %7938 = vmatmul.mubr.bf16.gmra.mrb[28].mxu1 %v362_v23  ;;  %v2740_v23 = vld [vmem:[%s9907_s30 + $0x94] sm:$0xff] }
 0x139   : > { %8206 = vmatmul.mubr.bf16.gmra.mrb[56].mxu0 %v2303_v24  ;;  %7941 = vmatprep.mubr.bf16.mxu1 %v363_v25  ;;  %v2741_v24 = vld [vmem:[%s9907_s30 + $0x9c] sm:$0xff] }
 0x13a   : > { %8209 = vmatprep.mubr.bf16.mxu0 %v2304_v26  ;;  %v9479_v25 = vld [vmem:[#allocation5 + $0x1b0] sm:$0xff]   ;;  %v372_v26 = vpack.c.bf16 %v334_v17, %v333_v16  ;;  %v10188_v30 = vpack.c.bf16 %v2741_v24, %v2740_v23  ;;  %v2756_v16 = vld [vmem:[%s9907_s30 + $0x114] sm:$0xff] }
 0x13b   : > { %v2757_v17 = vld [vmem:[%s9907_s30 + $0x11c] sm:$0xff]  ;;  %v1188_v23 = vld [vmem:[%s9907_s30 + $0x32] sm:$0xff] }
 0x13c   : > { %v10247_v22 = vpack.c.bf16 %v2757_v17, %v2756_v16  ;;  %v1189_v24 = vld [vmem:[%s9907_s30 + $0x3a] sm:$0xff]  ;;  %v2770_v17 = vld [vmem:[%s9907_s30 + $0x184] sm:$0xff] }
 0x13d   : > { %v1249_v35 = vpack.c.bf16 %v1189_v24, %v1188_v23  ;;  %v1201_v16 = vld [vmem:[%s9907_s30 + $0x9a] sm:$0xff]  ;;  %v1203_v23 = vld [vmem:[%s9907_s30 + $0xaa] sm:$0xff] }
 0x13e   : > { %v2772_v24 = vld [vmem:[%s9907_s30 + $0x194] sm:$0xff] }
 0x140   : > { %7942 = vmatmul.mubr.bf16.gmra.mrb[32].mxu1 %v364_v36  ;;  %v339_v36 = vld [vmem:[%s9907_s30 + $0x1c0] sm:$0xff] }
 0x141   : > { %8210 = vmatmul.mubr.bf16.gmra.mrb[60].mxu0 %v2305_v37  ;;  %7945 = vmatprep.mubr.bf16.mxu1 %v365_v38  ;;  %v340_v37 = vld [vmem:[%s9907_s30 + $0x1c8] sm:$0xff]  ;;  %v2744_v38 = vld [vmem:[%s9907_s30 + $0xb4] sm:$0xff] }
 0x142   : > { %8229 = vmatprep.mubr.bf16.mxu0 %v2788_v39  ;;  %v2745_v39 = vld [vmem:[%s9907_s30 + $0xbc] sm:$0xff]  ;;  %v375_v43 = vpack.c.bf16 %v340_v37, %v339_v36  ;;  %v10262_v37 = vpack.c.bf16 %v2761_v33, %v2760_v32 }
 0x143   : > { %v10204_v44 = vpack.c.bf16 %v2745_v39, %v2744_v38  ;;  %v9571_v38 = vld [vmem:[#allocation5 + $0xd0] sm:$0xff]   ;;  %v1192_v39 = vld [vmem:[%s9907_s30 + $0x52] sm:$0xff] }
 0x148   : > { %7946 = vmatmul.mubr.bf16.gmra.mrb[36].mxu1 %v366_v47  ;;  %v2747_v47 = vld [vmem:[%s9907_s30 + $0xcc] sm:$0xff] }
 0x149   : > { %8230 = vmatmul.mubr.bf16.vlgmr.msra.gmra.mrb[0].mxu0 %v10143_v48  ;;  %7949 = vmatprep.mubr.bf16.mxu1 %v367_v49  ;;  %v343_v49 = vld [vmem:[%s9907_s30 + $0x1e0] sm:$0xff]  ;;  %v10217_v56 = vpack.c.bf16 %v2747_v47, %v2746_v28  ;;  %v1195_v28 = vld [vmem:[%s9907_s30 + $0x6a] sm:$0xff]  ;;  %v2764_v47 = vld [vmem:[%s9907_s30 + $0x154] sm:$0xff] }
 0x14a   : > { %8294 = vmatpush3.bf16.msra.mxu0 %v10040_v20  ;;  %8233 = vmatprep.mubr.bf16.mxu0 %v10145_v50  ;;  %v10160_v20 = vpack.c.bf16 %v2733_v61, %v2732_v59  ;;  %v345_v59 = vld [vmem:[%s9907_s30 + $0x1f0] sm:$0xff]  ;;  %v346_v61 = vld [vmem:[%s9907_s30 + $0x1f8] sm:$0xff] }
 0x14b   : > { %8295 = vmatprep.subr.bf16.mxu0 %v9472_v51  ;;  %v378_v5 = vpack.c.bf16 %v346_v61, %v345_v59  ;;  %v9573_v59 = vld [vmem:[#allocation5 + $0xe0] sm:$0xff]  }
 0x14c   : > { %v1196_v61 = vld [vmem:[%s9907_s30 + $0x72] sm:$0xff] }
 0x14e   : > { %8296 = vmatpush3.bf16.msra.mxu0 %v9472_v51  ;;  %v344_v51 = vld [vmem:[%s9907_s30 + $0x1e8] sm:$0xff] }
 0x14f   : > { %8297 = vmatprep.subr.bf16.mxu0 %v9474_v62  ;;  %v377_v57 = vpack.c.bf16 %v344_v51, %v343_v49  ;;  %v2765_v49 = vld [vmem:[%s9907_s30 + $0x15c] sm:$0xff]  ;;  %v9572_v51 = vld [vmem:[#allocation5 + $0xd8] sm:$0xff]  }
 0x150   : > { %7950 = vmatmul.mubr.bf16.gmra.mrb[40].mxu1 %v368_v63  ;;  %v2751_v63 = vld [vmem:[%s9907_s30 + $0xec] sm:$0xff] }
 0x151   : > { %8234 = vmatmul.mubr.bf16.gmra.mrb[4].mxu0 %v10158_v0  ;;  %7953 = vmatprep.mubr.bf16.mxu1 %v369_v1  ;;  %v1182_v1 = vld [vmem:[%s9907_s30 + $0x2] sm:$0xff] }
 0x152   : > { %8237 = vmatprep.mubr.bf16.mxu0 %v10160_v20  ;;  %8298 = vmatpush3.bf16.msra.mxu0 %v9474_v62  ;;  %v2750_v62 = vld [vmem:[%s9907_s30 + $0xe4] sm:$0xff] }
 0x153   : > { %8299 = vmatprep.subr.bf16.mxu0 %v9476_v2  ;;  %v10231_v6 = vpack.c.bf16 %v2751_v63, %v2750_v62  ;;  %v1197_v62 = vld [vmem:[%s9907_s30 + $0x7a] sm:$0xff]  ;;  %v2766_v63 = vld [vmem:[%s9907_s30 + $0x164] sm:$0xff] }
 0x154   : > { %v1253_v9 = vpack.c.bf16 %v1197_v62, %v1196_v61  ;;  %v2779_v61 = vld [vmem:[%s9907_s30 + $0x1cc] sm:$0xff]  ;;  %v1210_v62 = vld [vmem:[%s9907_s30 + $0xe2] sm:$0xff] }
 0x156   : > { %8300 = vmatpush3.bf16.msra.mxu0 %v9476_v2  ;;  %v1183_v2 = vld [vmem:[%s9907_s30 + $0xa] sm:$0xff] }
 0x157   : > { %8301 = vmatprep.subr.bf16.mxu0 %v9477_v60  ;;  %v1246_v7 = vpack.c.bf16 %v1183_v2, %v1182_v1  ;;  %v2767_v1 = vld [vmem:[%s9907_s30 + $0x16c] sm:$0xff]  ;;  %v1198_v2 = vld [vmem:[%s9907_s30 + $0x82] sm:$0xff] }
 0x158   : > { %7954 = vmatmul.mubr.bf16.gmra.mrb[44].mxu1 %v370_v11  ;;  %v2755_v11 = vld [vmem:[%s9907_s30 + $0x10c] sm:$0xff]  ;;  %v10288_v10 = vpack.c.bf16 %v2767_v1, %v2766_v63  ;;  %v2780_v1 = vld [vmem:[%s9907_s30 + $0x1d4] sm:$0xff] }
 0x159   : > { %8238 = vmatmul.mubr.bf16.gmra.mrb[8].mxu0 %v10172_v12  ;;  %7957 = vmatprep.mubr.bf16.mxu1 %v371_v13  ;;  %v1186_v13 = vld [vmem:[%s9907_s30 + $0x22] sm:$0xff]  ;;  %v1211_v63 = vld [vmem:[%s9907_s30 + $0xea] sm:$0xff] }
 0x15a   : > { %8241 = vmatprep.mubr.bf16.mxu0 %v10174_v14  ;;  %8302 = vmatpush3.bf16.msra.mxu0 %v9477_v60  ;;  %v2754_v60 = vld [vmem:[%s9907_s30 + $0x104] sm:$0xff] }
 0x15b   : > { %8303 = vmatprep.subr.bf16.mxu0 %v9478_v15  ;;  %v10245_v19 = vpack.c.bf16 %v2755_v11, %v2754_v60  ;;  %v1254_v60 = vpack.c.bf16 %v1199_v3, %v1198_v2  ;;  %v2781_v2 = vld [vmem:[%s9907_s30 + $0x1dc] sm:$0xff] }
 0x15e   : > { %8304 = vmatpush3.bf16.msra.mxu0 %v9478_v15  ;;  %v1187_v15 = vld [vmem:[%s9907_s30 + $0x2a] sm:$0xff] }
 0x15f   : > { %8305 = vmatprep.subr.bf16.mxu0 %v9479_v25  ;;  %v1248_v21 = vpack.c.bf16 %v1187_v15, %v1186_v13  ;;  %v9575_v13 = vld [vmem:[#allocation5 + $0xf0] sm:$0xff]   ;;  %v1200_v15 = vld [vmem:[%s9907_s30 + $0x92] sm:$0xff] }
 0x160   : > { %7958 = vmatmul.mubr.bf16.gmra.mrb[48].mxu1 %v372_v26  ;;  %v2759_v26 = vld [vmem:[%s9907_s30 + $0x12c] sm:$0xff] }
 0x161   : > { %8242 = vmatmul.mubr.bf16.gmra.mrb[12].mxu0 %v10186_v27  ;;  %7961 = vmatprep.mubr.bf16.mxu1 %v373_v29  ;;  %v1190_v29 = vld [vmem:[%s9907_s30 + $0x42] sm:$0xff] }
 0x162   : > { %8245 = vmatprep.mubr.bf16.mxu0 %v10188_v30  ;;  %8306 = vmatpush3.bf16.msra.mxu0 %v9479_v25  ;;  %v2758_v25 = vld [vmem:[%s9907_s30 + $0x124] sm:$0xff] }
 0x163   : > { %8307 = vmatprep.subr.bf16.mxu0 %v9480_v31 }
 0x166   : > { %8308 = vmatpush3.bf16.msra.mxu0 %v9480_v31  ;;  %v1191_v31 = vld [vmem:[%s9907_s30 + $0x4a] sm:$0xff] }
 0x167   : > { %8373 = vmatprep.subr.bf16.mxu0 %v10200_v40  ;;  %v1250_v36 = vpack.c.bf16 %v1191_v31, %v1190_v29  ;;  %v10302_v29 = vld [vmem:[#allocation5 + $0x40] sm:$0xff]   ;;  %v1255_v31 = vpack.c.bf16 %v1201_v16, %v1200_v15  ;;  %v1214_v16 = vld [vmem:[%s9907_s30 + $0x102] sm:$0xff] }
 0x168   : > { %7962 = vmatmul.mubr.bf16.gmra.mrb[52].mxu1 %v374_v41  ;;  %v1193_v41 = vld [vmem:[%s9907_s30 + $0x5a] sm:$0xff]  ;;  %v2783_v15 = vld [vmem:[%s9907_s30 + $0x1ec] sm:$0xff] }
 0x169   : > { %8246 = vmatmul.mubr.bf16.gmra.mrb[16].mxu0 %v10202_v42  ;;  %7965 = vmatprep.mubr.bf16.mxu1 %v375_v43  ;;  %v2762_v43 = vld [vmem:[%s9907_s30 + $0x144] sm:$0xff]  ;;  %v1251_v52 = vpack.c.bf16 %v1193_v41, %v1192_v39  ;;  %v2775_v39 = vld [vmem:[%s9907_s30 + $0x1ac] sm:$0xff] }
 0x16a   : > { %8249 = vmatprep.mubr.bf16.mxu0 %v10204_v44  ;;  %v10274_v53 = vpack.c.bf16 %v2763_v45, %v2762_v43  ;;  %v1206_v41 = vld [vmem:[%s9907_s30 + $0xc2] sm:$0xff]  ;;  %v1207_v43 = vld [vmem:[%s9907_s30 + $0xca] sm:$0xff]  ;;  %v2776_v45 = vld [vmem:[%s9907_s30 + $0x1b4] sm:$0xff] }
 0x170   : > { %7966 = vmatmul.mubr.bf16.gmra.mrb[56].mxu1 %v376_v54  ;;  %v1252_v54 = vpack.c.bf16 %v1195_v28, %v1194_v46  ;;  %v2777_v46 = vld [vmem:[%s9907_s30 + $0x1bc] sm:$0xff] }
 0x171   : > { %8250 = vmatmul.mubr.bf16.gmra.mrb[20].mxu0 %v10217_v56  ;;  %7969 = vmatprep.mubr.bf16.mxu1 %v377_v57  ;;  %v10276_v57 = vpack.c.bf16 %v2765_v49, %v2764_v47  ;;  %v1258_v49 = vpack.c.bf16 %v1207_v43, %v1206_v41 }
 0x172   : > { %8253 = vmatprep.mubr.bf16.mxu0 %v10219_v58 }
 0x178   : > { %7970 = vmatmul.mubr.bf16.gmra.mrb[60].mxu1 %v378_v5  ;;  %v2769_v5 = vld [vmem:[%s9907_s30 + $0x17c] sm:$0xff] }
 0x179   : > { %8254 = vmatmul.mubr.bf16.gmra.mrb[24].mxu0 %v10231_v6  ;;  %7989 = vmatprep.mubr.bf16.mxu1 %v1246_v7  ;;  %v9574_v7 = vld [vmem:[#allocation5 + $0xe8] sm:$0xff]   ;;  %v10290_v11 = vpack.c.bf16 %v2769_v5, %v2768_v4  ;;  %v1260_v5 = vpack.c.bf16 %v1211_v63, %v1210_v62 }
 0x17a   : > { %8257 = vmatprep.mubr.bf16.mxu0 %v10233_v8  ;;  %v1224_v62 = vld [vmem:[%s9907_s30 + $0x152] sm:$0xff]  ;;  %v1225_v63 = vld [vmem:[%s9907_s30 + $0x15a] sm:$0xff] }
 0x180   : > { %7990 = vmatmul.mubr.bf16.vlgmr.msra.gmra.mrb[0].mxu1 %v1247_v18  ;;  %v2771_v18 = vld [vmem:[%s9907_s30 + $0x18c] sm:$0xff] }
 0x181   : > { %8258 = vmatmul.mubr.bf16.gmra.mrb[28].mxu0 %v10245_v19  ;;  %8757 = vmatpush3.bf16.msra.mxu1 %v10102_v55  ;;  %v10260_v55 = vpack.c.bf16 %v2759_v26, %v2758_v25  ;;  %v2773_v25 = vld [vmem:[%s9907_s30 + $0x19c] sm:$0xff]  ;;  %v9576_v26 = vld [vmem:[#allocation5 + $0xf8] sm:$0xff]   ;;  %v10304_v32 = vpack.c.bf16 %v2771_v18, %v2770_v17 }
 0x182   : > { %7993 = vmatprep.mubr.bf16.mxu1 %v1248_v21  ;;  %8261 = vmatprep.mubr.bf16.mxu0 %v10247_v22  ;;  %v1202_v21 = vld [vmem:[%s9907_s30 + $0xa2] sm:$0xff]  ;;  %v1215_v17 = vld [vmem:[%s9907_s30 + $0x10a] sm:$0xff]  ;;  %v2784_v18 = vld [vmem:[%s9907_s30 + $0x1f4] sm:$0xff] }
 0x183   : > { %8750 = vmatprep.subr.bf16.mxu1 %v9570_v34  ;;  %v1256_v33 = vpack.c.bf16 %v1203_v23, %v1202_v21  ;;  %v2785_v21 = vld [vmem:[%s9907_s30 + $0x1fc] sm:$0xff] }
 0x185   : > { %8758 = vmatpush3.bf16.msra.mxu1 %v9570_v34  ;;  %v10306_v34 = vpack.c.bf16 %v2773_v25, %v2772_v24  ;;  %v1262_v25 = vpack.c.bf16 %v1215_v17, %v1214_v16  ;;  %v1233_v17 = vld [vmem:[%s9907_s30 + $0x19a] sm:$0xff] }
 0x186   : > { %8751 = vmatprep.subr.bf16.mxu1 %v9571_v38 }
 0x188   : > { %7994 = vmatmul.mubr.bf16.gmra.mrb[4].mxu1 %v1249_v35  ;;  %v1204_v35 = vld [vmem:[%s9907_s30 + $0xb2] sm:$0xff] }
 0x189   : > { %8262 = vmatmul.mubr.bf16.gmra.mrb[32].mxu0 %v10260_v55  ;;  %7997 = vmatprep.mubr.bf16.mxu1 %v1250_v36  ;;  %v1205_v36 = vld [vmem:[%s9907_s30 + $0xba] sm:$0xff] }
 0x18a   : > { %8265 = vmatprep.mubr.bf16.mxu0 %v10262_v37  ;;  %8759 = vmatpush3.bf16.msra.mxu1 %v9571_v38  ;;  %v2774_v38 = vld [vmem:[%s9907_s30 + $0x1a4] sm:$0xff]  ;;  %v1257_v28 = vpack.c.bf16 %v1205_v36, %v1204_v35  ;;  %v2787_v36 = vld [vmem:[%s9907_s30 + $0x20c] sm:$0xff] }
 0x18b   : > { %8752 = vmatprep.subr.bf16.mxu1 %v9572_v51  ;;  %v10319_v47 = vpack.c.bf16 %v2775_v39, %v2774_v38  ;;  %v2786_v35 = vld [vmem:[%s9907_s30 + $0x204] sm:$0xff] }
 0x18c   : > { %v1218_v38 = vld [vmem:[%s9907_s30 + $0x122] sm:$0xff]  ;;  %v1219_v39 = vld [vmem:[%s9907_s30 + $0x12a] sm:$0xff]  ;;  %v10359_v43 = vpack.c.bf16 %v2787_v36, %v2786_v35 }
 0x18d   : > { %v1238_v35 = vld [vmem:[%s9907_s30 + $0x1c2] sm:$0xff]  ;;  %v1239_v36 = vld [vmem:[%s9907_s30 + $0x1ca] sm:$0xff] }
 0x18e   : > { %8760 = vmatpush3.bf16.msra.mxu1 %v9572_v51  ;;  %v10321_v51 = vpack.c.bf16 %v2777_v46, %v2776_v45  ;;  %v1264_v45 = vpack.c.bf16 %v1219_v39, %v1218_v38  ;;  %v1220_v46 = vld [vmem:[%s9907_s30 + $0x132] sm:$0xff] }
 0x18f   : > { %8753 = vmatprep.subr.bf16.mxu1 %v9573_v59  ;;  %v10416_v38 = vld [vmem:[#allocation5 + $0x200] sm:$0xff]  }
 0x190   : > { %7998 = vmatmul.mubr.bf16.gmra.mrb[8].mxu1 %v1251_v52  ;;  %v1208_v52 = vld [vmem:[%s9907_s30 + $0xd2] sm:$0xff] }
 0x191   : > { %8266 = vmatmul.mubr.bf16.gmra.mrb[36].mxu0 %v10274_v53  ;;  %8001 = vmatprep.mubr.bf16.mxu1 %v1252_v54  ;;  %v1209_v54 = vld [vmem:[%s9907_s30 + $0xda] sm:$0xff] }
 0x192   : > { %8269 = vmatprep.mubr.bf16.mxu0 %v10276_v57  ;;  %8761 = vmatpush3.bf16.msra.mxu1 %v9573_v59  ;;  %v2778_v59 = vld [vmem:[%s9907_s30 + $0x1c4] sm:$0xff]  ;;  %v1259_v3 = vpack.c.bf16 %v1209_v54, %v1208_v52 }
 0x193   : > { %8754 = vmatprep.subr.bf16.mxu1 %v9574_v7  ;;  %v10333_v4 = vpack.c.bf16 %v2779_v61, %v2778_v59  ;;  %v1223_v52 = vld [vmem:[%s9907_s30 + $0x14a] sm:$0xff]  ;;  %v9482_v61 = vld [vmem:[#allocation5 + $0x1c8] sm:$0xff]  }
 0x196   : > { %8762 = vmatpush3.bf16.msra.mxu1 %v9574_v7  ;;  %v10335_v7 = vpack.c.bf16 %v2781_v2, %v2780_v1  ;;  %v1227_v1 = vld [vmem:[%s9907_s30 + $0x16a] sm:$0xff] }
 0x197   : > { %8755 = vmatprep.subr.bf16.mxu1 %v9575_v13  ;;  %v9483_v2 = vld [vmem:[#allocation5 + $0x1d0] sm:$0xff]  }
 0x198   : > { %8002 = vmatmul.mubr.bf16.gmra.mrb[12].mxu1 %v1253_v9  ;;  %v1212_v9 = vld [vmem:[%s9907_s30 + $0xf2] sm:$0xff] }
 0x199   : > { %8270 = vmatmul.mubr.bf16.gmra.mrb[40].mxu0 %v10288_v10  ;;  %8005 = vmatprep.mubr.bf16.mxu1 %v1254_v60  ;;  %v1213_v60 = vld [vmem:[%s9907_s30 + $0xfa] sm:$0xff] }
 0x19a   : > { %8273 = vmatprep.mubr.bf16.mxu0 %v10290_v11  ;;  %8763 = vmatpush3.bf16.msra.mxu1 %v9575_v13  ;;  %v2782_v13 = vld [vmem:[%s9907_s30 + $0x1e4] sm:$0xff]  ;;  %v1261_v23 = vpack.c.bf16 %v1213_v60, %v1212_v9 }
 0x19b   : > { %8756 = vmatprep.subr.bf16.mxu1 %v9576_v26  ;;  %v10347_v24 = vpack.c.bf16 %v2783_v15, %v2782_v13  ;;  %v1230_v9 = vld [vmem:[%s9907_s30 + $0x182] sm:$0xff]  ;;  %v1231_v60 = vld [vmem:[%s9907_s30 + $0x18a] sm:$0xff] }
 0x19c   : > { %v9486_v13 = vld [vmem:[#allocation5 + $0x1e0] sm:$0xff]   ;;  %v10394_v16 = vpack.c.bf16 %v1231_v60, %v1230_v9 }
 0x19d   : > { %v9501_v60 = vld [vmem:[#allocation5 + $0x20] sm:$0xff]  }
 0x19e   : > { %8764 = vmatpush3.bf16.msra.mxu1 %v9576_v26  ;;  %v10349_v26 = vpack.c.bf16 %v2785_v21, %v2784_v18  ;;  %v1234_v18 = vld [vmem:[%s9907_s30 + $0x1a2] sm:$0xff]  ;;  %v1235_v21 = vld [vmem:[%s9907_s30 + $0x1aa] sm:$0xff] }
 0x19f   : > { %8533 = vmatprep.subr.bf16.mxu1 %v10302_v29 }
 0x1a0   : > { %8006 = vmatmul.mubr.bf16.gmra.mrb[16].mxu1 %v1255_v31  ;;  %v1216_v31 = vld [vmem:[%s9907_s30 + $0x112] sm:$0xff] }
 0x1a1   : > { %8274 = vmatmul.mubr.bf16.gmra.mrb[44].mxu0 %v10304_v32  ;;  %8009 = vmatprep.mubr.bf16.mxu1 %v1256_v33  ;;  %v1217_v33 = vld [vmem:[%s9907_s30 + $0x11a] sm:$0xff] }
 0x1a2   : > { %8277 = vmatprep.mubr.bf16.mxu0 %v10306_v34  ;;  %v1263_v41 = vpack.c.bf16 %v1217_v33, %v1216_v31  ;;  %v10406_v31 = vpack.c.bf16 %v1235_v21, %v1234_v18  ;;  %v1237_v33 = vld [vmem:[%s9907_s30 + $0x1ba] sm:$0xff] }
 0x1a3   : > { %v9507_v21 = vld [vmem:[#allocation5 + $0x208] sm:$0xff]  }
 0x1a8   : > { %8010 = vmatmul.mubr.bf16.gmra.mrb[20].mxu1 %v1257_v28  ;;  %v1221_v28 = vld [vmem:[%s9907_s30 + $0x13a] sm:$0xff] }
 0x1a9   : > { %8278 = vmatmul.mubr.bf16.gmra.mrb[48].mxu0 %v10319_v47  ;;  %8013 = vmatprep.mubr.bf16.mxu1 %v1258_v49  ;;  %v1222_v49 = vld [vmem:[%s9907_s30 + $0x142] sm:$0xff]  ;;  %v10367_v54 = vpack.c.bf16 %v1221_v28, %v1220_v46  ;;  %v1243_v46 = vld [vmem:[%s9907_s30 + $0x1ea] sm:$0xff] }
 0x1aa   : > { %8281 = vmatprep.mubr.bf16.mxu0 %v10321_v51  ;;  %v10369_v59 = vpack.c.bf16 %v1223_v52, %v1222_v49  ;;  %v1244_v52 = vld [vmem:[%s9907_s30 + $0x1f2] sm:$0xff] }
 0x1b0   : > { %8014 = vmatmul.mubr.bf16.gmra.mrb[24].mxu1 %v1259_v3  ;;  %v10380_v3 = vpack.c.bf16 %v1225_v63, %v1224_v62  ;;  %v5339_v63 = vld [vmem:[%s9907_s30 + $0x239] sm:$0xff] }
 0x1b1   : > { %8282 = vmatmul.mubr.bf16.gmra.mrb[52].mxu0 %v10333_v4  ;;  %8017 = vmatprep.mubr.bf16.mxu1 %v1260_v5 }
 0x1b2   : > { %8285 = vmatprep.mubr.bf16.mxu0 %v10335_v7 }
 0x1b8   : > { %8018 = vmatmul.mubr.bf16.gmra.mrb[28].mxu1 %v1261_v23  ;;  %v9493_v23 = vld [vmem:[#allocation5 + $0x1f0] sm:$0xff]  }
 0x1b9   : > { %8286 = vmatmul.mubr.bf16.gmra.mrb[56].mxu0 %v10347_v24  ;;  %8021 = vmatprep.mubr.bf16.mxu1 %v1262_v25 }
 0x1ba   : > { %8289 = vmatprep.mubr.bf16.mxu0 %v10349_v26 }
 0x1c0   : > { %8022 = vmatmul.mubr.bf16.gmra.mrb[32].mxu1 %v1263_v41  ;;  %v10418_v41 = vpack.c.bf16 %v1239_v36, %v1238_v35  ;;  %v9505_v36 = vld [vmem:[#allocation5 + $0x38] sm:$0xff]  }
 0x1c1   : > { %8290 = vmatmul.mubr.bf16.gmra.mrb[60].mxu0 %v10359_v43  ;;  %8025 = vmatprep.mubr.bf16.mxu1 %v1264_v45  ;;  %v1242_v45 = vld [vmem:[%s9907_s30 + $0x1e2] sm:$0xff] }
 0x1c2   : > { %8309 = vmatprep.mubr.bf16.mxu0 %v10143_v48  ;;  %v1226_v48 = vld [vmem:[%s9907_s30 + $0x162] sm:$0xff]  ;;  %v1276_v49 = vpack.c.bf16 %v1243_v46, %v1242_v45  ;;  %v3762_v45 = vld [vmem:[%s9907_s30 + $0x75] sm:$0xff] }
 0x1c3   : > { %v10382_v5 = vpack.c.bf16 %v1227_v1, %v1226_v48  ;;  %v9499_v48 = vld [vmem:[#allocation5 + $0x10] sm:$0xff]  }
 0x1c4   : > { %v3301_v1 = vld [vmem:[%s9907_s30 + $0x21c] sm:$0xff] }
 0x1c5   : > { %v3763_v46 = vld [vmem:[%s9907_s30 + $0x7d] sm:$0xff] }
 0x1c8   : > { %8026 = vmatmul.mubr.bf16.gmra.mrb[36].mxu1 %v10367_v54 }
 0x1c9   : > { %8310 = vmatmul.mubr.bf16.vlgmr.msra.gmra.mrb[0].mxu0 %v10145_v50  ;;  %8029 = vmatprep.mubr.bf16.mxu1 %v10369_v59  ;;  %v9484_v50 = vld [vmem:[#allocation5 + $0x1d8] sm:$0xff]  }
 0x1ca   : > { %8374 = vmatpush3.bf16.msra.mxu0 %v10200_v40  ;;  %8313 = vmatprep.mubr.bf16.mxu0 %v10158_v0  ;;  %v1228_v0 = vld [vmem:[%s9907_s30 + $0x172] sm:$0xff]  ;;  %v1229_v40 = vld [vmem:[%s9907_s30 + $0x17a] sm:$0xff] }
 0x1cb   : > { %8375 = vmatprep.subr.bf16.mxu0 %v9482_v61  ;;  %v10392_v15 = vpack.c.bf16 %v1229_v40, %v1228_v0  ;;  %v5305_v0 = vld [vmem:[%s9907_s30 + $0x208] sm:$0xff] }
 0x1cc   : > { %v9500_v40 = vld [vmem:[#allocation5 + $0x18] sm:$0xff]  }
 0x1ce   : > { %8376 = vmatpush3.bf16.msra.mxu0 %v9482_v61  ;;  %v1245_v61 = vld [vmem:[%s9907_s30 + $0x1fa] sm:$0xff] }
 0x1cf   : > { %8377 = vmatprep.subr.bf16.mxu0 %v9483_v2  ;;  %v1277_v62 = vpack.c.bf16 %v1245_v61, %v1244_v52  ;;  %v3765_v52 = vld [vmem:[%s9907_s30 + $0x8d] sm:$0xff] }
 0x1d0   : > { %8030 = vmatmul.mubr.bf16.gmra.mrb[40].mxu1 %v10380_v3 }
 0x1d1   : > { %8314 = vmatmul.mubr.bf16.gmra.mrb[4].mxu0 %v10160_v20  ;;  %8033 = vmatprep.mubr.bf16.mxu1 %v10382_v5  ;;  %v9489_v20 = vld [vmem:[#allocation5 + $0x1e8] sm:$0xff]  }
 0x1d2   : > { %8317 = vmatprep.mubr.bf16.mxu0 %v10172_v12  ;;  %8378 = vmatpush3.bf16.msra.mxu0 %v9483_v2  ;;  %v1232_v12 = vld [vmem:[%s9907_s30 + $0x192] sm:$0xff]  ;;  %v3752_v2 = vld [vmem:[%s9907_s30 + $0x25] sm:$0xff] }
 0x1d3   : > { %8379 = vmatprep.subr.bf16.mxu0 %v9484_v50  ;;  %v10404_v25 = vpack.c.bf16 %v1233_v17, %v1232_v12  ;;  %v9503_v17 = vld [vmem:[#allocation5 + $0x28] sm:$0xff]  }
 0x1d6   : > { %8380 = vmatpush3.bf16.msra.mxu0 %v9484_v50  ;;  %v5304_v50 = vld [vmem:[%s9907_s30 + $0x200] sm:$0xff] }
 0x1d7   : > { %8381 = vmatprep.subr.bf16.mxu0 %v9486_v13 }
 0x1d8   : > { %8034 = vmatmul.mubr.bf16.gmra.mrb[44].mxu1 %v10392_v15 }
 0x1d9   : > { %8318 = vmatmul.mubr.bf16.gmra.mrb[8].mxu0 %v10174_v14  ;;  %8037 = vmatprep.mubr.bf16.mxu1 %v10394_v16  ;;  %v9497_v14 = vld [vmem:[#allocation5 + $0x1f8] sm:$0xff]  }
 0x1da   : > { %8321 = vmatprep.mubr.bf16.mxu0 %v10186_v27  ;;  %8382 = vmatpush3.bf16.msra.mxu0 %v9486_v13  ;;  %v1236_v27 = vld [vmem:[%s9907_s30 + $0x1b2] sm:$0xff] }
 0x1db   : > { %8383 = vmatprep.subr.bf16.mxu0 %v9489_v20  ;;  %v1273_v39 = vpack.c.bf16 %v1237_v33, %v1236_v27  ;;  %v3754_v13 = vld [vmem:[%s9907_s30 + $0x35] sm:$0xff]  ;;  %v3761_v27 = vld [vmem:[%s9907_s30 + $0x6d] sm:$0xff] }
 0x1dc   : > { %v9512_v33 = vld [vmem:[#allocation5 + $0x210] sm:$0xff]  }
 0x1de   : > { %8384 = vmatpush3.bf16.msra.mxu0 %v9489_v20  ;;  %v3757_v20 = vld [vmem:[%s9907_s30 + $0x4d] sm:$0xff] }
 0x1df   : > { %8385 = vmatprep.subr.bf16.mxu0 %v9493_v23 }
 0x1e0   : > { %8038 = vmatmul.mubr.bf16.gmra.mrb[48].mxu1 %v10404_v25 }
 0x1e1   : > { %8322 = vmatmul.mubr.bf16.gmra.mrb[12].mxu0 %v10188_v30  ;;  %8041 = vmatprep.mubr.bf16.mxu1 %v10406_v31  ;;  %v1240_v30 = vld [vmem:[%s9907_s30 + $0x1d2] sm:$0xff] }
 0x1e2   : > { %8325 = vmatprep.mubr.bf16.mxu0 %v10202_v42  ;;  %8386 = vmatpush3.bf16.msra.mxu0 %v9493_v23  ;;  %v1241_v42 = vld [vmem:[%s9907_s30 + $0x1da] sm:$0xff] }
 0x1e3   : > { %8387 = vmatprep.subr.bf16.mxu0 %v9497_v14  ;;  %v1275_v28 = vpack.c.bf16 %v1241_v42, %v1240_v30  ;;  %v9504_v23 = vld [vmem:[#allocation5 + $0x30] sm:$0xff]   ;;  %v5307_v30 = vld [vmem:[%s9907_s30 + $0x218] sm:$0xff] }
 0x1e4   : > { %v9506_v42 = vld [vmem:[#allocation5 + $0x80] sm:$0xff]  }
 0x1e6   : > { %8388 = vmatpush3.bf16.msra.mxu0 %v9497_v14  ;;  %v3760_v14 = vld [vmem:[%s9907_s30 + $0x65] sm:$0xff] }
 0x1e7   : > { %8453 = vmatprep.subr.bf16.mxu0 %v10416_v38 }
 0x1e8   : > { %8042 = vmatmul.mubr.bf16.gmra.mrb[52].mxu1 %v1273_v39 }
 0x1e9   : > { %8326 = vmatmul.mubr.bf16.gmra.mrb[16].mxu0 %v10204_v44  ;;  %8045 = vmatprep.mubr.bf16.mxu1 %v10418_v41  ;;  %v9487_v44 = vld [vmem:[#allocation5 + $0x48] sm:$0xff]  }
 0x1ea   : > { %8329 = vmatprep.mubr.bf16.mxu0 %v10217_v56  ;;  %v9488_v56 = vld [vmem:[#allocation5 + $0x50] sm:$0xff]  }
 0x1f0   : > { %8046 = vmatmul.mubr.bf16.gmra.mrb[56].mxu1 %v1275_v28 }
 0x1f1   : > { %8330 = vmatmul.mubr.bf16.gmra.mrb[20].mxu0 %v10219_v58  ;;  %8049 = vmatprep.mubr.bf16.mxu1 %v1276_v49  ;;  %v9490_v58 = vld [vmem:[#allocation5 + $0x58] sm:$0xff]  }
 0x1f2   : > { %8333 = vmatprep.mubr.bf16.mxu0 %v10231_v6  ;;  %v9491_v6 = vld [vmem:[#allocation5 + $0x60] sm:$0xff]  }
 0x1f8   : > { %8050 = vmatmul.mubr.bf16.gmra.mrb[60].mxu1 %v1277_v62 }
 0x1f9   : > { %8334 = vmatmul.mubr.bf16.gmra.mrb[24].mxu0 %v10233_v8  ;;  %8105 = vmatprep.mubr.bf16.mxu1 %v10367_v54  ;;  %v9492_v8 = vld [vmem:[#allocation5 + $0x68] sm:$0xff]  }
 0x1fa   : > { %8337 = vmatprep.mubr.bf16.mxu0 %v10245_v19  ;;  %v9494_v19 = vld [vmem:[#allocation5 + $0x70] sm:$0xff]   ;;  %v9498_v54 = vld [vmem:[#allocation5 + $0x8] sm:$0xff]  }
 0x200   : > { %8106 = vmatmul.mubr.bf16.vlgmr.msra.gmra.mrb[36].mxu1 %v10369_v59 }
 0x201   : > { %8338 = vmatmul.mubr.bf16.gmra.mrb[28].mxu0 %v10247_v22  ;;  %8534 = vmatpush3.bf16.msra.mxu1 %v10302_v29  ;;  %v9495_v22 = vld [vmem:[#allocation5 + $0x78] sm:$0xff]  }
 0x202   : > { %8109 = vmatprep.mubr.bf16.mxu1 %v10380_v3  ;;  %8341 = vmatprep.mubr.bf16.mxu0 %v10260_v55  ;;  %v9496_v55 = vld [vmem:[#allocation5] sm:$0xff]  }
 0x203   : > { %8535 = vmatprep.subr.bf16.mxu1 %v9487_v44  ;;  %v3753_v3 = vld [vmem:[%s9907_s30 + $0x2d] sm:$0xff] }
 0x204   : > { %v3816_v9 = vpack.c.bf16 %v3753_v3, %v3752_v2  ;;  %v9537_v3 = vld [vmem:[#allocation5 + $0x238] sm:$0xff]  }
 0x205   : > { %8536 = vmatpush3.bf16.msra.mxu1 %v9487_v44  ;;  %v5308_v44 = vld [vmem:[%s9907_s30 + $0x220] sm:$0xff] }
 0x206   : > { %8537 = vmatprep.subr.bf16.mxu1 %v9488_v56 }
 0x208   : > { %8110 = vmatmul.mubr.bf16.gmra.mrb[40].mxu1 %v10382_v5 }
 0x209   : > { %8342 = vmatmul.mubr.bf16.gmra.mrb[32].mxu0 %v10262_v37  ;;  %8113 = vmatprep.mubr.bf16.mxu1 %v10392_v15  ;;  %v1758_v37 = vld [vmem:[%s9907_s30 + $0x202] sm:$0xff] }
 0x20a   : > { %8345 = vmatprep.mubr.bf16.mxu0 %v10274_v53  ;;  %8538 = vmatpush3.bf16.msra.mxu1 %v9488_v56  ;;  %v1759_v53 = vld [vmem:[%s9907_s30 + $0x20a] sm:$0xff]  ;;  %v3755_v15 = vld [vmem:[%s9907_s30 + $0x3d] sm:$0xff] }
 0x20b   : > { %8539 = vmatprep.subr.bf16.mxu1 %v9490_v58  ;;  %v3817_v12 = vpack.c.bf16 %v3755_v15, %v3754_v13  ;;  %v5309_v56 = vld [vmem:[%s9907_s30 + $0x228] sm:$0xff] }
 0x20e   : > { %8540 = vmatpush3.bf16.msra.mxu1 %v9490_v58  ;;  %v9522_v58 = vld [vmem:[#allocation5 + $0x220] sm:$0xff]  }
 0x20f   : > { %8541 = vmatprep.subr.bf16.mxu1 %v9491_v6 }
 0x210   : > { %8114 = vmatmul.mubr.bf16.gmra.mrb[44].mxu1 %v10394_v16  ;;  %v3756_v16 = vld [vmem:[%s9907_s30 + $0x45] sm:$0xff] }
 0x211   : > { %8346 = vmatmul.mubr.bf16.gmra.mrb[36].mxu0 %v10276_v57  ;;  %8117 = vmatprep.mubr.bf16.mxu1 %v10404_v25  ;;  %v5332_v57 = vld [vmem:[%s9907_s30 + $0x201] sm:$0xff]  ;;  %v3818_v18 = vpack.c.bf16 %v3757_v20, %v3756_v16  ;;  %v3758_v25 = vld [vmem:[%s9907_s30 + $0x55] sm:$0xff] }
 0x212   : > { %8349 = vmatprep.mubr.bf16.mxu0 %v10288_v10  ;;  %8542 = vmatpush3.bf16.msra.mxu1 %v9491_v6  ;;  %v5333_v10 = vld [vmem:[%s9907_s30 + $0x209] sm:$0xff]  ;;  %v9513_v20 = vld [vmem:[#allocation5 + $0xa8] sm:$0xff]  }
 0x213   : > { %8543 = vmatprep.subr.bf16.mxu1 %v9492_v8  ;;  %v5340_v29 = vpack.c.bf16 %v5333_v10, %v5332_v57  ;;  %v5310_v57 = vld [vmem:[%s9907_s30 + $0x230] sm:$0xff]  ;;  %v5311_v10 = vld [vmem:[%s9907_s30 + $0x238] sm:$0xff] }
 0x216   : > { %8544 = vmatpush3.bf16.msra.mxu1 %v9492_v8  ;;  %v3821_v8 = vpack.c.bf16 %v3763_v46, %v3762_v45  ;;  %v3780_v46 = vld [vmem:[%s9907_s30 + $0x105] sm:$0xff] }
 0x217   : > { %8545 = vmatprep.subr.bf16.mxu1 %v9494_v19 }
 0x218   : > { %8118 = vmatmul.mubr.bf16.gmra.mrb[48].mxu1 %v10406_v31  ;;  %v3759_v31 = vld [vmem:[%s9907_s30 + $0x5d] sm:$0xff] }
 0x219   : > { %8350 = vmatmul.mubr.bf16.gmra.mrb[40].mxu0 %v10290_v11  ;;  %8121 = vmatprep.mubr.bf16.mxu1 %v1273_v39  ;;  %v10460_v11 = vpack.c.bf16 %v1759_v53, %v1758_v37  ;;  %v3819_v35 = vpack.c.bf16 %v3759_v31, %v3758_v25  ;;  %v9517_v39 = vld [vmem:[#allocation5 + $0x218] sm:$0xff]   ;;  %v5314_v37 = vpack.c.bf16 %v5309_v56, %v5308_v44  ;;  %v9527_v53 = vld [vmem:[#allocation5 + $0x228] sm:$0xff]  }
 0x21a   : > { %8353 = vmatprep.mubr.bf16.mxu0 %v10304_v32  ;;  %8546 = vmatpush3.bf16.msra.mxu1 %v9494_v19  ;;  %v5334_v32 = vld [vmem:[%s9907_s30 + $0x211] sm:$0xff]  ;;  %v5590_v44 = vld [vmem:[%s9907_s30 + $0x222] sm:$0xff] }
 0x21b   : > { %8547 = vmatprep.subr.bf16.mxu1 %v9495_v22  ;;  %v3777_v25 = vld [vmem:[%s9907_s30 + $0xed] sm:$0xff] }
 0x21c   : > { %v5591_v56 = vld [vmem:[%s9907_s30 + $0x22a] sm:$0xff] }
 0x21e   : > { %8548 = vmatpush3.bf16.msra.mxu1 %v9495_v22  ;;  %v9508_v22 = vld [vmem:[#allocation5 + $0x88] sm:$0xff]  }
 0x21f   : > { %8557 = vmatprep.subr.bf16.mxu1 %v9496_v55 }
 0x220   : > { %8122 = vmatmul.mubr.bf16.gmra.mrb[52].mxu1 %v10418_v41  ;;  %v5306_v41 = vld [vmem:[%s9907_s30 + $0x210] sm:$0xff] }
 0x221   : > { %8354 = vmatmul.mubr.bf16.gmra.mrb[44].mxu0 %v10306_v34  ;;  %8125 = vmatprep.mubr.bf16.mxu1 %v1275_v28  ;;  %v5335_v34 = vld [vmem:[%s9907_s30 + $0x219] sm:$0xff] }
 0x222   : > { %8357 = vmatprep.mubr.bf16.mxu0 %v10319_v47  ;;  %v5341_v47 = vpack.c.bf16 %v5335_v34, %v5334_v32  ;;  %v3766_v32 = vld [vmem:[%s9907_s30 + $0x95] sm:$0xff]  ;;  %v3767_v34 = vld [vmem:[%s9907_s30 + $0x9d] sm:$0xff] }
 0x228   : > { %8126 = vmatmul.mubr.bf16.gmra.mrb[56].mxu1 %v1276_v49  ;;  %v3764_v49 = vld [vmem:[%s9907_s30 + $0x85] sm:$0xff] }
 0x229   : > { %8358 = vmatmul.mubr.bf16.gmra.mrb[48].mxu0 %v10321_v51  ;;  %8129 = vmatprep.mubr.bf16.mxu1 %v1277_v62  ;;  %v5336_v51 = vld [vmem:[%s9907_s30 + $0x221] sm:$0xff]  ;;  %v5313_v62 = vpack.c.bf16 %v5307_v30, %v5306_v41  ;;  %v9516_v41 = vld [vmem:[#allocation5 + $0xc0] sm:$0xff]  }
 0x22a   : > { %8361 = vmatprep.mubr.bf16.mxu0 %v10333_v4  ;;  %v5337_v4 = vld [vmem:[%s9907_s30 + $0x229] sm:$0xff]  ;;  %v3778_v30 = vld [vmem:[%s9907_s30 + $0xf5] sm:$0xff] }
 0x22b   : > { %v5342_v59 = vpack.c.bf16 %v5337_v4, %v5336_v51  ;;  %v3768_v51 = vld [vmem:[%s9907_s30 + $0xa5] sm:$0xff]  ;;  %v3769_v4 = vld [vmem:[%s9907_s30 + $0xad] sm:$0xff] }
 0x22c   : > { %v3824_v2 = vpack.c.bf16 %v3769_v4, %v3768_v51  ;;  %v3784_v4 = vld [vmem:[%s9907_s30 + $0x125] sm:$0xff] }
 0x230   : > { %8130 = vmatmul.mubr.bf16.gmra.mrb[60].mxu1 %v10460_v11 }
 0x231   : > { %8362 = vmatmul.mubr.bf16.gmra.mrb[52].mxu0 %v10335_v7  ;;  %8549 = vmatprep.mubr.bf16.mxu1 %v5340_v29  ;;  %v5338_v7 = vld [vmem:[%s9907_s30 + $0x231] sm:$0xff]  ;;  %v9509_v29 = vld [vmem:[#allocation5 + $0x90] sm:$0xff]  }
 0x232   : > { %8365 = vmatprep.mubr.bf16.mxu0 %v10347_v24  ;;  %v3300_v24 = vld [vmem:[%s9907_s30 + $0x214] sm:$0xff]  ;;  %v5343_v5 = vpack.c.bf16 %v5339_v63, %v5338_v7  ;;  %v9532_v7 = vld [vmem:[#allocation5 + $0x230] sm:$0xff]  }
 0x238   : > { %8550 = vmatmul.mubr.bf16.vlgmr.msra.gmra.mrb[64].mxu1 %v5341_v47 }
 0x239   : > { %8366 = vmatmul.mubr.bf16.gmra.mrb[56].mxu0 %v10349_v26  ;;  %8558 = vmatpush3.bf16.msra.mxu1 %v9496_v55  ;;  %v10479_v26 = vpack.c.bf16 %v3301_v1, %v3300_v24  ;;  %v3822_v55 = vpack.c.bf16 %v3765_v52, %v3764_v49  ;;  %v9510_v1 = vld [vmem:[#allocation5 + $0x98] sm:$0xff]  }
 0x23a   : > { %8559 = vmatprep.subr.bf16.mxu1 %v9498_v54  ;;  %8369 = vmatprep.mubr.bf16.mxu0 %v10359_v43  ;;  %v5312_v43 = vpack.c.bf16 %v5305_v0, %v5304_v50  ;;  %v3770_v50 = vld [vmem:[%s9907_s30 + $0xb5] sm:$0xff]  ;;  %v3771_v0 = vld [vmem:[%s9907_s30 + $0xbd] sm:$0xff]  ;;  %v3781_v49 = vld [vmem:[%s9907_s30 + $0x10d] sm:$0xff] }
 0x23b   : > { %8553 = vmatprep.mubr.bf16.mxu1 %v5342_v59  ;;  %v5315_v59 = vpack.c.bf16 %v5311_v10, %v5310_v57  ;;  %v3825_v15 = vpack.c.bf16 %v3771_v0, %v3770_v50  ;;  %v5592_v57 = vld [vmem:[%s9907_s30 + $0x232] sm:$0xff]  ;;  %v5593_v10 = vld [vmem:[%s9907_s30 + $0x23a] sm:$0xff] }
 0x23c   : > { %v9521_v0 = vld [vmem:[#allocation5 + $0xe0] sm:$0xff]  }
 0x23d   : > { %8560 = vmatpush3.bf16.msra.mxu1 %v9498_v54 }
 0x23e   : > { %8561 = vmatprep.subr.bf16.mxu1 %v9499_v48 }
 0x240   : > { %8554 = vmatmul.mubr.bf16.gmra.mrb[68].mxu1 %v5343_v5  ;;  %v9511_v5 = vld [vmem:[#allocation5 + $0xa0] sm:$0xff]  }
 0x241   : > { %8370 = vmatmul.mubr.bf16.gmra.mrb[60].mxu0 %v10479_v26  ;;  %8562 = vmatpush3.bf16.msra.mxu1 %v9499_v48  ;;  %v3823_v48 = vpack.c.bf16 %v3767_v34, %v3766_v32  ;;  %v3782_v32 = vld [vmem:[%s9907_s30 + $0x115] sm:$0xff]  ;;  %v3783_v34 = vld [vmem:[%s9907_s30 + $0x11d] sm:$0xff] }
 0x242   : > { %8563 = vmatprep.subr.bf16.mxu1 %v9500_v40  ;;  %8389 = vmatprep.mubr.bf16.mxu0 %v3816_v9  ;;  %v3772_v9 = vld [vmem:[%s9907_s30 + $0xc5] sm:$0xff] }
 0x243   : > { %8573 = vmatprep.mubr.bf16.mxu1 %v5312_v43  ;;  %v3773_v43 = vld [vmem:[%s9907_s30 + $0xcd] sm:$0xff] }
 0x245   : > { %8564 = vmatpush3.bf16.msra.mxu1 %v9500_v40 }
 0x246   : > { %8565 = vmatprep.subr.bf16.mxu1 %v9501_v60 }
 0x249   : > { %8390 = vmatmul.mubr.bf16.vlgmr.msra.gmra.mrb[0].mxu0 %v3817_v12  ;;  %8566 = vmatpush3.bf16.msra.mxu1 %v9501_v60  ;;  %v3826_v12 = vpack.c.bf16 %v3773_v43, %v3772_v9  ;;  %v3786_v9 = vld [vmem:[%s9907_s30 + $0x135] sm:$0xff]  ;;  %v3787_v43 = vld [vmem:[%s9907_s30 + $0x13d] sm:$0xff] }
 0x24a   : > { %8454 = vmatpush3.bf16.msra.mxu0 %v10416_v38  ;;  %8567 = vmatprep.subr.bf16.mxu1 %v9503_v17  ;;  %v3820_v38 = vpack.c.bf16 %v3761_v27, %v3760_v14 }
 0x24b   : > { %8393 = vmatprep.mubr.bf16.mxu0 %v3818_v18  ;;  %8455 = vmatprep.subr.bf16.mxu0 %v9507_v21  ;;  %v3775_v18 = vld [vmem:[%s9907_s30 + $0xdd] sm:$0xff] }
 0x24d   : > { %8568 = vmatpush3.bf16.msra.mxu1 %v9503_v17  ;;  %v3774_v17 = vld [vmem:[%s9907_s30 + $0xd5] sm:$0xff] }
 0x24e   : > { %8569 = vmatprep.subr.bf16.mxu1 %v9504_v23  ;;  %8456 = vmatpush3.bf16.msra.mxu0 %v9507_v21  ;;  %v3827_v27 = vpack.c.bf16 %v3775_v18, %v3774_v17  ;;  %v3833_v18 = vpack.c.bf16 %v3787_v43, %v3786_v9  ;;  %v9529_v9 = vld [vmem:[#allocation5 + $0x110] sm:$0xff]   ;;  %v3798_v43 = vld [vmem:[%s9907_s30 + $0x195] sm:$0xff] }
 0x24f   : > { %8457 = vmatprep.subr.bf16.mxu0 %v9512_v33 }
 0x251   : > { %8394 = vmatmul.mubr.bf16.gmra.mrb[4].mxu0 %v3819_v35  ;;  %8570 = vmatpush3.bf16.msra.mxu1 %v9504_v23  ;;  %v3776_v23 = vld [vmem:[%s9907_s30 + $0xe5] sm:$0xff] }
 0x252   : > { %8571 = vmatprep.subr.bf16.mxu1 %v9505_v36  ;;  %8397 = vmatprep.mubr.bf16.mxu0 %v3820_v38  ;;  %v9515_v35 = vld [vmem:[#allocation5 + $0xb8] sm:$0xff]  }
 0x253   : > { %v10495_v28 = vpop.f32.mrb[0].mxu1  ;;  %8458 = vmatpush3.bf16.msra.mxu0 %v9512_v33  ;;  %v5588_v38 = vld [vmem:[%s9907_s30 + $0x212] sm:$0xff] }
 0x254   : > { %v10499_v61 = vpop.f32.mrb[1].mxu1  ;;  %8459 = vmatprep.subr.bf16.mxu0 %v9517_v39 }
 0x255   : > { %8572 = vmatpush3.bf16.msra.mxu1 %v9505_v36  ;;  %v10503_v6 = vpop.f32.mrb[2].mxu1  ;;  %v3828_v36 = vpack.c.bf16 %v3777_v25, %v3776_v23  ;;  %v9523_v25 = vld [vmem:[#allocation5 + $0xe8] sm:$0xff]  }
 0x256   : > { %v10505_v19 = vpop.f32.mrb[3].mxu1  ;;  %8581 = vmatprep.subr.bf16.mxu1 %v9506_v42 }
 0x257   : > { %8460 = vmatpush3.bf16.msra.mxu0 %v9517_v39  ;;  %v5589_v39 = vld [vmem:[%s9907_s30 + $0x21a] sm:$0xff] }
 0x258   : > { %8574 = vmatmul.mubr.bf16.vlgmr.msra.gmra.mrb[64].mxu1 %v5313_v62  ;;  %8461 = vmatprep.subr.bf16.mxu0 %v9522_v58  ;;  %v5595_v62 = vpack.c.bf16 %v5589_v39, %v5588_v38  ;;  %v3791_v38 = vld [vmem:[%s9907_s30 + $0x15d] sm:$0xff] }
 0x259   : > { %8398 = vmatmul.mubr.bf16.gmra.mrb[8].mxu0 %v3821_v8  ;;  %8582 = vmatpush3.bf16.msra.mxu1 %v9506_v42  ;;  %v3779_v42 = vld [vmem:[%s9907_s30 + $0xfd] sm:$0xff] }
 0x25a   : > { %8583 = vmatprep.subr.bf16.mxu1 %v9508_v22  ;;  %8401 = vmatprep.mubr.bf16.mxu0 %v3822_v55  ;;  %v3829_v8 = vpack.c.bf16 %v3779_v42, %v3778_v30  ;;  %v9518_v55 = vld [vmem:[#allocation5 + $0xc8] sm:$0xff]   ;;  %v3793_v30 = vld [vmem:[%s9907_s30 + $0x16d] sm:$0xff] }
 0x25b   : > { %v10511_v47 = vpop.f32.mrb[4].mxu1  ;;  %8577 = vmatprep.mubr.bf16.mxu1 %v5314_v37  ;;  %8462 = vmatpush3.bf16.msra.mxu0 %v9522_v58  ;;  %v3830_v37 = vpack.c.bf16 %v3781_v49, %v3780_v46 }
 0x25c   : > { %v10515_v54 = vpop.f32.mrb[5].mxu1  ;;  %8463 = vmatprep.subr.bf16.mxu0 %v9527_v53 }
 0x25d   : > { %8584 = vmatpush3.bf16.msra.mxu1 %v9508_v22  ;;  %v10517_v63 = vpop.f32.mrb[6].mxu1 }
 0x25e   : > { %v10519_v24 = vpop.f32.mrb[7].mxu1  ;;  %8585 = vmatprep.subr.bf16.mxu1 %v9509_v29 }
 0x25f   : > { %8464 = vmatpush3.bf16.msra.mxu0 %v9527_v53  ;;  %v10562_v53 = vpack.c.bf16 %v5591_v56, %v5590_v44  ;;  %v9525_v44 = vld [vmem:[#allocation5 + $0xf8] sm:$0xff]  }
 0x260   : > { %8578 = vmatmul.mubr.bf16.gmra.mrb[68].mxu1 %v5315_v59  ;;  %8465 = vmatprep.subr.bf16.mxu0 %v9532_v7  ;;  %v3785_v59 = vld [vmem:[%s9907_s30 + $0x12d] sm:$0xff] }
 0x261   : > { %8402 = vmatmul.mubr.bf16.gmra.mrb[12].mxu0 %v3823_v48  ;;  %8586 = vmatpush3.bf16.msra.mxu1 %v9509_v29  ;;  %v9519_v29 = vld [vmem:[#allocation5 + $0xd0] sm:$0xff]   ;;  %v10575_v48 = vpack.c.bf16 %v5593_v10, %v5592_v57  ;;  %v3832_v50 = vpack.c.bf16 %v3785_v59, %v3784_v4 }
 0x262   : > { %8587 = vmatprep.subr.bf16.mxu1 %v9510_v1  ;;  %8405 = vmatprep.mubr.bf16.mxu0 %v3824_v2  ;;  %v3831_v2 = vpack.c.bf16 %v3783_v34, %v3782_v32  ;;  %v3796_v10 = vld [vmem:[%s9907_s30 + $0x185] sm:$0xff] }
 0x263   : > { %v10523_v40 = vpop.f32.mrb[8].mxu1  ;;  %8597 = vmatprep.mubr.bf16.mxu1 %v10460_v11  ;;  %8466 = vmatpush3.bf16.msra.mxu0 %v9532_v7  ;;  %v9514_v11 = vld [vmem:[#allocation5 + $0xb0] sm:$0xff]  }
 0x264   : > { %v10528_v60 = vpop.f32.mrb[9].mxu1  ;;  %8467 = vmatprep.subr.bf16.mxu0 %v9537_v3 }
 0x265   : > { %8588 = vmatpush3.bf16.msra.mxu1 %v9510_v1  ;;  %v10530_v13 = vpop.f32.mrb[10].mxu1 }
 0x266   : > { %v10532_v16 = vpop.f32.mrb[11].mxu1  ;;  %8589 = vmatprep.subr.bf16.mxu1 %v9511_v5 }
 0x267   : > { %8468 = vmatpush3.bf16.msra.mxu0 %v9537_v3 }
 0x269   : > { %8406 = vmatmul.mubr.bf16.gmra.mrb[16].mxu0 %v3825_v15  ;;  %8590 = vmatpush3.bf16.msra.mxu1 %v9511_v5  ;;  %v9520_v5 = vld [vmem:[#allocation5 + $0xd8] sm:$0xff]  }
 0x26a   : > { %8591 = vmatprep.subr.bf16.mxu1 %v9513_v20  ;;  %8409 = vmatprep.mubr.bf16.mxu0 %v3826_v12  ;;  %v3789_v12 = vld [vmem:[%s9907_s30 + $0x14d] sm:$0xff] }
 0x26b   : > { %v10536_v21 = vpop.f32.mrb[12].mxu1 }
 0x26c   : > { %v10540_v31 = vpop.f32.mrb[13].mxu1 }
 0x26d   : > { %8592 = vmatpush3.bf16.msra.mxu1 %v9513_v20  ;;  %v10542_v14 = vpop.f32.mrb[14].mxu1  ;;  %v3788_v20 = vld [vmem:[%s9907_s30 + $0x145] sm:$0xff] }
 0x26e   : > { %v10544_v33 = vpop.f32.mrb[15].mxu1  ;;  %8593 = vmatprep.subr.bf16.mxu1 %v9514_v11 }
 0x271   : > { %8410 = vmatmul.mubr.bf16.gmra.mrb[20].mxu0 %v3827_v27  ;;  %8594 = vmatpush3.bf16.msra.mxu1 %v9514_v11  ;;  %v3834_v27 = vpack.c.bf16 %v3789_v12, %v3788_v20  ;;  %v3799_v20 = vld [vmem:[%s9907_s30 + $0x19d] sm:$0xff]  ;;  %v3800_v12 = vld [vmem:[%s9907_s30 + $0x1a5] sm:$0xff] }
 0x272   : > { %8595 = vmatprep.subr.bf16.mxu1 %v9515_v35  ;;  %8413 = vmatprep.mubr.bf16.mxu0 %v3828_v36  ;;  %v3790_v36 = vld [vmem:[%s9907_s30 + $0x155] sm:$0xff] }
 0x273   : > { %v10550_v45 = vpop.f32.mrb[16].mxu1  ;;  %v3835_v49 = vpack.c.bf16 %v3791_v38, %v3790_v36  ;;  %v9530_v36 = vld [vmem:[#allocation5 + $0x118] sm:$0xff]  }
 0x274   : > { %v10554_v52 = vpop.f32.mrb[17].mxu1 }
 0x275   : > { %8596 = vmatpush3.bf16.msra.mxu1 %v9515_v35  ;;  %v10558_v58 = vpop.f32.mrb[18].mxu1  ;;  %v9524_v35 = vld [vmem:[#allocation5 + $0xf0] sm:$0xff]  }
 0x276   : > { %v10560_v22 = vpop.f32.mrb[19].mxu1  ;;  %8605 = vmatprep.subr.bf16.mxu1 %v9516_v41 }
 0x278   : > { %8598 = vmatmul.mubr.bf16.vlgmr.msra.gmra.mrb[64].mxu1 %v5595_v62 }
 0x279   : > { %8414 = vmatmul.mubr.bf16.gmra.mrb[24].mxu0 %v3829_v8  ;;  %8606 = vmatpush3.bf16.msra.mxu1 %v9516_v41  ;;  %v3792_v41 = vld [vmem:[%s9907_s30 + $0x165] sm:$0xff]  ;;  %v9526_v8 = vld [vmem:[#allocation5 + $0x100] sm:$0xff]  }
 0x27a   : > { %8607 = vmatprep.subr.bf16.mxu1 %v9518_v55  ;;  %8417 = vmatprep.mubr.bf16.mxu0 %v3830_v37  ;;  %v3836_v56 = vpack.c.bf16 %v3793_v30, %v3792_v41  ;;  %v3795_v37 = vld [vmem:[%s9907_s30 + $0x17d] sm:$0xff] }
 0x27b   : > { %v10568_v51 = vpop.f32.mrb[20].mxu1  ;;  %8601 = vmatprep.mubr.bf16.mxu1 %v10562_v53  ;;  %v9531_v30 = vld [vmem:[#allocation5 + $0x120] sm:$0xff]  }
 0x27c   : > { %v10573_v7 = vpop.f32.mrb[21].mxu1 }
 0x27d   : > { %8608 = vmatpush3.bf16.msra.mxu1 %v9518_v55  ;;  %v10577_v1 = vpop.f32.mrb[22].mxu1  ;;  %v3794_v55 = vld [vmem:[%s9907_s30 + $0x175] sm:$0xff] }
 0x27e   : > { %v10579_v3 = vpop.f32.mrb[23].mxu1  ;;  %8609 = vmatprep.subr.bf16.mxu1 %v9519_v29  ;;  %v3837_v4 = vpack.c.bf16 %v3795_v37, %v3794_v55  ;;  %v9533_v55 = vld [vmem:[#allocation5 + $0x128] sm:$0xff]  }
 0x280   : > { %8602 = vmatmul.mubr.bf16.gmra.mrb[68].mxu1 %v10575_v48 }
 0x281   : > { %8418 = vmatmul.mubr.bf16.gmra.mrb[28].mxu0 %v3831_v2  ;;  %8610 = vmatpush3.bf16.msra.mxu1 %v9519_v29  ;;  %v3797_v29 = vld [vmem:[%s9907_s30 + $0x18d] sm:$0xff]  ;;  %v9528_v2 = vld [vmem:[#allocation5 + $0x108] sm:$0xff]  }
 0x282   : > { %8611 = vmatprep.subr.bf16.mxu1 %v9520_v5  ;;  %8421 = vmatprep.mubr.bf16.mxu0 %v3832_v50  ;;  %v5741_v50 = vld [vmem:[%s9907_s30 + $0x242] sm:$0xff] }
 0x283   : > { %v10584_v15 = vpop.f32.mrb[24].mxu1  ;;  %8621 = vmatprep.mubr.bf16.mxu1 %v5595_v62 }
 0x284   : > { %v10588_v11 = vpop.f32.mrb[25].mxu1 }
 0x285   : > { %8612 = vmatpush3.bf16.msra.mxu1 %v9520_v5  ;;  %v10590_v17 = vpop.f32.mrb[26].mxu1  ;;  %v3838_v5 = vpack.c.bf16 %v3797_v29, %v3796_v10  ;;  %v9534_v10 = vld [vmem:[#allocation5 + $0x130] sm:$0xff]   ;;  %v3806_v29 = vld [vmem:[%s9907_s30 + $0x1d5] sm:$0xff] }
 0x286   : > { %v10592_v23 = vpop.f32.mrb[27].mxu1  ;;  %8613 = vmatprep.subr.bf16.mxu1 %v9521_v0 }
 0x289   : > { %8422 = vmatmul.mubr.bf16.gmra.mrb[32].mxu0 %v3833_v18  ;;  %8614 = vmatpush3.bf16.msra.mxu1 %v9521_v0  ;;  %v5742_v0 = vld [vmem:[%s9907_s30 + $0x24a] sm:$0xff] }
 0x28a   : > { %8615 = vmatprep.subr.bf16.mxu1 %v9523_v25  ;;  %8425 = vmatprep.mubr.bf16.mxu0 %v3834_v27  ;;  %v3801_v18 = vld [vmem:[%s9907_s30 + $0x1ad] sm:$0xff] }
 0x28b   : > { %v10596_v39 = vpop.f32.mrb[28].mxu1  ;;  %v5884_v27 = vld [vmem:[%s9907_s30 + $0x213] sm:$0xff]  ;;  %v3840_v38 = vpack.c.bf16 %v3801_v18, %v3800_v12 }
 0x28c   : > { %v10600_v42 = vpop.f32.mrb[29].mxu1  ;;  %v9536_v12 = vld [vmem:[#allocation5 + $0x140] sm:$0xff]  }
 0x28d   : > { %8616 = vmatpush3.bf16.msra.mxu1 %v9523_v25  ;;  %v10602_v46 = vpop.f32.mrb[30].mxu1  ;;  %v5746_v25 = vpack.c.bf16 %v5742_v0, %v5741_v50  ;;  %v9535_v0 = vld [vmem:[#allocation5 + $0x138] sm:$0xff]  }
 0x28e   : > { %v10604_v62 = vpop.f32.mrb[31].mxu1  ;;  %8617 = vmatprep.subr.bf16.mxu1 %v9524_v35  ;;  %v3810_v18 = vld [vmem:[%s9907_s30 + $0x1f5] sm:$0xff] }
 0x291   : > { %8426 = vmatmul.mubr.bf16.gmra.mrb[36].mxu0 %v3835_v49  ;;  %8618 = vmatpush3.bf16.msra.mxu1 %v9524_v35  ;;  %v5885_v35 = vld [vmem:[%s9907_s30 + $0x21b] sm:$0xff] }
 0x292   : > { %8619 = vmatprep.subr.bf16.mxu1 %v9525_v44  ;;  %8429 = vmatprep.mubr.bf16.mxu0 %v3836_v56  ;;  %v5892_v41 = vpack.c.bf16 %v5885_v35, %v5884_v27  ;;  %v3803_v49 = vld [vmem:[%s9907_s30 + $0x1bd] sm:$0xff]  ;;  %v3805_v56 = vld [vmem:[%s9907_s30 + $0x1cd] sm:$0xff]  ;;  %v3812_v27 = vld [vmem:[%s9907_s30 + $0x205] sm:$0xff] }
 0x293   : > { %v10608_v57 = vpop.f32.mrb[32].mxu1  ;;  %v3813_v35 = vld [vmem:[%s9907_s30 + $0x20d] sm:$0xff] }
 0x294   : > { %v10612_v32 = vpop.f32.mrb[33].mxu1 }
 0x295   : > { %8620 = vmatpush3.bf16.msra.mxu1 %v9525_v44  ;;  %v10614_v34 = vpop.f32.mrb[34].mxu1  ;;  %v3804_v44 = vld [vmem:[%s9907_s30 + $0x1c5] sm:$0xff] }
 0x296   : > { %v10616_v59 = vpop.f32.mrb[35].mxu1  ;;  %8629 = vmatprep.subr.bf16.mxu1 %v9526_v8  ;;  %v3842_v37 = vpack.c.bf16 %v3805_v56, %v3804_v44  ;;  %v5890_v44 = vld [vmem:[%s9907_s30 + $0x243] sm:$0xff]  ;;  %v5891_v56 = vld [vmem:[%s9907_s30 + $0x24b] sm:$0xff] }
 0x298   : > { %8622 = vmatmul.mubr.bf16.vlgmr.msra.gmra.mrb[64].mxu1 %v10562_v53  ;;  %v3839_v53 = vpack.c.bf16 %v3799_v20, %v3798_v43  ;;  %v5886_v43 = vld [vmem:[%s9907_s30 + $0x223] sm:$0xff]  ;;  %v5887_v20 = vld [vmem:[%s9907_s30 + $0x22b] sm:$0xff] }
 0x299   : > { %8430 = vmatmul.mubr.bf16.gmra.mrb[40].mxu0 %v3837_v4  ;;  %8630 = vmatpush3.bf16.msra.mxu1 %v9526_v8  ;;  %v3807_v4 = vld [vmem:[%s9907_s30 + $0x1dd] sm:$0xff] }
 0x29a   : > { %8631 = vmatprep.subr.bf16.mxu1 %v9528_v2  ;;  %8433 = vmatprep.mubr.bf16.mxu0 %v3838_v5  ;;  %v3809_v5 = vld [vmem:[%s9907_s30 + $0x1ed] sm:$0xff]  ;;  %v3843_v50 = vpack.c.bf16 %v3807_v4, %v3806_v29  ;;  %v5895_v4 = vpack.c.bf16 %v5891_v56, %v5890_v44 }
 0x29b   : > { %8625 = vmatprep.mubr.bf16.mxu1 %v10575_v48  ;;  %v3802_v48 = vld [vmem:[%s9907_s30 + $0x1b5] sm:$0xff]  ;;  %v6036_v44 = vld [vmem:[%s9907_s30 + $0x22c] sm:$0xff] }
 0x29c   : > { %v3841_v8 = vpack.c.bf16 %v3803_v49, %v3802_v48  ;;  %v3846_v48 = vpack.c.bf16 %v3813_v35, %v3812_v27  ;;  %v4267_v29 = vld [vmem:[%s9907_s30 + $0x2e] sm:$0xff] }
 0x29d   : > { %8632 = vmatpush3.bf16.msra.mxu1 %v9528_v2  ;;  %v3808_v2 = vld [vmem:[%s9907_s30 + $0x1e5] sm:$0xff]  ;;  %v9545_v56 = vld [vmem:[#allocation5 + $0x180] sm:$0xff]  }
 0x29e   : > { %8633 = vmatprep.subr.bf16.mxu1 %v9529_v9  ;;  %v9543_v35 = vld [vmem:[#allocation5 + $0x170] sm:$0xff]  }
 0x2a0   : > { %8626 = vmatmul.mubr.bf16.gmra.mrb[68].mxu1 %v5746_v25  ;;  %v3811_v25 = vld [vmem:[%s9907_s30 + $0x1fd] sm:$0xff] }
 0x2a1   : > { %8434 = vmatmul.mubr.bf16.gmra.mrb[44].mxu0 %v3839_v53  ;;  %8634 = vmatpush3.bf16.msra.mxu1 %v9529_v9  ;;  %v3844_v9 = vpack.c.bf16 %v3809_v5, %v3808_v2  ;;  %v5893_v53 = vpack.c.bf16 %v5887_v20, %v5886_v43  ;;  %v9540_v5 = vld [vmem:[#allocation5 + $0x158] sm:$0xff]   ;;  %v4269_v43 = vld [vmem:[%s9907_s30 + $0x3e] sm:$0xff] }
 0x2a2   : > { %8635 = vmatprep.subr.bf16.mxu1 %v9530_v36  ;;  %8437 = vmatprep.mubr.bf16.mxu0 %v3840_v38  ;;  %v5889_v38 = vld [vmem:[%s9907_s30 + $0x23b] sm:$0xff]  ;;  %v4270_v20 = vld [vmem:[%s9907_s30 + $0x46] sm:$0xff] }
 0x2a3   : > { %8645 = vmatprep.mubr.bf16.mxu1 %v5892_v41  ;;  %v3845_v41 = vpack.c.bf16 %v3811_v25, %v3810_v18  ;;  %v9542_v25 = vld [vmem:[#allocation5 + $0x168] sm:$0xff]  }
 0x2a5   : > { %8636 = vmatpush3.bf16.msra.mxu1 %v9530_v36  ;;  %v5888_v36 = vld [vmem:[%s9907_s30 + $0x233] sm:$0xff] }
 0x2a6   : > { %8637 = vmatprep.subr.bf16.mxu1 %v9531_v30  ;;  %v5894_v49 = vpack.c.bf16 %v5889_v38, %v5888_v36  ;;  %v4273_v36 = vld [vmem:[%s9907_s30 + $0x5e] sm:$0xff]  ;;  %v4274_v38 = vld [vmem:[%s9907_s30 + $0x66] sm:$0xff] }
 0x2a9   : > { %8438 = vmatmul.mubr.bf16.gmra.mrb[48].mxu0 %v3841_v8  ;;  %8638 = vmatpush3.bf16.msra.mxu1 %v9531_v30  ;;  %v9538_v30 = vld [vmem:[#allocation5 + $0x148] sm:$0xff]   ;;  %v9539_v8 = vld [vmem:[#allocation5 + $0x150] sm:$0xff]  }
 0x2aa   : > { %8639 = vmatprep.subr.bf16.mxu1 %v9533_v55  ;;  %8441 = vmatprep.mubr.bf16.mxu0 %v3842_v37  ;;  %v3815_v37 = vld [vmem:[%s9907_s30 + $0x21d] sm:$0xff] }
 0x2ad   : > { %8640 = vmatpush3.bf16.msra.mxu1 %v9533_v55  ;;  %v3814_v55 = vld [vmem:[%s9907_s30 + $0x215] sm:$0xff] }
 0x2ae   : > { %8641 = vmatprep.subr.bf16.mxu1 %v9534_v10  ;;  %v3847_v2 = vpack.c.bf16 %v3815_v37, %v3814_v55  ;;  %v4277_v55 = vld [vmem:[%s9907_s30 + $0x7e] sm:$0xff] }
 0x2b1   : > { %8442 = vmatmul.mubr.bf16.gmra.mrb[52].mxu0 %v3843_v50  ;;  %8642 = vmatpush3.bf16.msra.mxu1 %v9534_v10  ;;  %v4266_v10 = vld [vmem:[%s9907_s30 + $0x26] sm:$0xff] }
 0x2b2   : > { %8643 = vmatprep.subr.bf16.mxu1 %v9535_v0  ;;  %8445 = vmatprep.mubr.bf16.mxu0 %v3844_v9  ;;  %v4330_v50 = vpack.c.bf16 %v4267_v29, %v4266_v10  ;;  %v4268_v9 = vld [vmem:[%s9907_s30 + $0x36] sm:$0xff]  ;;  %v4278_v10 = vld [vmem:[%s9907_s30 + $0x86] sm:$0xff]  ;;  %v4279_v29 = vld [vmem:[%s9907_s30 + $0x8e] sm:$0xff] }
 0x2b3   : > { %v4331_v18 = vpack.c.bf16 %v4269_v43, %v4268_v9 }
 0x2b5   : > { %8644 = vmatpush3.bf16.msra.mxu1 %v9535_v0  ;;  %v9541_v0 = vld [vmem:[#allocation5 + $0x160] sm:$0xff]  }
 0x2b6   : > { %8653 = vmatprep.subr.bf16.mxu1 %v9536_v12 }
 0x2b8   : > { %8646 = vmatmul.mubr.bf16.vlgmr.msra.gmra.mrb[64].mxu1 %v5893_v53  ;;  %v4272_v53 = vld [vmem:[%s9907_s30 + $0x56] sm:$0xff] }
 0x2b9   : > { %8446 = vmatmul.mubr.bf16.gmra.mrb[56].mxu0 %v3845_v41  ;;  %8654 = vmatpush3.bf16.msra.mxu1 %v9536_v12  ;;  %v4271_v12 = vld [vmem:[%s9907_s30 + $0x4e] sm:$0xff] }
 0x2ba   : > { %8655 = vmatprep.subr.bf16.mxu1 %v9538_v30  ;;  %8449 = vmatprep.mubr.bf16.mxu0 %v3846_v48  ;;  %v4332_v27 = vpack.c.bf16 %v4271_v12, %v4270_v20  ;;  %v4275_v41 = vld [vmem:[%s9907_s30 + $0x6e] sm:$0xff]  ;;  %v9546_v20 = vld [vmem:[#allocation5 + $0x188] sm:$0xff]   ;;  %v4336_v12 = vpack.c.bf16 %v4279_v29, %v4278_v10 }
 0x2bb   : > { %8649 = vmatprep.mubr.bf16.mxu1 %v5894_v49  ;;  %v4334_v48 = vpack.c.bf16 %v4275_v41, %v4274_v38  ;;  %v6035_v49 = vld [vmem:[%s9907_s30 + $0x224] sm:$0xff]  ;;  %v9549_v10 = vld [vmem:[#allocation5 + $0x1a0] sm:$0xff]  }
 0x2bc   : > { %v4282_v41 = vld [vmem:[%s9907_s30 + $0xa6] sm:$0xff]  ;;  %v4284_v29 = vld [vmem:[%s9907_s30 + $0xb6] sm:$0xff] }
 0x2bd   : > { %8656 = vmatpush3.bf16.msra.mxu1 %v9538_v30  ;;  %v9544_v30 = vld [vmem:[#allocation5 + $0x178] sm:$0xff]  }
 0x2be   : > { %8657 = vmatprep.subr.bf16.mxu1 %v9539_v8 }
 0x2c0   : > { %8650 = vmatmul.mubr.bf16.gmra.mrb[68].mxu1 %v5895_v4 }
 0x2c1   : > { %8450 = vmatmul.mubr.bf16.gmra.mrb[60].mxu0 %v3847_v2  ;;  %8658 = vmatpush3.bf16.msra.mxu1 %v9539_v8  ;;  %v4276_v8 = vld [vmem:[%s9907_s30 + $0x76] sm:$0xff]  ;;  %v6042_v2 = vpack.c.bf16 %v6036_v44, %v6035_v49 }
 0x2c2   : > { %8659 = vmatprep.subr.bf16.mxu1 %v9540_v5  ;;  %8469 = vmatprep.mubr.bf16.mxu0 %v4330_v50  ;;  %v6038_v50 = vld [vmem:[%s9907_s30 + $0x23c] sm:$0xff]  ;;  %v4335_v9 = vpack.c.bf16 %v4277_v55, %v4276_v8  ;;  %v9548_v8 = vld [vmem:[#allocation5 + $0x198] sm:$0xff]  }
 0x2c3   : > { %8669 = vmatprep.mubr.bf16.mxu1 %v10479_v26  ;;  %v4333_v26 = vpack.c.bf16 %v4273_v36, %v4272_v53  ;;  %v4280_v53 = vld [vmem:[%s9907_s30 + $0x96] sm:$0xff]  ;;  %v4281_v36 = vld [vmem:[%s9907_s30 + $0x9e] sm:$0xff] }
 0x2c4   : > { %v4337_v44 = vpack.c.bf16 %v4281_v36, %v4280_v53  ;;  %v9550_v53 = vld [vmem:[#allocation5 + $0x1a8] sm:$0xff]  }
 0x2c5   : > { %8660 = vmatpush3.bf16.msra.mxu1 %v9540_v5  ;;  %v6037_v5 = vld [vmem:[%s9907_s30 + $0x234] sm:$0xff] }
 0x2c6   : > { %8661 = vmatprep.subr.bf16.mxu1 %v9541_v0 }
 0x2c9   : > { %8470 = vmatmul.mubr.bf16.vlgmr.msra.gmra.mrb[0].mxu0 %v4331_v18  ;;  %8662 = vmatpush3.bf16.msra.mxu1 %v9541_v0  ;;  %v10675_v18 = vpack.c.bf16 %v6038_v50, %v6037_v5  ;;  %v4285_v5 = vld [vmem:[%s9907_s30 + $0xbe] sm:$0xff] }
 0x2ca   : > { %8663 = vmatprep.subr.bf16.mxu1 %v9542_v25  ;;  %8473 = vmatprep.mubr.bf16.mxu0 %v4332_v27  ;;  %v6040_v27 = vld [vmem:[%s9907_s30 + $0x24c] sm:$0xff] }
 0x2cd   : > { %8664 = vmatpush3.bf16.msra.mxu1 %v9542_v25  ;;  %v6039_v25 = vld [vmem:[%s9907_s30 + $0x244] sm:$0xff] }
 0x2ce   : > { %8665 = vmatprep.subr.bf16.mxu1 %v9543_v35 }
 0x2d1   : > { %8474 = vmatmul.mubr.bf16.gmra.mrb[4].mxu0 %v4333_v26  ;;  %8666 = vmatpush3.bf16.msra.mxu1 %v9543_v35  ;;  %v9547_v35 = vld [vmem:[#allocation5 + $0x190] sm:$0xff]  }
 0x2d2   : > { %8667 = vmatprep.subr.bf16.mxu1 %v9544_v30  ;;  %8477 = vmatprep.mubr.bf16.mxu0 %v4334_v48  ;;  %v4283_v26 = vld [vmem:[%s9907_s30 + $0xae] sm:$0xff]  ;;  %v10688_v48 = vpack.c.bf16 %v6040_v27, %v6039_v25  ;;  %v4339_v27 = vpack.c.bf16 %v4285_v5, %v4284_v29 }
 0x2d3   : > { %v10663_v37 = vpop.f32.mrb[36].mxu1  ;;  %v4338_v55 = vpack.c.bf16 %v4283_v26, %v4282_v41  ;;  %v9551_v41 = vld [vmem:[#allocation5 + $0x1b0] sm:$0xff]   ;;  %v4288_v26 = vld [vmem:[%s9907_s30 + $0xd6] sm:$0xff] }
 0x2d4   : > { %v10667_v4 = vpop.f32.mrb[37].mxu1 }
 0x2d5   : > { %8668 = vmatpush3.bf16.msra.mxu1 %v9544_v30  ;;  %v10671_v0 = vpop.f32.mrb[38].mxu1 }
 0x2d6   : > { %v10673_v43 = vpop.f32.mrb[39].mxu1  ;;  %8677 = vmatprep.subr.bf16.mxu1 %v9545_v56 }
 0x2d8   : > { %8670 = vmatmul.mubr.bf16.vlgmr.msra.gmra.mrb[64].mxu1 %v6042_v2 }
 0x2d9   : > { %8478 = vmatmul.mubr.bf16.gmra.mrb[8].mxu0 %v4335_v9  ;;  %8678 = vmatpush3.bf16.msra.mxu1 %v9545_v56  ;;  %v4286_v9 = vld [vmem:[%s9907_s30 + $0xc6] sm:$0xff] }
 0x2da   : > { %8679 = vmatprep.subr.bf16.mxu1 %v9546_v20  ;;  %8481 = vmatprep.mubr.bf16.mxu0 %v4336_v12 }
 0x2db   : > { %v10681_v38 = vpop.f32.mrb[40].mxu1  ;;  %8673 = vmatprep.mubr.bf16.mxu1 %v10675_v18 }
 0x2dc   : > { %v10686_v30 = vpop.f32.mrb[41].mxu1 }
 0x2dd   : > { %8680 = vmatpush3.bf16.msra.mxu1 %v9546_v20  ;;  %v10690_v49 = vpop.f32.mrb[42].mxu1  ;;  %v4287_v20 = vld [vmem:[%s9907_s30 + $0xce] sm:$0xff] }
 0x2de   : > { %v10692_v56 = vpop.f32.mrb[43].mxu1  ;;  %8681 = vmatprep.subr.bf16.mxu1 %v9547_v35  ;;  %v4340_v36 = vpack.c.bf16 %v4287_v20, %v4286_v9  ;;  %v9552_v9 = vld [vmem:[#allocation5 + $0x1b8] sm:$0xff]  }
 0x2e0   : > { %8674 = vmatmul.mubr.bf16.gmra.mrb[68].mxu1 %v10688_v48 }
 0x2e1   : > { %8482 = vmatmul.mubr.bf16.gmra.mrb[12].mxu0 %v4337_v44  ;;  %8682 = vmatpush3.bf16.msra.mxu1 %v9547_v35 }
 0x2e2   : > { %8683 = vmatprep.subr.bf16.mxu1 %v9548_v8  ;;  %8485 = vmatprep.mubr.bf16.mxu0 %v4338_v55  ;;  %v4291_v55 = vld [vmem:[%s9907_s30 + $0xee] sm:$0xff] }
 0x2e3   : > { %v10697_v50 = vpop.f32.mrb[44].mxu1  ;;  %8693 = vmatprep.mubr.bf16.mxu1 %v6042_v2  ;;  %v4289_v2 = vld [vmem:[%s9907_s30 + $0xde] sm:$0xff] }
 0x2e4   : > { %v10701_v12 = vpop.f32.mrb[45].mxu1  ;;  %v4341_v5 = vpack.c.bf16 %v4289_v2, %v4288_v26 }
 0x2e5   : > { %11135 = vst [vmem:[#allocation11_spill] sm:$0xff] %v10701_v12  ;;  %8684 = vmatpush3.bf16.msra.mxu1 %v9548_v8  ;;  %v10703_v25 = vpop.f32.mrb[46].mxu1  ;;  %v4290_v8 = vld [vmem:[%s9907_s30 + $0xe6] sm:$0xff] }
 0x2e6   : > { %11136 = vst [vmem:[#allocation12_spill] sm:$0xff] %v10703_v25  ;;  %v10705_v35 = vpop.f32.mrb[47].mxu1  ;;  %8685 = vmatprep.subr.bf16.mxu1 %v9549_v10  ;;  %v4342_v20 = vpack.c.bf16 %v4291_v55, %v4290_v8  ;;  %v9554_v8 = vld [vmem:[#allocation5 + $0x1c8] sm:$0xff]  }
 0x2e7   : > { %11137 = vst [vmem:[#allocation13_spill] sm:$0xff] %v10705_v35  ;;  %v4295_v35 = vld [vmem:[%s9907_s30 + $0x10e] sm:$0xff] }
 0x2e9   : > { %8486 = vmatmul.mubr.bf16.gmra.mrb[16].mxu0 %v4339_v27  ;;  %8686 = vmatpush3.bf16.msra.mxu1 %v9549_v10  ;;  %v9553_v27 = vld [vmem:[#allocation5 + $0x1c0] sm:$0xff]  }
 0x2ea   : > { %8687 = vmatprep.subr.bf16.mxu1 %v9550_v53  ;;  %8489 = vmatprep.mubr.bf16.mxu0 %v4340_v36  ;;  %v4292_v36 = vld [vmem:[%s9907_s30 + $0xf6] sm:$0xff] }
 0x2eb   : > { %v10709_v44 = vpop.f32.mrb[48].mxu1 }
 0x2ec   : > { %11138 = vst [vmem:[#allocation14_spill] sm:$0xff] %v10709_v44  ;;  %v10713_v25 = vpop.f32.mrb[49].mxu1  ;;  %v4293_v44 = vld [vmem:[%s9907_s30 + $0xfe] sm:$0xff] }
 0x2ed   : > { %11139 = vst [vmem:[#allocation15_spill] sm:$0xff] %v10713_v25  ;;  %8688 = vmatpush3.bf16.msra.mxu1 %v9550_v53  ;;  %v10715_v29 = vpop.f32.mrb[50].mxu1  ;;  %v4294_v53 = vld [vmem:[%s9907_s30 + $0x106] sm:$0xff]  ;;  %v4343_v2 = vpack.c.bf16 %v4293_v44, %v4292_v36  ;;  %v4297_v44 = vld [vmem:[%s9907_s30 + $0x11e] sm:$0xff] }
 0x2ee   : > { %11140 = vst [vmem:[#allocation16_spill] sm:$0xff] %v10715_v29  ;;  %v10717_v10 = vpop.f32.mrb[51].mxu1  ;;  %8689 = vmatprep.subr.bf16.mxu1 %v9551_v41  ;;  %v4344_v55 = vpack.c.bf16 %v4295_v35, %v4294_v53  ;;  %v6331_v53 = vld [vmem:[%s9907_s30 + $0x225] sm:$0xff] }
 0x2ef   : > { %11141 = vst [vmem:[#allocation17_spill] sm:$0xff] %v10717_v10 }
 0x2f1   : > { %8490 = vmatmul.mubr.bf16.gmra.mrb[20].mxu0 %v4341_v5  ;;  %8690 = vmatpush3.bf16.msra.mxu1 %v9551_v41  ;;  %v6188_v5 = vld [vmem:[%s9907_s30 + $0x254] sm:$0xff] }
 0x2f2   : > { %8691 = vmatprep.subr.bf16.mxu1 %v9552_v9  ;;  %8493 = vmatprep.mubr.bf16.mxu0 %v4342_v20  ;;  %v6189_v20 = vld [vmem:[%s9907_s30 + $0x25c] sm:$0xff] }
 0x2f3   : > { %v10721_v25 = vpop.f32.mrb[52].mxu1 }
 0x2f4   : > { %11142 = vst [vmem:[#allocation18_spill] sm:$0xff] %v10721_v25  ;;  %v10725_v29 = vpop.f32.mrb[53].mxu1 }
 0x2f5   : > { %11143 = vst [vmem:[#allocation19_spill] sm:$0xff] %v10725_v29  ;;  %8692 = vmatpush3.bf16.msra.mxu1 %v9552_v9  ;;  %v10727_v26 = vpop.f32.mrb[54].mxu1  ;;  %v9555_v9 = vld [vmem:[#allocation5 + $0x1d0] sm:$0xff]  }
 0x2f6   : > { %11144 = vst [vmem:[#allocation20_spill] sm:$0xff] %v10727_v26  ;;  %v10729_v41 = vpop.f32.mrb[55].mxu1  ;;  %8701 = vmatprep.subr.bf16.mxu1 %v9553_v27  ;;  %v4296_v26 = vld [vmem:[%s9907_s30 + $0x116] sm:$0xff]  ;;  %v4299_v29 = vld [vmem:[%s9907_s30 + $0x12e] sm:$0xff] }
 0x2f7   : > { %11145 = vst [vmem:[#allocation21_spill] sm:$0xff] %v10729_v41  ;;  %v4298_v41 = vld [vmem:[%s9907_s30 + $0x126] sm:$0xff] }
 0x2f8   : > { %8694 = vmatmul.mubr.bf16.vlgmr.msra.gmra.mrb[64].mxu1 %v10675_v18  ;;  %v6193_v18 = vpack.c.bf16 %v6189_v20, %v6188_v5  ;;  %v4346_v10 = vpack.c.bf16 %v4299_v29, %v4298_v41  ;;  %v4300_v5 = vld [vmem:[%s9907_s30 + $0x136] sm:$0xff]  ;;  %v4301_v20 = vld [vmem:[%s9907_s30 + $0x13e] sm:$0xff] }
 0x2f9   : > { %8494 = vmatmul.mubr.bf16.gmra.mrb[24].mxu0 %v4343_v2  ;;  %8702 = vmatpush3.bf16.msra.mxu1 %v9553_v27  ;;  %v6332_v2 = vld [vmem:[%s9907_s30 + $0x22d] sm:$0xff]  ;;  %v4347_v41 = vpack.c.bf16 %v4301_v20, %v4300_v5 }
 0x2fa   : > { %8703 = vmatprep.subr.bf16.mxu1 %v9554_v8  ;;  %8497 = vmatprep.mubr.bf16.mxu0 %v4344_v55  ;;  %v4345_v55 = vpack.c.bf16 %v4297_v44, %v4296_v26  ;;  %v6339_v12 = vpack.c.bf16 %v6332_v2, %v6331_v53  ;;  %v4303_v26 = vld [vmem:[%s9907_s30 + $0x14e] sm:$0xff]  ;;  %v4304_v53 = vld [vmem:[%s9907_s30 + $0x156] sm:$0xff]  ;;  %v4305_v2 = vld [vmem:[%s9907_s30 + $0x15e] sm:$0xff] }
 0x2fb   : > { %v10736_v36 = vpop.f32.mrb[56].mxu1  ;;  %8697 = vmatprep.mubr.bf16.mxu1 %v10688_v48  ;;  %v9557_v48 = vld [vmem:[#allocation5 + $0x1e0] sm:$0xff]   ;;  %v4349_v5 = vpack.c.bf16 %v4305_v2, %v4304_v53  ;;  %v6335_v53 = vld [vmem:[%s9907_s30 + $0x245] sm:$0xff] }
 0x2fc   : > { %11146 = vst [vmem:[#allocation22_spill] sm:$0xff] %v10736_v36  ;;  %v10741_v35 = vpop.f32.mrb[57].mxu1  ;;  %v9556_v36 = vld [vmem:[#allocation5 + $0x1d8] sm:$0xff]  }
 0x2fd   : > { %11147 = vst [vmem:[#allocation23_spill] sm:$0xff] %v10741_v35  ;;  %8704 = vmatpush3.bf16.msra.mxu1 %v9554_v8  ;;  %v10745_v27 = vpop.f32.mrb[58].mxu1  ;;  %v6336_v2 = vld [vmem:[%s9907_s30 + $0x24d] sm:$0xff] }
 0x2fe   : > { %11148 = vst [vmem:[#allocation24_spill] sm:$0xff] %v10745_v27  ;;  %v10747_v25 = vpop.f32.mrb[59].mxu1  ;;  %8705 = vmatprep.subr.bf16.mxu1 %v9555_v9  ;;  %v4302_v27 = vld [vmem:[%s9907_s30 + $0x146] sm:$0xff]  ;;  %v4315_v35 = vld [vmem:[%s9907_s30 + $0x1ae] sm:$0xff] }
 0x2ff   : > { %11149 = vst [vmem:[#allocation25_spill] sm:$0xff] %v10747_v25  ;;  %v4313_v25 = vld [vmem:[%s9907_s30 + $0x19e] sm:$0xff] }
 0x300   : > { %8698 = vmatmul.mubr.bf16.gmra.mrb[68].mxu1 %v6193_v18  ;;  %v4348_v18 = vpack.c.bf16 %v4303_v26, %v4302_v27  ;;  %v9560_v27 = vld [vmem:[#allocation5 + $0x1f8] sm:$0xff]   ;;  %v6334_v26 = vld [vmem:[%s9907_s30 + $0x23d] sm:$0xff] }
 0x301   : > { %8498 = vmatmul.mubr.bf16.gmra.mrb[28].mxu0 %v4345_v55  ;;  %8706 = vmatpush3.bf16.msra.mxu1 %v9555_v9  ;;  %v4307_v55 = vld [vmem:[%s9907_s30 + $0x16e] sm:$0xff] }
 0x302   : > { %8707 = vmatprep.subr.bf16.mxu1 %v9556_v36  ;;  %8501 = vmatprep.mubr.bf16.mxu0 %v4346_v10  ;;  %v9558_v10 = vld [vmem:[#allocation5 + $0x1e8] sm:$0xff]  }
 0x303   : > { %v10751_v8 = vpop.f32.mrb[60].mxu1  ;;  %8717 = vmatprep.mubr.bf16.mxu1 %v6339_v12  ;;  %v9559_v12 = vld [vmem:[#allocation5 + $0x1f0] sm:$0xff]  }
 0x304   : > { %11150 = vst [vmem:[#allocation26_spill] sm:$0xff] %v10751_v8  ;;  %v10755_v44 = vpop.f32.mrb[61].mxu1  ;;  %v6338_v8 = vld [vmem:[%s9907_s30 + $0x25d] sm:$0xff] }
 0x305   : > { %11151 = vst [vmem:[#allocation27_spill] sm:$0xff] %v10755_v44  ;;  %8708 = vmatpush3.bf16.msra.mxu1 %v9556_v36  ;;  %v10757_v29 = vpop.f32.mrb[62].mxu1  ;;  %v4306_v36 = vld [vmem:[%s9907_s30 + $0x166] sm:$0xff]  ;;  %v4311_v44 = vld [vmem:[%s9907_s30 + $0x18e] sm:$0xff] }
 0x306   : > { %11152 = vst [vmem:[#allocation28_spill] sm:$0xff] %v10757_v29  ;;  %v10759_v9 = vpop.f32.mrb[63].mxu1  ;;  %8709 = vmatprep.subr.bf16.mxu1 %v9557_v48  ;;  %v4350_v20 = vpack.c.bf16 %v4307_v55, %v4306_v36  ;;  %v4310_v29 = vld [vmem:[%s9907_s30 + $0x186] sm:$0xff] }
 0x307   : > { %11153 = vst [vmem:[#allocation29_spill] sm:$0xff] %v10759_v9  ;;  %v4309_v9 = vld [vmem:[%s9907_s30 + $0x17e] sm:$0xff]  ;;  %v4352_v55 = vpack.c.bf16 %v4311_v44, %v4310_v29  ;;  %v6480_v44 = vld [vmem:[%s9907_s30 + $0x226] sm:$0xff]  ;;  %v6481_v29 = vld [vmem:[%s9907_s30 + $0x22e] sm:$0xff] }
 0x309   : > { %8502 = vmatmul.mubr.bf16.gmra.mrb[32].mxu0 %v4347_v41  ;;  %8710 = vmatpush3.bf16.msra.mxu1 %v9557_v48  ;;  %v6333_v48 = vld [vmem:[%s9907_s30 + $0x235] sm:$0xff] }
 0x30a   : > { %8711 = vmatprep.subr.bf16.mxu1 %v9558_v10  ;;  %8505 = vmatprep.mubr.bf16.mxu0 %v4348_v18  ;;  %v9561_v41 = vld [vmem:[#allocation5 + $0x200] sm:$0xff]  }
 0x30b   : > { %v4308_v18 = vld [vmem:[%s9907_s30 + $0x176] sm:$0xff] }
 0x30c   : > { %v4351_v36 = vpack.c.bf16 %v4309_v9, %v4308_v18 }
 0x30d   : > { %8712 = vmatpush3.bf16.msra.mxu1 %v9558_v10  ;;  %v6340_v10 = vpack.c.bf16 %v6334_v26, %v6333_v48  ;;  %v9563_v48 = vld [vmem:[#allocation5 + $0x210] sm:$0xff]   ;;  %v4312_v26 = vld [vmem:[%s9907_s30 + $0x196] sm:$0xff] }
 0x30e   : > { %8713 = vmatprep.subr.bf16.mxu1 %v9559_v12  ;;  %v4353_v18 = vpack.c.bf16 %v4313_v25, %v4312_v26  ;;  %v4321_v26 = vld [vmem:[%s9907_s30 + $0x1de] sm:$0xff] }
 0x311   : > { %8506 = vmatmul.mubr.bf16.gmra.mrb[36].mxu0 %v4349_v5  ;;  %8714 = vmatpush3.bf16.msra.mxu1 %v9559_v12  ;;  %v9562_v12 = vld [vmem:[#allocation5 + $0x208] sm:$0xff]   ;;  %v6341_v5 = vpack.c.bf16 %v6336_v2, %v6335_v53  ;;  %v6488_v53 = vpack.c.bf16 %v6481_v29, %v6480_v44  ;;  %v9565_v2 = vld [vmem:[#allocation5 + $0x220] sm:$0xff]   ;;  %v9568_v29 = vld [vmem:[#allocation5 + $0x238] sm:$0xff]  }
 0x312   : > { %8715 = vmatprep.subr.bf16.mxu1 %v9560_v27  ;;  %8509 = vmatprep.mubr.bf16.mxu0 %v4350_v20  ;;  %v6337_v20 = vld [vmem:[%s9907_s30 + $0x255] sm:$0xff] }
 0x313   : > { %v6342_v9 = vpack.c.bf16 %v6338_v8, %v6337_v20  ;;  %v4317_v8 = vld [vmem:[%s9907_s30 + $0x1be] sm:$0xff] }
 0x314   : > { %v9567_v20 = vld [vmem:[#allocation5 + $0x230] sm:$0xff]  }
 0x315   : > { %8716 = vmatpush3.bf16.msra.mxu1 %v9560_v27  ;;  %v4314_v27 = vld [vmem:[%s9907_s30 + $0x1a6] sm:$0xff] }
 0x316   : > { %8725 = vmatprep.subr.bf16.mxu1 %v9561_v41 }
 0x318   : > { %8718 = vmatmul.mubr.bf16.vlgmr.msra.gmra.mrb[64].mxu1 %v6340_v10  ;;  %v4354_v10 = vpack.c.bf16 %v4315_v35, %v4314_v27  ;;  %v9566_v35 = vld [vmem:[#allocation5 + $0x228] sm:$0xff]  }
 0x319   : > { %8510 = vmatmul.mubr.bf16.gmra.mrb[40].mxu0 %v4351_v36  ;;  %8726 = vmatpush3.bf16.msra.mxu1 %v9561_v41  ;;  %v9564_v41 = vld [vmem:[#allocation5 + $0x218] sm:$0xff]  }
 0x31a   : > { %8727 = vmatprep.subr.bf16.mxu1 %v9562_v12  ;;  %8513 = vmatprep.mubr.bf16.mxu0 %v4352_v55  ;;  %v4316_v36 = vld [vmem:[%s9907_s30 + $0x1b6] sm:$0xff]  ;;  %v4318_v55 = vld [vmem:[%s9907_s30 + $0x1c6] sm:$0xff] }
 0x31b   : > { %8721 = vmatprep.mubr.bf16.mxu1 %v6341_v5  ;;  %v4319_v5 = vld [vmem:[%s9907_s30 + $0x1ce] sm:$0xff]  ;;  %v4355_v25 = vpack.c.bf16 %v4317_v8, %v4316_v36  ;;  %v4322_v27 = vld [vmem:[%s9907_s30 + $0x1e6] sm:$0xff] }
 0x31c   : > { %v6484_v36 = vld [vmem:[%s9907_s30 + $0x246] sm:$0xff]  ;;  %v6485_v8 = vld [vmem:[%s9907_s30 + $0x24e] sm:$0xff] }
 0x31d   : > { %8728 = vmatpush3.bf16.msra.mxu1 %v9562_v12  ;;  %v4356_v12 = vpack.c.bf16 %v4319_v5, %v4318_v55  ;;  %v4326_v55 = vld [vmem:[%s9907_s30 + $0x206] sm:$0xff]  ;;  %v4327_v5 = vld [vmem:[%s9907_s30 + $0x20e] sm:$0xff] }
 0x31e   : > { %8729 = vmatprep.subr.bf16.mxu1 %v9563_v48 }
 0x320   : > { %8722 = vmatmul.mubr.bf16.gmra.mrb[68].mxu1 %v6342_v9  ;;  %v4323_v9 = vld [vmem:[%s9907_s30 + $0x1ee] sm:$0xff] }
 0x321   : > { %8514 = vmatmul.mubr.bf16.gmra.mrb[44].mxu0 %v4353_v18  ;;  %8730 = vmatpush3.bf16.msra.mxu1 %v9563_v48  ;;  %v4320_v48 = vld [vmem:[%s9907_s30 + $0x1d6] sm:$0xff]  ;;  %v4358_v18 = vpack.c.bf16 %v4323_v9, %v4322_v27  ;;  %v4329_v9 = vld [vmem:[%s9907_s30 + $0x21e] sm:$0xff] }
 0x322   : > { %8731 = vmatprep.subr.bf16.mxu1 %v9564_v41  ;;  %8517 = vmatprep.mubr.bf16.mxu0 %v4354_v10  ;;  %v4357_v44 = vpack.c.bf16 %v4321_v26, %v4320_v48  ;;  %v6483_v10 = vld [vmem:[%s9907_s30 + $0x23e] sm:$0xff]  ;;  %v4360_v48 = vpack.c.bf16 %v4327_v5, %v4326_v55  ;;  %v4328_v27 = vld [vmem:[%s9907_s30 + $0x216] sm:$0xff] }
 0x323   : > { %8741 = vmatprep.mubr.bf16.mxu1 %v6488_v53  ;;  %v4324_v53 = vld [vmem:[%s9907_s30 + $0x1f6] sm:$0xff]  ;;  %v6487_v26 = vld [vmem:[%s9907_s30 + $0x25e] sm:$0xff] }
 0x325   : > { %8732 = vmatpush3.bf16.msra.mxu1 %v9564_v41  ;;  %v6482_v41 = vld [vmem:[%s9907_s30 + $0x236] sm:$0xff] }
 0x326   : > { %8733 = vmatprep.subr.bf16.mxu1 %v9565_v2 }
 0x329   : > { %8518 = vmatmul.mubr.bf16.gmra.mrb[48].mxu0 %v4355_v25  ;;  %8734 = vmatpush3.bf16.msra.mxu1 %v9565_v2  ;;  %v4325_v2 = vld [vmem:[%s9907_s30 + $0x1fe] sm:$0xff]  ;;  %v6489_v25 = vpack.c.bf16 %v6483_v10, %v6482_v41 }
 0x32a   : > { %8735 = vmatprep.subr.bf16.mxu1 %v9566_v35  ;;  %8521 = vmatprep.mubr.bf16.mxu0 %v4356_v12  ;;  %v6490_v12 = vpack.c.bf16 %v6485_v8, %v6484_v36 }
 0x32d   : > { %8736 = vmatpush3.bf16.msra.mxu1 %v9566_v35  ;;  %v4359_v35 = vpack.c.bf16 %v4325_v2, %v4324_v53  ;;  %v10810_v2 = vld [vmem:[%s11117_s3] ss:$0 sm:$0xff] }
 0x32e   : > { %8737 = vmatprep.subr.bf16.mxu1 %v9567_v20 }
 0x331   : > { %8522 = vmatmul.mubr.bf16.gmra.mrb[52].mxu0 %v4357_v44  ;;  %8738 = vmatpush3.bf16.msra.mxu1 %v9567_v20  ;;  %v6486_v20 = vld [vmem:[%s9907_s30 + $0x256] sm:$0xff]  ;;  %s9641_s30 = scalar_lea.vmem %s9640_s11, 9216 }
 0x332   : > { %8739 = vmatprep.subr.bf16.mxu1 %v9568_v29  ;;  %8525 = vmatprep.mubr.bf16.mxu0 %v4358_v18  ;;  %v6491_v44 = vpack.c.bf16 %v6487_v26, %v6486_v20  ;;  %v4361_v18 = vpack.c.bf16 %v4329_v9, %v4328_v27  ;;  %p9643_p13 = scmp.lt.s32.totalorder %s9641_s30, %s9635_s8 }
 0x334   : > { %p9644_p0 = por %p9643_p13, %p9642_p12 }
 0x335   : > { %8740 = vmatpush3.bf16.msra.mxu1 %v9568_v29  ;;  %v10804_v29 = vld [vmem:[%s11116_s2] ss:$0 sm:$0xff] }
 0x336   : > { %p9645_p5 = pnand %p9644_p0, %p9638_p8 }
 0x338   : > { %8742 = vmatmul.mubr.bf16.vlgmr.msra.gmra.mrb[64].mxu1 %v6489_v25 }
 0x339   : > { %8526 = vmatmul.mubr.bf16.gmra.mrb[56].mxu0 %v4359_v35  ;;  %8745 = vmatprep.mubr.bf16.mxu1 %v6490_v12 }
 0x33a   : > { %8529 = vmatprep.mubr.bf16.mxu0 %v4360_v48 }
 0x340   : > { %8746 = vmatmul.mubr.bf16.gmra.mrb[68].mxu1 %v6491_v44 }
 0x341   : > { %8530 = vmatmul.mubr.bf16.gmra.mrb[60].mxu0 %v4361_v18 }
 0x39c   : > { %v8471_v41 = vpop.f32.mrb[0].mxu0 }
 0x39d   : > { %v8765_v10 = vadd.f32 %v8471_v41, %v10495_v28  ;;  %v4461_v53 = vpop.f32.mrb[1].mxu0 }
 0x39e   : > { %v8766_v36 = vadd.f32 %v4461_v53, %v10499_v61  ;;  %v8472_v8 = vpop.f32.mrb[2].mxu0 }
 0x39f   : > { %v4788_v55 = vmul.f32 %v8765_v10, %v10804_v29  ;;  %v8767_v5 = vadd.f32 %v8472_v8, %v10503_v6  ;;  %v4464_v25 = vpop.f32.mrb[3].mxu0 }
 0x3a0   : > { %v4786_v35 = vmul.f32 %v8766_v36, %v10804_v29  ;;  %v8768_v12 = vadd.f32 %v4464_v25, %v10505_v19 }
 0x3a1   : > { %v4858_v28 = vadd.f32 %v10810_v2, %v4788_v55  ;;  %v4789_v48 = vmul.f32 %v8767_v5, %v10804_v29 }
 0x3a2   : > { %v4856_v20 = vadd.f32 %v10810_v2, %v4786_v35  ;;  %v4787_v26 = vmul.f32 %v8768_v12, %v10804_v29 }
 0x3a3   : > { %v4859_v61 = vadd.f32 %v10810_v2, %v4789_v48  ;;  %v4922_v6 = vmax.f32 %v4858_v28, 0.0 }
 0x3a4   : > { %v4857_v27 = vadd.f32 %v10810_v2, %v4787_v26  ;;  %v8475_v9 = vpop.f32.mrb[4].mxu0  ;;  %v4920_v19 = vmax.f32 %v4856_v20, 0.0 }
 0x3a5   : > { %v4923_v44 = vmax.f32 %v4859_v61, 0.0  ;;  %v8769_v18 = vadd.f32 %v8475_v9, %v10511_v47  ;;  %v4477_v41 = vpop.f32.mrb[5].mxu0 }
 0x3a6   : > { %v4921_v10 = vmax.f32 %v4857_v27, 0.0  ;;  %v8770_v53 = vadd.f32 %v4477_v41, %v10515_v54  ;;  %v8476_v36 = vpop.f32.mrb[6].mxu0 }
 0x3a7   : > { %v7138_v8 = vpack.c.bf16 %v4923_v44, %v4922_v6  ;;  %v4792_v55 = vmul.f32 %v8769_v18, %v10804_v29  ;;  %v8771_v5 = vadd.f32 %v8476_v36, %v10517_v63  ;;  %v4480_v25 = vpop.f32.mrb[7].mxu0 }
 0x3a8   : > { %v7133_v35 = vpack.c.bf16 %v4921_v10, %v4920_v19  ;;  %v4790_v12 = vmul.f32 %v8770_v53, %v10804_v29  ;;  %v8772_v28 = vadd.f32 %v4480_v25, %v10519_v24 }
 0x3a9   : > { %7310 = vst [vmem:[%s10830_s21 + $0x8] sm:$0xff] %v7138_v8   ;;  %v4862_v47 = vadd.f32 %v10810_v2, %v4792_v55  ;;  %v4793_v54 = vmul.f32 %v8771_v5, %v10804_v29 }
 0x3aa   : > { %7134 = vst [vmem:[%s10830_s21] sm:$0xff] %v7133_v35   ;;  %v4860_v48 = vadd.f32 %v10810_v2, %v4790_v12  ;;  %v4791_v63 = vmul.f32 %v8772_v28, %v10804_v29 }
 0x3ab   : > { %v4863_v20 = vadd.f32 %v10810_v2, %v4793_v54  ;;  %v4926_v24 = vmax.f32 %v4862_v47, 0.0 }
 0x3ac   : > { %v4861_v26 = vadd.f32 %v10810_v2, %v4791_v63  ;;  %v8479_v61 = vpop.f32.mrb[8].mxu0  ;;  %v4924_v44 = vmax.f32 %v4860_v48, 0.0 }
 0x3ad   : > { %v4927_v27 = vmax.f32 %v4863_v20, 0.0  ;;  %v8773_v9 = vadd.f32 %v8479_v61, %v10523_v40  ;;  %v4493_v6 = vpop.f32.mrb[9].mxu0 }
 0x3ae   : > { %v4925_v18 = vmax.f32 %v4861_v26, 0.0  ;;  %v8774_v41 = vadd.f32 %v4493_v6, %v10528_v60  ;;  %v8480_v19 = vpop.f32.mrb[10].mxu0 }
 0x3af   : > { %v7148_v10 = vpack.c.bf16 %v4927_v27, %v4926_v24  ;;  %v4796_v53 = vmul.f32 %v8773_v9, %v10804_v29  ;;  %v8775_v36 = vadd.f32 %v8480_v19, %v10530_v13  ;;  %v4496_v8 = vpop.f32.mrb[11].mxu0 }
 0x3b0   : > { %v7143_v55 = vpack.c.bf16 %v4925_v18, %v4924_v44  ;;  %v4794_v5 = vmul.f32 %v8774_v41, %v10804_v29  ;;  %v8776_v25 = vadd.f32 %v4496_v8, %v10532_v16 }
 0x3b1   : > { %7312 = vst [vmem:[%s10830_s21 + $0x18] sm:$0xff] %v7148_v10   ;;  %v4866_v40 = vadd.f32 %v10810_v2, %v4796_v53  ;;  %v4797_v35 = vmul.f32 %v8775_v36, %v10804_v29 }
 0x3b2   : > { %7311 = vst [vmem:[%s10830_s21 + $0x10] sm:$0xff] %v7143_v55   ;;  %v4864_v60 = vadd.f32 %v10810_v2, %v4794_v5  ;;  %v4795_v12 = vmul.f32 %v8776_v25, %v10804_v29 }
 0x3b3   : > { %v4867_v28 = vadd.f32 %v10810_v2, %v4797_v35  ;;  %v4930_v54 = vmax.f32 %v4866_v40, 0.0 }
 0x3b4   : > { %v4865_v13 = vadd.f32 %v10810_v2, %v4795_v12  ;;  %v8483_v47 = vpop.f32.mrb[12].mxu0  ;;  %v4928_v20 = vmax.f32 %v4864_v60, 0.0 }
 0x3b5   : > { %v4931_v48 = vmax.f32 %v4867_v28, 0.0  ;;  %v8777_v16 = vadd.f32 %v8483_v47, %v10536_v21  ;;  %v4509_v63 = vpop.f32.mrb[13].mxu0 }
 0x3b6   : > { %v4929_v26 = vmax.f32 %v4865_v13, 0.0  ;;  %v8778_v61 = vadd.f32 %v4509_v63, %v10540_v31  ;;  %v8484_v24 = vpop.f32.mrb[14].mxu0 }
 0x3b7   : > { %v7158_v27 = vpack.c.bf16 %v4931_v48, %v4930_v54  ;;  %v4800_v9 = vmul.f32 %v8777_v16, %v10804_v29  ;;  %v8779_v6 = vadd.f32 %v8484_v24, %v10542_v14  ;;  %v4512_v44 = vpop.f32.mrb[15].mxu0 }
 0x3b8   : > { %v7153_v18 = vpack.c.bf16 %v4929_v26, %v4928_v20  ;;  %v4798_v41 = vmul.f32 %v8778_v61, %v10804_v29  ;;  %v8780_v19 = vadd.f32 %v4512_v44, %v10544_v33 }
 0x3b9   : > { %7314 = vst [vmem:[%s10830_s21 + $0x28] sm:$0xff] %v7158_v27   ;;  %v4870_v21 = vadd.f32 %v10810_v2, %v4800_v9  ;;  %v4801_v10 = vmul.f32 %v8779_v6, %v10804_v29 }
 0x3ba   : > { %7313 = vst [vmem:[%s10830_s21 + $0x20] sm:$0xff] %v7153_v18   ;;  %v4868_v31 = vadd.f32 %v10810_v2, %v4798_v41  ;;  %v4799_v53 = vmul.f32 %v8780_v19, %v10804_v29 }
 0x3bb   : > { %v4871_v36 = vadd.f32 %v10810_v2, %v4801_v10  ;;  %v4934_v55 = vmax.f32 %v4870_v21, 0.0 }
 0x3bc   : > { %v4869_v14 = vadd.f32 %v10810_v2, %v4799_v53  ;;  %v8487_v8 = vpop.f32.mrb[16].mxu0  ;;  %v4932_v40 = vmax.f32 %v4868_v31, 0.0 }
 0x3bd   : > { %v4935_v5 = vmax.f32 %v4871_v36, 0.0  ;;  %v8781_v33 = vadd.f32 %v8487_v8, %v10550_v45  ;;  %v4525_v25 = vpop.f32.mrb[17].mxu0 }
 0x3be   : > { %v4933_v35 = vmax.f32 %v4869_v14, 0.0  ;;  %v8782_v60 = vadd.f32 %v4525_v25, %v10554_v52  ;;  %v8488_v12 = vpop.f32.mrb[18].mxu0 }
 0x3bf   : > { %v7168_v28 = vpack.c.bf16 %v4935_v5, %v4934_v55  ;;  %v4804_v13 = vmul.f32 %v8781_v33, %v10804_v29  ;;  %v8783_v47 = vadd.f32 %v8488_v12, %v10558_v58  ;;  %v4528_v54 = vpop.f32.mrb[19].mxu0 }
 0x3c0   : > { %v7163_v48 = vpack.c.bf16 %v4933_v35, %v4932_v40  ;;  %v4802_v16 = vmul.f32 %v8782_v60, %v10804_v29  ;;  %v8784_v63 = vadd.f32 %v4528_v54, %v10560_v22 }
 0x3c1   : > { %7316 = vst [vmem:[%s10830_s21 + $0x38] sm:$0xff] %v7168_v28   ;;  %v4874_v45 = vadd.f32 %v10810_v2, %v4804_v13  ;;  %v4805_v20 = vmul.f32 %v8783_v47, %v10804_v29 }
 0x3c2   : > { %7315 = vst [vmem:[%s10830_s21 + $0x30] sm:$0xff] %v7163_v48   ;;  %v4872_v52 = vadd.f32 %v10810_v2, %v4802_v16  ;;  %v4803_v26 = vmul.f32 %v8784_v63, %v10804_v29 }
 0x3c3   : > { %v4875_v61 = vadd.f32 %v10810_v2, %v4805_v20  ;;  %v4938_v27 = vmax.f32 %v4874_v45, 0.0 }
 0x3c4   : > { %v4873_v58 = vadd.f32 %v10810_v2, %v4803_v26  ;;  %v8491_v24 = vpop.f32.mrb[20].mxu0  ;;  %v4936_v44 = vmax.f32 %v4872_v52, 0.0 }
 0x3c5   : > { %v4939_v9 = vmax.f32 %v4875_v61, 0.0  ;;  %v8785_v22 = vadd.f32 %v8491_v24, %v10568_v51  ;;  %v4541_v6 = vpop.f32.mrb[21].mxu0 }
 0x3c6   : > { %v4937_v18 = vmax.f32 %v4873_v58, 0.0  ;;  %v8786_v41 = vadd.f32 %v4541_v6, %v10573_v7  ;;  %v8492_v19 = vpop.f32.mrb[22].mxu0 }
 0x3c7   : > { %v7178_v21 = vpack.c.bf16 %v4939_v9, %v4938_v27  ;;  %v4808_v10 = vmul.f32 %v8785_v22, %v10804_v29  ;;  %v8787_v31 = vadd.f32 %v8492_v19, %v10577_v1  ;;  %v4544_v53 = vpop.f32.mrb[23].mxu0 }
 0x3c8   : > { %v7173_v36 = vpack.c.bf16 %v4937_v18, %v4936_v44  ;;  %v4806_v14 = vmul.f32 %v8786_v41, %v10804_v29  ;;  %v8788_v8 = vadd.f32 %v4544_v53, %v10579_v3 }
 0x3c9   : > { %7318 = vst [vmem:[%s10830_s21 + $0x48] sm:$0xff] %v7178_v21   ;;  %v4878_v51 = vadd.f32 %v10810_v2, %v4808_v10  ;;  %v4809_v55 = vmul.f32 %v8787_v31, %v10804_v29 }
 0x3ca   : > { %7317 = vst [vmem:[%s10830_s21 + $0x40] sm:$0xff] %v7173_v36   ;;  %v4876_v7 = vadd.f32 %v10810_v2, %v4806_v14  ;;  %v4807_v5 = vmul.f32 %v8788_v8, %v10804_v29 }
 0x3cb   : > { %v4879_v33 = vadd.f32 %v10810_v2, %v4809_v55  ;;  %v4942_v40 = vmax.f32 %v4878_v51, 0.0 }
 0x3cc   : > { %v4877_v1 = vadd.f32 %v10810_v2, %v4807_v5  ;;  %v8495_v25 = vpop.f32.mrb[24].mxu0  ;;  %v4940_v12 = vmax.f32 %v4876_v7, 0.0 }
 0x3cd   : > { %v4943_v35 = vmax.f32 %v4879_v33, 0.0  ;;  %v8789_v3 = vadd.f32 %v8495_v25, %v10584_v15  ;;  %v4557_v60 = vpop.f32.mrb[25].mxu0 }
 0x3ce   : > { %v4941_v28 = vmax.f32 %v4877_v1, 0.0  ;;  %v8790_v13 = vadd.f32 %v4557_v60, %v10588_v11  ;;  %v8496_v47 = vpop.f32.mrb[26].mxu0 }
 0x3cf   : > { %v7188_v54 = vpack.c.bf16 %v4943_v35, %v4942_v40  ;;  %v4812_v48 = vmul.f32 %v8789_v3, %v10804_v29  ;;  %v8791_v16 = vadd.f32 %v8496_v47, %v10590_v17  ;;  %v4560_v63 = vpop.f32.mrb[27].mxu0 }
 0x3d0   : > { %v7183_v45 = vpack.c.bf16 %v4941_v28, %v4940_v12  ;;  %v4810_v20 = vmul.f32 %v8790_v13, %v10804_v29  ;;  %v8792_v52 = vadd.f32 %v4560_v63, %v10592_v23 }
 0x3d1   : > { %7320 = vst [vmem:[%s10830_s21 + $0x58] sm:$0xff] %v7188_v54   ;;  %v4882_v15 = vadd.f32 %v10810_v2, %v4812_v48  ;;  %v4813_v26 = vmul.f32 %v8791_v16, %v10804_v29 }
 0x3d2   : > { %7319 = vst [vmem:[%s10830_s21 + $0x50] sm:$0xff] %v7183_v45   ;;  %v4880_v11 = vadd.f32 %v10810_v2, %v4810_v20  ;;  %v4811_v61 = vmul.f32 %v8792_v52, %v10804_v29 }
 0x3d3   : > { %v4883_v58 = vadd.f32 %v10810_v2, %v4813_v26  ;;  %v4946_v27 = vmax.f32 %v4882_v15, 0.0 }
 0x3d4   : > { %v4881_v17 = vadd.f32 %v10810_v2, %v4811_v61  ;;  %v8499_v24 = vpop.f32.mrb[28].mxu0  ;;  %v4944_v6 = vmax.f32 %v4880_v11, 0.0 }
 0x3d5   : > { %v4947_v9 = vmax.f32 %v4883_v58, 0.0  ;;  %v8793_v23 = vadd.f32 %v8499_v24, %v10596_v39  ;;  %v4573_v22 = vpop.f32.mrb[29].mxu0 }
 0x3d6   : > { %v4945_v44 = vmax.f32 %v4881_v17, 0.0  ;;  %v8794_v18 = vadd.f32 %v4573_v22, %v10600_v42  ;;  %v8500_v41 = vpop.f32.mrb[30].mxu0 }
 0x3d7   : > { %v7198_v19 = vpack.c.bf16 %v4947_v9, %v4946_v27  ;;  %v4816_v21 = vmul.f32 %v8793_v23, %v10804_v29  ;;  %v8795_v10 = vadd.f32 %v8500_v41, %v10602_v46  ;;  %v4576_v31 = vpop.f32.mrb[31].mxu0 }
 0x3d8   : > { %v7193_v53 = vpack.c.bf16 %v4945_v44, %v4944_v6  ;;  %v4814_v36 = vmul.f32 %v8794_v18, %v10804_v29  ;;  %v8796_v14 = vadd.f32 %v4576_v31, %v10604_v62 }
 0x3d9   : > { %7322 = vst [vmem:[%s10830_s21 + $0x68] sm:$0xff] %v7198_v19   ;;  %v4886_v39 = vadd.f32 %v10810_v2, %v4816_v21  ;;  %v4817_v8 = vmul.f32 %v8795_v10, %v10804_v29 }
 0x3da   : > { %7321 = vst [vmem:[%s10830_s21 + $0x60] sm:$0xff] %v7193_v53   ;;  %v4884_v42 = vadd.f32 %v10810_v2, %v4814_v36  ;;  %v4815_v51 = vmul.f32 %v8796_v14, %v10804_v29 }
 0x3db   : > { %v4887_v55 = vadd.f32 %v10810_v2, %v4817_v8  ;;  %v4950_v5 = vmax.f32 %v4886_v39, 0.0 }
 0x3dc   : > { %v4885_v46 = vadd.f32 %v10810_v2, %v4815_v51  ;;  %v8503_v7 = vpop.f32.mrb[32].mxu0  ;;  %v4948_v25 = vmax.f32 %v4884_v42, 0.0 }
 0x3dd   : > { %v4951_v33 = vmax.f32 %v4887_v55, 0.0  ;;  %v8797_v62 = vadd.f32 %v8503_v7, %v10608_v57  ;;  %v4589_v1 = vpop.f32.mrb[33].mxu0 }
 0x3de   : > { %v4949_v40 = vmax.f32 %v4885_v46, 0.0  ;;  %v8798_v35 = vadd.f32 %v4589_v1, %v10612_v32  ;;  %v8504_v3 = vpop.f32.mrb[34].mxu0 }
 0x3df   : > { %v7208_v60 = vpack.c.bf16 %v4951_v33, %v4950_v5  ;;  %v4820_v12 = vmul.f32 %v8797_v62, %v10804_v29  ;;  %v8799_v28 = vadd.f32 %v8504_v3, %v10614_v34  ;;  %v4592_v13 = vpop.f32.mrb[35].mxu0 }
 0x3e0   : > { %v7203_v47 = vpack.c.bf16 %v4949_v40, %v4948_v25  ;;  %v4818_v54 = vmul.f32 %v8798_v35, %v10804_v29  ;;  %v8800_v48 = vadd.f32 %v4592_v13, %v10616_v59  ;;  %v11154_v13 = vld [vmem:[#allocation11_spill] sm:$0xff] }
 0x3e1   : > { %7324 = vst [vmem:[%s10830_s21 + $0x78] sm:$0xff] %v7208_v60   ;;  %v4890_v57 = vadd.f32 %v10810_v2, %v4820_v12  ;;  %v4821_v16 = vmul.f32 %v8799_v28, %v10804_v29 }
 0x3e2   : > { %7323 = vst [vmem:[%s10830_s21 + $0x70] sm:$0xff] %v7203_v47   ;;  %v4888_v32 = vadd.f32 %v10810_v2, %v4818_v54  ;;  %v4819_v63 = vmul.f32 %v8800_v48, %v10804_v29 }
 0x3e3   : > { %v4891_v45 = vadd.f32 %v10810_v2, %v4821_v16  ;;  %v4954_v52 = vmax.f32 %v4890_v57, 0.0  ;;  %v11155_v16 = vld [vmem:[#allocation12_spill] sm:$0xff] }
 0x3e4   : > { %v4889_v34 = vadd.f32 %v10810_v2, %v4819_v63  ;;  %v8507_v20 = vpop.f32.mrb[36].mxu0  ;;  %v4952_v11 = vmax.f32 %v4888_v32, 0.0 }
 0x3e5   : > { %v4955_v15 = vmax.f32 %v4891_v45, 0.0  ;;  %v8801_v59 = vadd.f32 %v8507_v20, %v10663_v37  ;;  %v4605_v26 = vpop.f32.mrb[37].mxu0  ;;  %v11156_v20 = vld [vmem:[#allocation13_spill] sm:$0xff] }
 0x3e6   : > { %v4953_v61 = vmax.f32 %v4889_v34, 0.0  ;;  %v8802_v58 = vadd.f32 %v4605_v26, %v10667_v4  ;;  %v8508_v17 = vpop.f32.mrb[38].mxu0 }
 0x3e7   : > { %v7218_v24 = vpack.c.bf16 %v4955_v15, %v4954_v52  ;;  %v4824_v27 = vmul.f32 %v8801_v59, %v10804_v29  ;;  %v8803_v9 = vadd.f32 %v8508_v17, %v10671_v0  ;;  %v4608_v23 = vpop.f32.mrb[39].mxu0 }
 0x3e8   : > { %v7213_v22 = vpack.c.bf16 %v4953_v61, %v4952_v11  ;;  %v4822_v6 = vmul.f32 %v8802_v58, %v10804_v29  ;;  %v8804_v44 = vadd.f32 %v4608_v23, %v10673_v43 }
 0x3e9   : > { %7326 = vst [vmem:[%s10830_s21 + $0x88] sm:$0xff] %v7218_v24   ;;  %v4894_v37 = vadd.f32 %v10810_v2, %v4824_v27  ;;  %v4825_v18 = vmul.f32 %v8803_v9, %v10804_v29  ;;  %v11157_v27 = vld [vmem:[#allocation14_spill] sm:$0xff] }
 0x3ea   : > { %7325 = vst [vmem:[%s10830_s21 + $0x80] sm:$0xff] %v7213_v22   ;;  %v4892_v4 = vadd.f32 %v10810_v2, %v4822_v6  ;;  %v4823_v41 = vmul.f32 %v8804_v44, %v10804_v29  ;;  %v11158_v44 = vld [vmem:[#allocation15_spill] sm:$0xff] }
 0x3eb   : > { %v4895_v19 = vadd.f32 %v10810_v2, %v4825_v18  ;;  %v4958_v10 = vmax.f32 %v4894_v37, 0.0 }
 0x3ec   : > { %v4893_v0 = vadd.f32 %v10810_v2, %v4823_v41  ;;  %v8511_v21 = vpop.f32.mrb[40].mxu0  ;;  %v4956_v36 = vmax.f32 %v4892_v4, 0.0 }
 0x3ed   : > { %v4959_v31 = vmax.f32 %v4895_v19, 0.0  ;;  %v8805_v43 = vadd.f32 %v8511_v21, %v10681_v38  ;;  %v4621_v53 = vpop.f32.mrb[41].mxu0  ;;  %v11159_v19 = vld [vmem:[#allocation16_spill] sm:$0xff] }
 0x3ee   : > { %v4957_v14 = vmax.f32 %v4893_v0, 0.0  ;;  %v8806_v39 = vadd.f32 %v4621_v53, %v10686_v30  ;;  %v8512_v8 = vpop.f32.mrb[42].mxu0 }
 0x3ef   : > { %v7228_v42 = vpack.c.bf16 %v4959_v31, %v4958_v10  ;;  %v4828_v51 = vmul.f32 %v8805_v43, %v10804_v29  ;;  %v8807_v55 = vadd.f32 %v8512_v8, %v10690_v49  ;;  %v4624_v46 = vpop.f32.mrb[43].mxu0  ;;  %v11160_v43 = vld [vmem:[#allocation17_spill] sm:$0xff] }
 0x3f0   : > { %v7223_v7 = vpack.c.bf16 %v4957_v14, %v4956_v36  ;;  %v4826_v5 = vmul.f32 %v8806_v39, %v10804_v29  ;;  %v8808_v33 = vadd.f32 %v4624_v46, %v10692_v56 }
 0x3f1   : > { %7328 = vst [vmem:[%s10830_s21 + $0x98] sm:$0xff] %v7228_v42   ;;  %v4898_v38 = vadd.f32 %v10810_v2, %v4828_v51  ;;  %v4829_v62 = vmul.f32 %v8807_v55, %v10804_v29 }
 0x3f2   : > { %7327 = vst [vmem:[%s10830_s21 + $0x90] sm:$0xff] %v7223_v7   ;;  %v4896_v30 = vadd.f32 %v10810_v2, %v4826_v5  ;;  %v4827_v1 = vmul.f32 %v8808_v33, %v10804_v29  ;;  %v11161_v5 = vld [vmem:[#allocation18_spill] sm:$0xff] }
 0x3f3   : > { %v4899_v25 = vadd.f32 %v10810_v2, %v4829_v62  ;;  %v4962_v35 = vmax.f32 %v4898_v38, 0.0 }
 0x3f4   : > { %v4897_v49 = vadd.f32 %v10810_v2, %v4827_v1  ;;  %v8515_v40 = vpop.f32.mrb[44].mxu0  ;;  %v4960_v12 = vmax.f32 %v4896_v30, 0.0  ;;  %v11162_v1 = vld [vmem:[#allocation19_spill] sm:$0xff] }
 0x3f5   : > { %v4963_v3 = vmax.f32 %v4899_v25, 0.0  ;;  %v8809_v56 = vadd.f32 %v8515_v40, %v10697_v50  ;;  %v4637_v60 = vpop.f32.mrb[45].mxu0 }
 0x3f6   : > { %v4961_v28 = vmax.f32 %v4897_v49, 0.0  ;;  %v8810_v47 = vadd.f32 %v4637_v60, %v11154_v13  ;;  %v8516_v54 = vpop.f32.mrb[46].mxu0  ;;  %v11164_v13 = vld [vmem:[#allocation21_spill] sm:$0xff] }
 0x3f7   : > { %v7238_v48 = vpack.c.bf16 %v4963_v3, %v4962_v35  ;;  %v4832_v57 = vmul.f32 %v8809_v56, %v10804_v29  ;;  %v8811_v32 = vadd.f32 %v8516_v54, %v11155_v16  ;;  %v4640_v63 = vpop.f32.mrb[47].mxu0  ;;  %v11163_v3 = vld [vmem:[#allocation20_spill] sm:$0xff] }
 0x3f8   : > { %v7233_v45 = vpack.c.bf16 %v4961_v28, %v4960_v12  ;;  %v4830_v34 = vmul.f32 %v8810_v47, %v10804_v29  ;;  %v8812_v52 = vadd.f32 %v4640_v63, %v11156_v20 }
 0x3f9   : > { %7330 = vst [vmem:[%s10830_s21 + $0xa8] sm:$0xff] %v7238_v48   ;;  %v4902_v50 = vadd.f32 %v10810_v2, %v4832_v57  ;;  %v4833_v15 = vmul.f32 %v8811_v32, %v10804_v29 }
 0x3fa   : > { %7329 = vst [vmem:[%s10830_s21 + $0xa0] sm:$0xff] %v7233_v45   ;;  %v4900_v59 = vadd.f32 %v10810_v2, %v4830_v34  ;;  %v4831_v26 = vmul.f32 %v8812_v52, %v10804_v29 }
 0x3fb   : > { %v4903_v11 = vadd.f32 %v10810_v2, %v4833_v15  ;;  %v4966_v17 = vmax.f32 %v4902_v50, 0.0 }
 0x3fc   : > { %v4901_v61 = vadd.f32 %v10810_v2, %v4831_v26  ;;  %v8519_v58 = vpop.f32.mrb[48].mxu0  ;;  %v4964_v22 = vmax.f32 %v4900_v59, 0.0  ;;  %v11165_v26 = vld [vmem:[#allocation22_spill] sm:$0xff] }
 0x3fd   : > { %v4967_v24 = vmax.f32 %v4903_v11, 0.0  ;;  %v8813_v9 = vadd.f32 %v8519_v58, %v11157_v27  ;;  %v4653_v23 = vpop.f32.mrb[49].mxu0 }
 0x3fe   : > { %v4965_v6 = vmax.f32 %v4901_v61, 0.0  ;;  %v8814_v37 = vadd.f32 %v4653_v23, %v11158_v44  ;;  %v8520_v18 = vpop.f32.mrb[50].mxu0 }
 0x3ff   : > { %v7248_v4 = vpack.c.bf16 %v4967_v24, %v4966_v17  ;;  %v4836_v41 = vmul.f32 %v8813_v9, %v10804_v29  ;;  %v8815_v0 = vadd.f32 %v8520_v18, %v11159_v19  ;;  %v4656_v21 = vpop.f32.mrb[51].mxu0  ;;  %v11166_v9 = vld [vmem:[#allocation23_spill] sm:$0xff] }
 0x400   : > { %v7243_v10 = vpack.c.bf16 %v4965_v6, %v4964_v22  ;;  %v4834_v31 = vmul.f32 %v8814_v37, %v10804_v29  ;;  %v8816_v53 = vadd.f32 %v4656_v21, %v11160_v43 }
 0x401   : > { %7332 = vst [vmem:[%s10830_s21 + $0xb8] sm:$0xff] %v7248_v4   ;;  %v4906_v36 = vadd.f32 %v10810_v2, %v4836_v41  ;;  %v4837_v14 = vmul.f32 %v8815_v0, %v10804_v29  ;;  %v11167_v41 = vld [vmem:[#allocation24_spill] sm:$0xff] }
 0x402   : > { %7331 = vst [vmem:[%s10830_s21 + $0xb0] sm:$0xff] %v7243_v10   ;;  %v4904_v39 = vadd.f32 %v10810_v2, %v4834_v31  ;;  %v4835_v8 = vmul.f32 %v8816_v53, %v10804_v29 }
 0x403   : > { %v4907_v42 = vadd.f32 %v10810_v2, %v4837_v14  ;;  %v4970_v46 = vmax.f32 %v4906_v36, 0.0 }
 0x404   : > { %v4905_v51 = vadd.f32 %v10810_v2, %v4835_v8  ;;  %v8523_v55 = vpop.f32.mrb[52].mxu0  ;;  %v4968_v62 = vmax.f32 %v4904_v39, 0.0  ;;  %v11168_v8 = vld [vmem:[#allocation25_spill] sm:$0xff] }
 0x405   : > { %v4971_v7 = vmax.f32 %v4907_v42, 0.0  ;;  %v8817_v33 = vadd.f32 %v8523_v55, %v11161_v5  ;;  %v4669_v38 = vpop.f32.mrb[53].mxu0 }
 0x406   : > { %v4969_v30 = vmax.f32 %v4905_v51, 0.0  ;;  %v8818_v25 = vadd.f32 %v4669_v38, %v11162_v1  ;;  %v8524_v49 = vpop.f32.mrb[54].mxu0 }
 0x407   : > { %v7258_v40 = vpack.c.bf16 %v4971_v7, %v4970_v46  ;;  %v4840_v35 = vmul.f32 %v8817_v33, %v10804_v29  ;;  %v8819_v56 = vadd.f32 %v8524_v49, %v11163_v3  ;;  %v4672_v60 = vpop.f32.mrb[55].mxu0 }
 0x408   : > { %v7253_v12 = vpack.c.bf16 %v4969_v30, %v4968_v62  ;;  %v4838_v28 = vmul.f32 %v8818_v25, %v10804_v29  ;;  %v8820_v47 = vadd.f32 %v4672_v60, %v11164_v13 }
 0x409   : > { %7334 = vst [vmem:[%s10830_s21 + $0xc8] sm:$0xff] %v7258_v40   ;;  %v4910_v54 = vadd.f32 %v10810_v2, %v4840_v35  ;;  %v4841_v48 = vmul.f32 %v8819_v56, %v10804_v29  ;;  %v11169_v35 = vld [vmem:[#allocation26_spill] sm:$0xff] }
 0x40a   : > { %7333 = vst [vmem:[%s10830_s21 + $0xc0] sm:$0xff] %v7253_v12   ;;  %v4908_v57 = vadd.f32 %v10810_v2, %v4838_v28  ;;  %v4839_v16 = vmul.f32 %v8820_v47, %v10804_v29  ;;  %v11170_v47 = vld [vmem:[#allocation27_spill] sm:$0xff] }
 0x40b   : > { %v4911_v32 = vadd.f32 %v10810_v2, %v4841_v48  ;;  %v8743_v63 = vpop.f32.mrb[64].mxu1  ;;  %v4974_v45 = vmax.f32 %v4910_v54, 0.0 }
 0x40c   : > { %v4909_v34 = vadd.f32 %v10810_v2, %v4839_v16  ;;  %v6631_v20 = vmul.f32 %v8743_v63, %v10804_v29  ;;  %v8527_v52 = vpop.f32.mrb[56].mxu0  ;;  %v6590_v50 = vpop.f32.mrb[65].mxu1  ;;  %v4972_v15 = vmax.f32 %v4908_v57, 0.0 }
 0x40d   : > { %v4975_v59 = vmax.f32 %v4911_v32, 0.0  ;;  %v8821_v11 = vadd.f32 %v8527_v52, %v11165_v26  ;;  %v6629_v61 = vmul.f32 %v10804_v29, %v6590_v50  ;;  %v4685_v58 = vpop.f32.mrb[57].mxu0  ;;  %v8744_v17 = vpop.f32.mrb[66].mxu1  ;;  %v11171_v26 = vld [vmem:[#allocation28_spill] sm:$0xff] }
 0x40e   : > { %v4973_v24 = vmax.f32 %v4909_v34, 0.0  ;;  %v6639_v27 = vadd.f32 %v10810_v2, %v6631_v20  ;;  %v8822_v23 = vadd.f32 %v4685_v58, %v11166_v9  ;;  %v6632_v22 = vmul.f32 %v8744_v17, %v10804_v29  ;;  %v8528_v6 = vpop.f32.mrb[58].mxu0  ;;  %v6593_v44 = vpop.f32.mrb[67].mxu1 }
 0x40f   : > { %v7268_v37 = vpack.c.bf16 %v4975_v59, %v4974_v45  ;;  %v4844_v18 = vmul.f32 %v8821_v11, %v10804_v29  ;;  %v6637_v4 = vadd.f32 %v10810_v2, %v6629_v61  ;;  %v8823_v19 = vadd.f32 %v8528_v6, %v11167_v41  ;;  %v4688_v0 = vpop.f32.mrb[59].mxu0 }
 0x410   : > { %v7263_v21 = vpack.c.bf16 %v4973_v24, %v4972_v15  ;;  %v4842_v10 = vmul.f32 %v8822_v23, %v10804_v29  ;;  %v6640_v31 = vadd.f32 %v10810_v2, %v6632_v22  ;;  %v6630_v36 = vmul.f32 %v10804_v29, %v6593_v44 }
 0x411   : > { %7336 = vst [vmem:[%s10830_s21 + $0xd8] sm:$0xff] %v7268_v37   ;;  %v4914_v43 = vadd.f32 %v10810_v2, %v4844_v18  ;;  %v4845_v53 = vmul.f32 %v8823_v19, %v10804_v29  ;;  %v6647_v14 = vmax.f32 %v6639_v27, 0.0  ;;  %v8824_v42 = vadd.f32 %v4688_v0, %v11168_v8  ;;  %v11172_v27 = vld [vmem:[#allocation29_spill] sm:$0xff] }
 0x412   : > { %7335 = vst [vmem:[%s10830_s21 + $0xd0] sm:$0xff] %v7263_v21   ;;  %v6648_v39 = vmax.f32 %v6640_v31, 0.0  ;;  %v6645_v51 = vmax.f32 %v6637_v4, 0.0  ;;  %v4912_v55 = vadd.f32 %v10810_v2, %v4842_v10  ;;  %v6638_v7 = vadd.f32 %v10810_v2, %v6630_v36 }
 0x413   : > { %v4915_v46 = vadd.f32 %v10810_v2, %v4845_v53  ;;  %v8747_v5 = vpop.f32.mrb[68].mxu1  ;;  %v4978_v33 = vmax.f32 %v4914_v43, 0.0  ;;  %v4843_v62 = vmul.f32 %v8824_v42, %v10804_v29 }
 0x414   : > { %v7298_v38 = vpack.c.bf16 %v6648_v39, %v6647_v14  ;;  %v6635_v30 = vmul.f32 %v8747_v5, %v10804_v29  ;;  %v8531_v1 = vpop.f32.mrb[60].mxu0  ;;  %v6606_v25 = vpop.f32.mrb[69].mxu1  ;;  %v6646_v40 = vmax.f32 %v6638_v7, 0.0  ;;  %v4976_v20 = vmax.f32 %v4912_v55, 0.0 }
 0x415   : > { %v4979_v49 = vmax.f32 %v4915_v46, 0.0  ;;  %v8825_v3 = vadd.f32 %v8531_v1, %v11169_v35  ;;  %v6633_v56 = vmul.f32 %v10804_v29, %v6606_v25  ;;  %v4701_v60 = vpop.f32.mrb[61].mxu0  ;;  %v8748_v12 = vpop.f32.mrb[70].mxu1  ;;  %v4913_v28 = vadd.f32 %v10810_v2, %v4843_v62 }
 0x416   : > { %7342 = vst [vmem:[%s10830_s21 + $0x108] sm:$0xff] %v7298_v38   ;;  %v6643_v13 = vadd.f32 %v10810_v2, %v6635_v30  ;;  %v8826_v54 = vadd.f32 %v4701_v60, %v11170_v47  ;;  %v6636_v48 = vmul.f32 %v8748_v12, %v10804_v29  ;;  %v8532_v57 = vpop.f32.mrb[62].mxu0  ;;  %v6609_v16 = vpop.f32.mrb[71].mxu1  ;;  %v7293_v63 = vpack.c.bf16 %v6646_v40, %v6645_v51 }
 0x417   : > { %v7278_v32 = vpack.c.bf16 %v4979_v49, %v4978_v33  ;;  %v4848_v45 = vmul.f32 %v8825_v3, %v10804_v29  ;;  %v4704_v34 = vpop.f32.mrb[63].mxu0  ;;  %v4977_v52 = vmax.f32 %v4913_v28, 0.0  ;;  %v6641_v59 = vadd.f32 %v10810_v2, %v6633_v56 }
 0x418   : > { %v4846_v50 = vmul.f32 %v8826_v54, %v10804_v29  ;;  %v6644_v15 = vadd.f32 %v10810_v2, %v6636_v48  ;;  %7341 = vst [vmem:[%s10830_s21 + $0x100] sm:$0xff] %v7293_v63   ;;  %v8827_v11 = vadd.f32 %v8532_v57, %v11171_v26  ;;  %v6634_v61 = vmul.f32 %v10804_v29, %v6609_v16 }
 0x419   : > { %7338 = vst [vmem:[%s10830_s21 + $0xe8] sm:$0xff] %v7278_v32   ;;  %v7273_v58 = vpack.c.bf16 %v4977_v52, %v4976_v20  ;;  %v6651_v17 = vmax.f32 %v6643_v13, 0.0  ;;  %v8828_v9 = vadd.f32 %v4704_v34, %v11172_v27  ;;  %v4918_v23 = vadd.f32 %v10810_v2, %v4848_v45 }
 0x41a   : > { %v6652_v24 = vmax.f32 %v6644_v15, 0.0  ;;  %v4849_v22 = vmul.f32 %v8827_v11, %v10804_v29  ;;  %v6642_v6 = vadd.f32 %v10810_v2, %v6634_v61  ;;  %v4916_v44 = vadd.f32 %v10810_v2, %v4846_v50 }
 0x41b   : > { %7337 = vst [vmem:[%s10830_s21 + $0xe0] sm:$0xff] %v7273_v58   ;;  %v4847_v18 = vmul.f32 %v8828_v9, %v10804_v29  ;;  %v6649_v4 = vmax.f32 %v6641_v59, 0.0  ;;  %v4982_v21 = vmax.f32 %v4918_v23, 0.0 }
 0x41c   : > { %v7308_v37 = vpack.c.bf16 %v6652_v24, %v6651_v17  ;;  %v4919_v41 = vadd.f32 %v10810_v2, %v4849_v22  ;;  %v6650_v19 = vmax.f32 %v6642_v6, 0.0  ;;  %v4980_v43 = vmax.f32 %v4916_v44, 0.0 }
 0x41d   : > { %v4917_v0 = vadd.f32 %v10810_v2, %v4847_v18 }
 0x41e   : > { %7344 = vst [vmem:[%s10830_s21 + $0x118] sm:$0xff] %v7308_v37   ;;  %v4983_v10 = vmax.f32 %v4919_v41, 0.0  ;;  %v7303_v31 = vpack.c.bf16 %v6650_v19, %v6649_v4 }
 0x41f   : > { %v4981_v53 = vmax.f32 %v4917_v0, 0.0 }
 0x420   : > { %v7288_v36 = vpack.c.bf16 %v4983_v10, %v4982_v21  ;;  %7343 = vst [vmem:[%s10830_s21 + $0x110] sm:$0xff] %v7303_v31  }
 0x421   : > { %v7283_v29 = vpack.c.bf16 %v4981_v53, %v4980_v43 }
 0x422   : > { %7340 = vst [vmem:[%s10830_s21 + $0xf8] sm:$0xff] %v7288_v36  }
 0x423   : > { %7339 = vst [vmem:[%s10830_s21 + $0xf0] sm:$0xff] %v7283_v29  }
 0x424   : > { %9648 = shalt.err (!%p9645_p5)
}
 0x425   : > { %s9649_s23 = scalar_lea.hbm %s11061_s28, 4608  ;;  %s9653_s12 = scalar_lea.hbm %s11118_s4, 9216 }
 0x426   : > { %p9650_p9 = scmp.ne.s32.totalorder %s11061_s28, %s9649_s23  ;;  %p9654_p3 = scmp.lt.u32.totalorder %s11061_s28, %s11118_s4 }
 0x427   : > { %p9655_p7 = scmp.lt.u32.totalorder %s9653_s12, %s9649_s23  ;;  %p9657_p4 = scmp.lt.u32.totalorder %s9649_s23, %s11061_s28 }
 0x428   : > { %p9651_p1 = pnand %p9650_p9, %p9849_p10 }
 0x429   : > { %p9656_p11 = por %p9655_p7, %p9654_p3 }
 0x42a   : > { %p9652_p2 = pneg %p9651_p1 }
 0x42b   : > { %p9658_p6 = por %p9657_p4, %p9656_p11 }
 0x42d   : > { %p9659_p8 = pnand %p9658_p6, %p9652_p2 }
 0x42f   : > { %9662 = shalt.err (!%p9659_p8)
}
 0x430   : > { %s9730_s22 = smov 64   ;;  %s9731_s24 = smov 4  }
 0x431   : > { %9352 = dma.vmem_to_hbm [thread:$0]  (%p9849_p10), %s11063_s14, 4608, %s11061_s28, %s6694_s18, %s9730_s22, %s9730_s22, %s9731_s24  }
 0x432 PF: > { %s6723_s6 = sand.u32 1, %s9701_s15   ;;  %p11173_p12 = scmp.ne.s32.totalorder %s11126_s26, 0 }
 0x433   : > { %p11174_p13 = scmp.ge.s32.totalorder %s9721_s20, 2  ;;  %s6724_s8 = scalar_lea.sflag [#allocation4], %s6723_s6 }
 0x435   : > { %p9363_p0 = pnand %p11174_p13, %p11173_p12 }
 0x437   : > { %9696 = dma.done.wait (!%p9363_p0), %s6724_s8, 4608  }
 0x438   : > { %9698 = vsyncadd (!%p9363_p0), %s6724_s8, 4294962688  ;;  %s21_s20 = sadd.s32 1, %s9721_s20   ;;  %s11175_s15 = smov %s9705_s16 }
 0x439   : > { %p18_p5 = scmp.ge.s32.totalorder %s21_s20, 4   ;;  %s11176_s16 = smov %s9709_s17 }
 0x43a   : > { %s11177_s17 = smov %s9858_s10  ;;  %s11178_s18 = smov %s9717_s19 }
 0x43b   : > { %s11179_s19 = smov %s11181_s5  ;;  %20 = sbr.rel (!%p18_p5) target bundleno = 7 (0x7), region = 100 }
 0x442   :  { %6729 = vsyncpa [#allocation3], 1 }
 0x443   :  { %6731 = vsyncpa [#allocation3 + $0x1], 1 }
 0x444   :  { %6732 = vsyncpa [#allocation6], 1 }
 0x445   :  { %6733 = vsyncpa [#allocation4], 1 }
 0x446   :  { %6735 = vsyncpa [#allocation4 + $0x1], 1 }

</bundles_post_ra>
